<compile_context>
chip_gen: v7x
topology: tpu7x:2x2x1
jax: 0.10.0
libtpu: 0.0.40
codegen_flags: <defaults>
</compile_context>

<pallas_src>
from functools import partial

import jax
import jax.numpy as jnp
from jax.experimental import pallas as pl
from jax.experimental.pallas import tpu as pltpu


C_STEM = 32      # stem output channels
C_EXP = 128      # MBConv expanded channels
C_SE = 8         # squeeze-excite bottleneck
C_HEAD = 1408    # EfficientNet-B2 classifier in_features
N_CLASSES = 4    # custom classifier

_VMEM_LIMIT = 32 * 1024 * 1024
VMEM_SPEC = pl.BlockSpec(memory_space=pltpu.MemorySpace.VMEM)


# ----------------------------------------------------------------------------
# In-kernel activation helpers (divide goes to the EUP slot)
# ----------------------------------------------------------------------------
def _silu(y):
    return y * pl.reciprocal(1.0 + jnp.exp(-y), approx=True)


def _sigmoid(y):
    return pl.reciprocal(1.0 + jnp.exp(-y), approx=True)


# ----------------------------------------------------------------------------
# Kernel 1: fused stem conv (im2col K=32) + SiLU + 1x1 expand + SiLU
# ----------------------------------------------------------------------------
def _stem_expand_kernel(pm_ref, ws_ref, bs_ref, we_ref, be_ref, h_ref, e_ref):
    h = jnp.dot(pm_ref[...], ws_ref[...], preferred_element_type=jnp.float32)
    h = _silu(h + bs_ref[...])
    e = jnp.dot(h, we_ref[...], preferred_element_type=jnp.float32)
    h_ref[...] = h
    e_ref[...] = _silu(e + be_ref[...])


def stem_expand(pm, stem_w, stem_b, exp_w, exp_b, tm):
    M, K = pm.shape
    return pl.pallas_call(
        _stem_expand_kernel,
        out_shape=(jax.ShapeDtypeStruct((M, C_STEM), jnp.float32),
                   jax.ShapeDtypeStruct((M, C_EXP), jnp.float32)),
        grid=(M // tm,),
        in_specs=[
            pl.BlockSpec((tm, K), lambda i: (i, 0)),
            pl.BlockSpec((K, C_STEM), lambda i: (0, 0)),
            pl.BlockSpec((1, C_STEM), lambda i: (0, 0)),
            pl.BlockSpec((C_STEM, C_EXP), lambda i: (0, 0)),
            pl.BlockSpec((1, C_EXP), lambda i: (0, 0)),
        ],
        out_specs=(pl.BlockSpec((tm, C_STEM), lambda i: (i, 0)),
                   pl.BlockSpec((tm, C_EXP), lambda i: (i, 0))),
        compiler_params=pltpu.CompilerParams(
            dimension_semantics=("parallel",),
            vmem_limit_bytes=_VMEM_LIMIT),
    )(pm, stem_w, stem_b.reshape(1, C_STEM), exp_w, exp_b.reshape(1, C_EXP))


# ----------------------------------------------------------------------------
# Kernel 2: depthwise 3x3 conv + SiLU, taps formed in-kernel from a halo-padded
# image (no im2col HBM blowup). Grid over batch.
# ----------------------------------------------------------------------------
def _dwconv_silu_kernel(xp_ref, w_ref, b_ref, o_ref):
    H, W = o_ref.shape[1], o_ref.shape[2]
    x = xp_ref[0]            # (H+2, W+2, C)
    w = w_ref[...]           # (9, 1, C)
    acc = None
    for k in range(9):       # static unroll over the 9 taps (VPU elementwise)
        dy, dx = divmod(k, 3)
        t = x[dy:dy + H, dx:dx + W, :] * w[k]
        acc = t if acc is None else acc + t
    y = acc + b_ref[...]
    o_ref[0] = _silu(y)


def dwconv_silu(e_pad, dw_w, dw_b):
    N, Hp, Wp, C = e_pad.shape
    H, W = Hp - 2, Wp - 2
    return pl.pallas_call(
        _dwconv_silu_kernel,
        out_shape=jax.ShapeDtypeStruct((N, H, W, C), jnp.float32),
        grid=(N,),
        in_specs=[
            pl.BlockSpec((1, Hp, Wp, C), lambda n: (n, 0, 0, 0)),
            pl.BlockSpec((9, 1, C), lambda n: (0, 0, 0)),
            pl.BlockSpec((1, C), lambda n: (0, 0)),
        ],
        out_specs=pl.BlockSpec((1, H, W, C), lambda n: (n, 0, 0, 0)),
        compiler_params=pltpu.CompilerParams(
            dimension_semantics=("parallel",),
            vmem_limit_bytes=_VMEM_LIMIT),
    )(e_pad, dw_w.reshape(9, 1, C), dw_b.reshape(1, C))


# ----------------------------------------------------------------------------
# Kernel 3: fused squeeze-excite branch (GAP -> FC1+SiLU -> FC2+sigmoid)
# ----------------------------------------------------------------------------
def _se_kernel(d_ref, w1_ref, b1_ref, w2_ref, b2_ref, o_ref, *, inv_hw):
    g = jnp.sum(d_ref[0], axis=0, keepdims=True) * inv_hw                # (1, CE)
    z = jnp.dot(g, w1_ref[...], preferred_element_type=jnp.float32)
    z = _silu(z + b1_ref[...])                                           # (1, C_SE)
    z = jnp.dot(z, w2_ref[...], preferred_element_type=jnp.float32)
    o_ref[0] = _sigmoid(z + b2_ref[...])                                 # (1, CE)


def se_excite(d3, w1, b1, w2, b2):
    N, HW, C = d3.shape
    return pl.pallas_call(
        partial(_se_kernel, inv_hw=1.0 / HW),
        out_shape=jax.ShapeDtypeStruct((N, 1, C), jnp.float32),
        grid=(N,),
        in_specs=[
            pl.BlockSpec((1, HW, C), lambda n: (n, 0, 0)),
            pl.BlockSpec((C, C_SE), lambda n: (0, 0)),
            pl.BlockSpec((1, C_SE), lambda n: (0, 0)),
            pl.BlockSpec((C_SE, C), lambda n: (0, 0)),
            pl.BlockSpec((1, C), lambda n: (0, 0)),
        ],
        out_specs=pl.BlockSpec((1, 1, C), lambda n: (n, 0, 0)),
        compiler_params=pltpu.CompilerParams(
            dimension_semantics=("parallel",),
            vmem_limit_bytes=_VMEM_LIMIT),
    )(d3, w1, b1.reshape(1, C_SE), w2, b2.reshape(1, C))


# ----------------------------------------------------------------------------
# Kernel 4: fused channel scale (SE) + 1x1 projection + residual add
# ----------------------------------------------------------------------------
def _scale_proj_res_kernel(d_ref, s_ref, h_ref, w_ref, b_ref, o_ref):
    x = d_ref[0] * s_ref[0]                                              # (TP, CE)
    y = jnp.dot(x, w_ref[...], preferred_element_type=jnp.float32)
    o_ref[0] = y + b_ref[...] + h_ref[0]


def scale_proj_residual(d3, s, h3, proj_w, proj_b, tp):
    N, HW, CE = d3.shape
    CS = proj_w.shape[1]
    return pl.pallas_call(
        _scale_proj_res_kernel,
        out_shape=jax.ShapeDtypeStruct((N, HW, CS), jnp.float32),
        grid=(N, HW // tp),
        in_specs=[
            pl.BlockSpec((1, tp, CE), lambda n, p: (n, p, 0)),
            pl.BlockSpec((1, 1, CE), lambda n, p: (n, 0, 0)),
            pl.BlockSpec((1, tp, CS), lambda n, p: (n, p, 0)),
            pl.BlockSpec((CE, CS), lambda n, p: (0, 0)),
            pl.BlockSpec((1, CS), lambda n, p: (0, 0)),
        ],
        out_specs=pl.BlockSpec((1, tp, CS), lambda n, p: (n, p, 0)),
        compiler_params=pltpu.CompilerParams(
            dimension_semantics=("parallel", "parallel"),
            vmem_limit_bytes=_VMEM_LIMIT),
    )(d3, s, h3, proj_w, proj_b.reshape(1, CS))


# ----------------------------------------------------------------------------
# Kernel 5: fused head 1x1 conv (32->1408) + SiLU + global average pool.
# The (NHW, 1408) activation is never written to HBM; partial sums accumulate
# in a (1, 1408) VMEM scratch across pixel tiles (reduction axis "arbitrary").
# ----------------------------------------------------------------------------
def _head_gap_kernel(h2_ref, w_ref, b_ref, o_ref, acc_ref, *, inv_hw):
    p = pl.program_id(1)

    @pl.when(p == 0)
    def _():
        acc_ref[...] = jnp.zeros_like(acc_ref)

    y = jnp.dot(h2_ref[0], w_ref[...], preferred_element_type=jnp.float32)
    y = _silu(y + b_ref[...])                                            # (TP, CH)
    acc_ref[...] += jnp.sum(y, axis=0, keepdims=True)

    @pl.when(p == pl.num_programs(1) - 1)
    def _():
        o_ref[0] = acc_ref[...] * inv_hw


def head_gap(h2, head_w, head_b, tp):
    N, HW, CS = h2.shape
    CH = head_w.shape[1]
    return pl.pallas_call(
        partial(_head_gap_kernel, inv_hw=1.0 / HW),
        out_shape=jax.ShapeDtypeStruct((N, 1, CH), jnp.float32),
        grid=(N, HW // tp),
        in_specs=[
            pl.BlockSpec((1, tp, CS), lambda n, p: (n, p, 0)),
            pl.BlockSpec((CS, CH), lambda n, p: (0, 0)),
            pl.BlockSpec((1, CH), lambda n, p: (0, 0)),
        ],
        out_specs=pl.BlockSpec((1, 1, CH), lambda n, p: (n, 0, 0)),
        scratch_shapes=[pltpu.VMEM((1, CH), jnp.float32)],
        compiler_params=pltpu.CompilerParams(
            dimension_semantics=("parallel", "arbitrary"),
            vmem_limit_bytes=_VMEM_LIMIT),
    )(h2, head_w, head_b.reshape(1, CH))


# ----------------------------------------------------------------------------
# Kernel 6: custom classifier  Linear(1408, 4) + Softmax(dim=1)
# (kept as one tiny lane-masked kernel; tiling a 4-wide output would only add
#  partial-store pressure)
# ----------------------------------------------------------------------------
def _classifier_kernel(x_ref, w_ref, b_ref, o_ref):
    z = jnp.dot(x_ref[...], w_ref[...], preferred_element_type=jnp.float32)
    z = z + b_ref[...]
    z = z - jnp.max(z, axis=1, keepdims=True)
    e = jnp.exp(z)
    o_ref[...] = e / jnp.sum(e, axis=1, keepdims=True)


def classifier_softmax(x, w, b):
    N = x.shape[0]
    C = w.shape[1]
    return pl.pallas_call(
        _classifier_kernel,
        out_shape=jax.ShapeDtypeStruct((N, C), jnp.float32),
        in_specs=[VMEM_SPEC, VMEM_SPEC, VMEM_SPEC],
        out_specs=VMEM_SPEC,
    )(x, w, b.reshape(1, C))


# ----------------------------------------------------------------------------
# JAX glue: stem im2col (3-channel input only), params, full forward
# ----------------------------------------------------------------------------
def im2col(x_nhwc, k=3, stride=1, pad=1):
    N, H, W, C = x_nhwc.shape
    xp = jnp.pad(x_nhwc, ((0, 0), (pad, pad), (pad, pad), (0, 0)))
    Ho = (H + 2 * pad - k) // stride + 1
    Wo = (W + 2 * pad - k) // stride + 1
    taps = []
    for dy in range(k):
        for dx in range(k):
            taps.append(xp[:, dy:dy + stride * Ho:stride, dx:dx + stride * Wo:stride, :])
    patches = jnp.stack(taps, axis=3)  # (N, Ho, Wo, k*k, C)
    return patches, Ho, Wo


def init_params(key):
    ks = jax.random.split(key, 9)

    def rnd(k, shape, fan_in):
        return jax.random.normal(k, shape, jnp.float32) * (1.0 / jnp.sqrt(fan_in))

    stem_w = rnd(ks[0], (27, C_STEM), 27.0)
    stem_w = jnp.pad(stem_w, ((0, 32 - 27), (0, 0)))   # pad K 27 -> 32 for MXU

    return {
        "stem_w": stem_w,
        "stem_b": jnp.zeros((C_STEM,), jnp.float32),
        "exp_w": rnd(ks[1], (C_STEM, C_EXP), float(C_STEM)),
        "exp_b": jnp.zeros((C_EXP,), jnp.float32),
        "dw_w": rnd(ks[2], (9, C_EXP), 9.0),
        "dw_b": jnp.zeros((C_EXP,), jnp.float32),
        "se1_w": rnd(ks[3], (C_EXP, C_SE), float(C_EXP)),
        "se1_b": jnp.zeros((C_SE,), jnp.float32),
        "se2_w": rnd(ks[4], (C_SE, C_EXP), float(C_SE)),
        "se2_b": jnp.zeros((C_EXP,), jnp.float32),
        "proj_w": rnd(ks[5], (C_EXP, C_STEM), float(C_EXP)),
        "proj_b": jnp.zeros((C_STEM,), jnp.float32),
        "head_w": rnd(ks[6], (C_STEM, C_HEAD), float(C_STEM)),
        "head_b": jnp.zeros((C_HEAD,), jnp.float32),
        "cls_w": rnd(ks[7], (C_HEAD, N_CLASSES), float(C_HEAD)),
        "cls_b": rnd(ks[8], (N_CLASSES,), 1.0),
    }


@jax.jit
def efficientnet_binary_forward(x_nchw, params):
    x = jnp.transpose(x_nchw, (0, 2, 3, 1)).astype(jnp.float32)   # NCHW -> NHWC
    N = x.shape[0]

    # ---- stem im2col in JAX (input has only 3 channels; K padded 27->32) ----
    patches, H, W = im2col(x, k=3, stride=2, pad=1)               # (N,H,W,9,3)
    pm = patches.reshape(N * H * W, 27)
    pm = jnp.pad(pm, ((0, 0), (0, 32 - 27)))

    M = N * H * W
    tm = min(M, 512)
    assert M % tm == 0

    # ---- fused stem conv + SiLU + expand 1x1 + SiLU (pixel-tiled) ----
    h, e = stem_expand(pm, params["stem_w"], params["stem_b"],
                       params["exp_w"], params["exp_b"], tm)      # (M,32),(M,128)

    # ---- depthwise 3x3 + SiLU: taps built in-kernel over a halo-padded image ----
    e_pad = jnp.pad(e.reshape(N, H, W, C_EXP),
                    ((0, 0), (1, 1), (1, 1), (0, 0)))
    d = dwconv_silu(e_pad, params["dw_w"], params["dw_b"])        # (N,H,W,128)
    d3 = d.reshape(N, H * W, C_EXP)

    # ---- fused SE branch (GAP -> FC1+SiLU -> FC2+sigmoid) ----
    s = se_excite(d3, params["se1_w"], params["se1_b"],
                  params["se2_w"], params["se2_b"])               # (N,1,128)

    # ---- fused channel scale + projection 1x1 + residual ----
    tp = min(H * W, 512)
    assert (H * W) % tp == 0
    h3 = h.reshape(N, H * W, C_STEM)
    h2 = scale_proj_residual(d3, s, h3,
                             params["proj_w"], params["proj_b"], tp)   # (N,HW,32)

    # ---- fused head 1x1 conv (32->1408) + SiLU + global average pool ----
    feat = head_gap(h2, params["head_w"], params["head_b"], tp)   # (N,1,1408)

    # ---- custom classifier: Linear(1408, 4) + Softmax(dim=1) ----
    return classifier_softmax(feat.reshape(N, C_HEAD),
                              params["cls_w"], params["cls_b"])   # (N,4)


if __name__ == "__main__":
    key = jax.random.PRNGKey(0)
    k_x, k_p = jax.random.split(key)
    x = jax.random.normal(k_x, (2, 3, 16, 16), jnp.float32)       # NCHW, like PyTorch
    params = init_params(k_p)

    out = jax.block_until_ready(efficientnet_binary_forward(x, params))

    assert out.shape == (2, 4)
    assert bool(jnp.all(jnp.isfinite(out)))
    assert bool(jnp.allclose(jnp.sum(out, axis=1), 1.0, atol=1e-5))  # softmax rows
    print("KERNEL_OK")
</pallas_src>

<mosaic_0001>
module attributes {stable_mosaic.version = 11 : i64} {
  func.func @_stem_expand_kernel(%arg0: i32, %arg1: memref<128x32xf32, #tpu.memory_space<vmem>>, %arg2: memref<32x32xf32, #tpu.memory_space<vmem>>, %arg3: memref<1x32xf32, #tpu.memory_space<vmem>>, %arg4: memref<32x128xf32, #tpu.memory_space<vmem>>, %arg5: memref<1x128xf32, #tpu.memory_space<vmem>>, %arg6: memref<128x32xf32, #tpu.memory_space<vmem>>, %arg7: memref<128x128xf32, #tpu.memory_space<vmem>>) attributes {dimension_semantics = [#tpu.dimension_semantics<parallel>], iteration_bounds = array<i64: 1>, scalar_prefetch = 0 : i64, scratch_operands = 0 : i64, tpu.core_type = #tpu.core_type<tc>, window_params = [{transform_indices = @transform_0, window_bounds = array<i64: 128, 32>}, {pipeline_mode = #tpu.pipeline_mode<synchronous>, transform_indices = @transform_1, window_bounds = array<i64: 32, 32>}, {pipeline_mode = #tpu.pipeline_mode<synchronous>, transform_indices = @transform_2, window_bounds = array<i64: 1, 32>}, {pipeline_mode = #tpu.pipeline_mode<synchronous>, transform_indices = @transform_3, window_bounds = array<i64: 32, 128>}, {pipeline_mode = #tpu.pipeline_mode<synchronous>, transform_indices = @transform_4, window_bounds = array<i64: 1, 128>}, {transform_indices = @transform_5, window_bounds = array<i64: 128, 32>}, {transform_indices = @transform_6, window_bounds = array<i64: 128, 128>}]} {
    %c0 = arith.constant 0 : index
    %c0_0 = arith.constant 0 : index
    %0 = vector.load %arg1[%c0, %c0_0] : memref<128x32xf32, #tpu.memory_space<vmem>>, vector<128x32xf32>
    %c0_1 = arith.constant 0 : index
    %c0_2 = arith.constant 0 : index
    %1 = vector.load %arg2[%c0_1, %c0_2] : memref<32x32xf32, #tpu.memory_space<vmem>>, vector<32x32xf32>
    %cst = arith.constant dense<0.000000e+00> : vector<128x32xf32>
    %2 = tpu.matmul %0, %1, %cst {dimension_numbers = #tpu.dot_dimension_numbers<[1], [0], [0], [1], [0, 0, 1, 1], [], []>} : vector<128x32xf32>, vector<32x32xf32>, vector<128x32xf32> -> vector<128x32xf32>
    %c0_3 = arith.constant 0 : index
    %c0_4 = arith.constant 0 : index
    %3 = vector.load %arg3[%c0_3, %c0_4] : memref<1x32xf32, #tpu.memory_space<vmem>>, vector<1x32xf32>
    %4 = vector.broadcast %3 : vector<1x32xf32> to vector<128x32xf32>
    %5 = arith.addf %2, %4 : vector<128x32xf32>
    %cst_5 = arith.constant 0.000000e+00 : f32
    %6 = vector.broadcast %cst_5 : f32 to vector<128x32xf32>
    %7 = arith.subf %6, %5 : vector<128x32xf32>
    %8 = math.exp %7 : vector<128x32xf32>
    %cst_6 = arith.constant 1.000000e+00 : f32
    %9 = vector.broadcast %cst_6 : f32 to vector<128x32xf32>
    %10 = arith.addf %9, %8 : vector<128x32xf32>
    %11 = tpu.reciprocal %10 {approx = true} : vector<128x32xf32> -> vector<128x32xf32>
    %12 = arith.mulf %5, %11 : vector<128x32xf32>
    %c0_7 = arith.constant 0 : index
    %c0_8 = arith.constant 0 : index
    %13 = vector.load %arg4[%c0_7, %c0_8] : memref<32x128xf32, #tpu.memory_space<vmem>>, vector<32x128xf32>
    %cst_9 = arith.constant dense<0.000000e+00> : vector<128x128xf32>
    %14 = tpu.matmul %12, %13, %cst_9 {dimension_numbers = #tpu.dot_dimension_numbers<[1], [0], [0], [1], [0, 0, 1, 1], [], []>} : vector<128x32xf32>, vector<32x128xf32>, vector<128x128xf32> -> vector<128x128xf32>
    %c0_10 = arith.constant 0 : index
    %c0_11 = arith.constant 0 : index
    %15 = vector.load %arg6[%c0_10, %c0_11] : memref<128x32xf32, #tpu.memory_space<vmem>>, vector<128x32xf32>
    tpu.vector_store %arg6[%c0_10, %c0_11], %12 {strides = array<i32>} : memref<128x32xf32, #tpu.memory_space<vmem>>, vector<128x32xf32>,
    %c0_12 = arith.constant 0 : index
    %c0_13 = arith.constant 0 : index
    %16 = vector.load %arg5[%c0_12, %c0_13] : memref<1x128xf32, #tpu.memory_space<vmem>>, vector<1x128xf32>
    %17 = vector.broadcast %16 : vector<1x128xf32> to vector<128x128xf32>
    %18 = arith.addf %14, %17 : vector<128x128xf32>
    %cst_14 = arith.constant 0.000000e+00 : f32
    %19 = vector.broadcast %cst_14 : f32 to vector<128x128xf32>
    %20 = arith.subf %19, %18 : vector<128x128xf32>
    %21 = math.exp %20 : vector<128x128xf32>
    %cst_15 = arith.constant 1.000000e+00 : f32
    %22 = vector.broadcast %cst_15 : f32 to vector<128x128xf32>
    %23 = arith.addf %22, %21 : vector<128x128xf32>
    %24 = tpu.reciprocal %23 {approx = true} : vector<128x128xf32> -> vector<128x128xf32>
    %25 = arith.mulf %18, %24 : vector<128x128xf32>
    %c0_16 = arith.constant 0 : index
    %c0_17 = arith.constant 0 : index
    %26 = vector.load %arg7[%c0_16, %c0_17] : memref<128x128xf32, #tpu.memory_space<vmem>>, vector<128x128xf32>
    tpu.vector_store %arg7[%c0_16, %c0_17], %25 {strides = array<i32>} : memref<128x128xf32, #tpu.memory_space<vmem>>, vector<128x128xf32>,
    return
  }
  func.func @transform_0(%arg0: i32) -> (i32, i32) {
    %c0_i32 = arith.constant 0 : i32
    %c0_i32_0 = arith.constant 0 : i32
    return %arg0, %c0_i32 : i32, i32
  }
  func.func @transform_1(%arg0: i32) -> (i32, i32) {
    %c0_i32 = arith.constant 0 : i32
    %c0_i32_0 = arith.constant 0 : i32
    %c0_i32_1 = arith.constant 0 : i32
    return %c0_i32, %c0_i32_0 : i32, i32
  }
  func.func @transform_2(%arg0: i32) -> (i32, i32) {
    %c0_i32 = arith.constant 0 : i32
    %c0_i32_0 = arith.constant 0 : i32
    %c0_i32_1 = arith.constant 0 : i32
    return %c0_i32, %c0_i32_0 : i32, i32
  }
  func.func @transform_3(%arg0: i32) -> (i32, i32) {
    %c0_i32 = arith.constant 0 : i32
    %c0_i32_0 = arith.constant 0 : i32
    %c0_i32_1 = arith.constant 0 : i32
    return %c0_i32, %c0_i32_0 : i32, i32
  }
  func.func @transform_4(%arg0: i32) -> (i32, i32) {
    %c0_i32 = arith.constant 0 : i32
    %c0_i32_0 = arith.constant 0 : i32
    %c0_i32_1 = arith.constant 0 : i32
    return %c0_i32, %c0_i32_0 : i32, i32
  }
  func.func @transform_5(%arg0: i32) -> (i32, i32) {
    %c0_i32 = arith.constant 0 : i32
    %c0_i32_0 = arith.constant 0 : i32
    return %arg0, %c0_i32 : i32, i32
  }
  func.func @transform_6(%arg0: i32) -> (i32, i32) {
    %c0_i32 = arith.constant 0 : i32
    %c0_i32_0 = arith.constant 0 : i32
    return %arg0, %c0_i32 : i32, i32
  }
}

module attributes {stable_mosaic.version = 11 : i64} {
  func.func @_dwconv_silu_kernel(%arg0: i32, %arg1: memref<1x10x10x128xf32, #tpu.memory_space<vmem>>, %arg2: memref<9x1x128xf32, #tpu.memory_space<vmem>>, %arg3: memref<1x128xf32, #tpu.memory_space<vmem>>, %arg4: memref<1x8x8x128xf32, #tpu.memory_space<vmem>>) attributes {dimension_semantics = [#tpu.dimension_semantics<parallel>], iteration_bounds = array<i64: 2>, scalar_prefetch = 0 : i64, scratch_operands = 0 : i64, tpu.core_type = #tpu.core_type<tc>, window_params = [{transform_indices = @transform_0, window_bounds = array<i64: 1, 10, 10, 128>}, {pipeline_mode = #tpu.pipeline_mode<synchronous>, transform_indices = @transform_1, window_bounds = array<i64: 9, 1, 128>}, {pipeline_mode = #tpu.pipeline_mode<synchronous>, transform_indices = @transform_2, window_bounds = array<i64: 1, 128>}, {transform_indices = @transform_3, window_bounds = array<i64: 1, 8, 8, 128>}]} {
    %c0 = arith.constant 0 : index
    %c0_0 = arith.constant 0 : index
    %c0_1 = arith.constant 0 : index
    %c0_2 = arith.constant 0 : index
    %0 = vector.load %arg1[%c0, %c0_0, %c0_1, %c0_2] : memref<1x10x10x128xf32, #tpu.memory_space<vmem>>, vector<1x10x10x128xf32>
    %1 = vector.shape_cast %0 : vector<1x10x10x128xf32> to vector<10x10x128xf32>
    %c0_3 = arith.constant 0 : index
    %c0_4 = arith.constant 0 : index
    %c0_5 = arith.constant 0 : index
    %2 = vector.load %arg2[%c0_3, %c0_4, %c0_5] : memref<9x1x128xf32, #tpu.memory_space<vmem>>, vector<9x1x128xf32>
    %3 = vector.extract_strided_slice %1 {offsets = [0, 0, 0], sizes = [8, 8, 128], strides = [1, 1, 1]} : vector<10x10x128xf32> to vector<8x8x128xf32>
    %4 = vector.extract_strided_slice %2 {offsets = [0, 0, 0], sizes = [1, 1, 128], strides = [1, 1, 1]} : vector<9x1x128xf32> to vector<1x1x128xf32>
    %5 = vector.shape_cast %4 : vector<1x1x128xf32> to vector<1x128xf32>
    %6 = vector.shape_cast %5 : vector<1x128xf32> to vector<1x1x128xf32>
    %7 = vector.broadcast %6 : vector<1x1x128xf32> to vector<8x8x128xf32>
    %8 = arith.mulf %3, %7 : vector<8x8x128xf32>
    %9 = vector.extract_strided_slice %1 {offsets = [0, 1, 0], sizes = [8, 8, 128], strides = [1, 1, 1]} : vector<10x10x128xf32> to vector<8x8x128xf32>
    %10 = vector.extract_strided_slice %2 {offsets = [1, 0, 0], sizes = [1, 1, 128], strides = [1, 1, 1]} : vector<9x1x128xf32> to vector<1x1x128xf32>
    %11 = vector.shape_cast %10 : vector<1x1x128xf32> to vector<1x128xf32>
    %12 = vector.shape_cast %11 : vector<1x128xf32> to vector<1x1x128xf32>
    %13 = vector.broadcast %12 : vector<1x1x128xf32> to vector<8x8x128xf32>
    %14 = arith.mulf %9, %13 : vector<8x8x128xf32>
    %15 = arith.addf %8, %14 : vector<8x8x128xf32>
    %16 = vector.extract_strided_slice %1 {offsets = [0, 2, 0], sizes = [8, 8, 128], strides = [1, 1, 1]} : vector<10x10x128xf32> to vector<8x8x128xf32>
    %17 = vector.extract_strided_slice %2 {offsets = [2, 0, 0], sizes = [1, 1, 128], strides = [1, 1, 1]} : vector<9x1x128xf32> to vector<1x1x128xf32>
    %18 = vector.shape_cast %17 : vector<1x1x128xf32> to vector<1x128xf32>
    %19 = vector.shape_cast %18 : vector<1x128xf32> to vector<1x1x128xf32>
    %20 = vector.broadcast %19 : vector<1x1x128xf32> to vector<8x8x128xf32>
    %21 = arith.mulf %16, %20 : vector<8x8x128xf32>
    %22 = arith.addf %15, %21 : vector<8x8x128xf32>
    %23 = vector.extract_strided_slice %1 {offsets = [1, 0, 0], sizes = [8, 8, 128], strides = [1, 1, 1]} : vector<10x10x128xf32> to vector<8x8x128xf32>
    %24 = vector.extract_strided_slice %2 {offsets = [3, 0, 0], sizes = [1, 1, 128], strides = [1, 1, 1]} : vector<9x1x128xf32> to vector<1x1x128xf32>
    %25 = vector.shape_cast %24 : vector<1x1x128xf32> to vector<1x128xf32>
    %26 = vector.shape_cast %25 : vector<1x128xf32> to vector<1x1x128xf32>
    %27 = vector.broadcast %26 : vector<1x1x128xf32> to vector<8x8x128xf32>
    %28 = arith.mulf %23, %27 : vector<8x8x128xf32>
    %29 = arith.addf %22, %28 : vector<8x8x128xf32>
    %30 = vector.extract_strided_slice %1 {offsets = [1, 1, 0], sizes = [8, 8, 128], strides = [1, 1, 1]} : vector<10x10x128xf32> to vector<8x8x128xf32>
    %31 = vector.extract_strided_slice %2 {offsets = [4, 0, 0], sizes = [1, 1, 128], strides = [1, 1, 1]} : vector<9x1x128xf32> to vector<1x1x128xf32>
    %32 = vector.shape_cast %31 : vector<1x1x128xf32> to vector<1x128xf32>
    %33 = vector.shape_cast %32 : vector<1x128xf32> to vector<1x1x128xf32>
    %34 = vector.broadcast %33 : vector<1x1x128xf32> to vector<8x8x128xf32>
    %35 = arith.mulf %30, %34 : vector<8x8x128xf32>
    %36 = arith.addf %29, %35 : vector<8x8x128xf32>
    %37 = vector.extract_strided_slice %1 {offsets = [1, 2, 0], sizes = [8, 8, 128], strides = [1, 1, 1]} : vector<10x10x128xf32> to vector<8x8x128xf32>
    %38 = vector.extract_strided_slice %2 {offsets = [5, 0, 0], sizes = [1, 1, 128], strides = [1, 1, 1]} : vector<9x1x128xf32> to vector<1x1x128xf32>
    %39 = vector.shape_cast %38 : vector<1x1x128xf32> to vector<1x128xf32>
    %40 = vector.shape_cast %39 : vector<1x128xf32> to vector<1x1x128xf32>
    %41 = vector.broadcast %40 : vector<1x1x128xf32> to vector<8x8x128xf32>
    %42 = arith.mulf %37, %41 : vector<8x8x128xf32>
    %43 = arith.addf %36, %42 : vector<8x8x128xf32>
    %44 = vector.extract_strided_slice %1 {offsets = [2, 0, 0], sizes = [8, 8, 128], strides = [1, 1, 1]} : vector<10x10x128xf32> to vector<8x8x128xf32>
    %45 = vector.extract_strided_slice %2 {offsets = [6, 0, 0], sizes = [1, 1, 128], strides = [1, 1, 1]} : vector<9x1x128xf32> to vector<1x1x128xf32>
    %46 = vector.shape_cast %45 : vector<1x1x128xf32> to vector<1x128xf32>
    %47 = vector.shape_cast %46 : vector<1x128xf32> to vector<1x1x128xf32>
    %48 = vector.broadcast %47 : vector<1x1x128xf32> to vector<8x8x128xf32>
    %49 = arith.mulf %44, %48 : vector<8x8x128xf32>
    %50 = arith.addf %43, %49 : vector<8x8x128xf32>
    %51 = vector.extract_strided_slice %1 {offsets = [2, 1, 0], sizes = [8, 8, 128], strides = [1, 1, 1]} : vector<10x10x128xf32> to vector<8x8x128xf32>
    %52 = vector.extract_strided_slice %2 {offsets = [7, 0, 0], sizes = [1, 1, 128], strides = [1, 1, 1]} : vector<9x1x128xf32> to vector<1x1x128xf32>
    %53 = vector.shape_cast %52 : vector<1x1x128xf32> to vector<1x128xf32>
    %54 = vector.shape_cast %53 : vector<1x128xf32> to vector<1x1x128xf32>
    %55 = vector.broadcast %54 : vector<1x1x128xf32> to vector<8x8x128xf32>
    %56 = arith.mulf %51, %55 : vector<8x8x128xf32>
    %57 = arith.addf %50, %56 : vector<8x8x128xf32>
    %58 = vector.extract_strided_slice %1 {offsets = [2, 2, 0], sizes = [8, 8, 128], strides = [1, 1, 1]} : vector<10x10x128xf32> to vector<8x8x128xf32>
    %59 = vector.extract_strided_slice %2 {offsets = [8, 0, 0], sizes = [1, 1, 128], strides = [1, 1, 1]} : vector<9x1x128xf32> to vector<1x1x128xf32>
    %60 = vector.shape_cast %59 : vector<1x1x128xf32> to vector<1x128xf32>
    %61 = vector.shape_cast %60 : vector<1x128xf32> to vector<1x1x128xf32>
    %62 = vector.broadcast %61 : vector<1x1x128xf32> to vector<8x8x128xf32>
    %63 = arith.mulf %58, %62 : vector<8x8x128xf32>
    %64 = arith.addf %57, %63 : vector<8x8x128xf32>
    %c0_6 = arith.constant 0 : index
    %c0_7 = arith.constant 0 : index
    %65 = vector.load %arg3[%c0_6, %c0_7] : memref<1x128xf32, #tpu.memory_space<vmem>>, vector<1x128xf32>
    %66 = vector.shape_cast %65 : vector<1x128xf32> to vector<1x1x128xf32>
    %67 = vector.broadcast %66 : vector<1x1x128xf32> to vector<8x8x128xf32>
    %68 = arith.addf %64, %67 : vector<8x8x128xf32>
    %cst = arith.constant 0.000000e+00 : f32
    %69 = vector.broadcast %cst : f32 to vector<8x8x128xf32>
    %70 = arith.subf %69, %68 : vector<8x8x128xf32>
    %71 = math.exp %70 : vector<8x8x128xf32>
    %cst_8 = arith.constant 1.000000e+00 : f32
    %72 = vector.broadcast %cst_8 : f32 to vector<8x8x128xf32>
    %73 = arith.addf %72, %71 : vector<8x8x128xf32>
    %74 = tpu.reciprocal %73 {approx = true} : vector<8x8x128xf32> -> vector<8x8x128xf32>
    %75 = arith.mulf %68, %74 : vector<8x8x128xf32>
    %c0_9 = arith.constant 0 : index
    %c0_10 = arith.constant 0 : index
    %c0_11 = arith.constant 0 : index
    %c0_12 = arith.constant 0 : index
    %76 = vector.load %arg4[%c0_9, %c0_10, %c0_11, %c0_12] : memref<1x8x8x128xf32, #tpu.memory_space<vmem>>, vector<1x8x8x128xf32>
    %77 = vector.shape_cast %76 : vector<1x8x8x128xf32> to vector<8x8x128xf32>
    %78 = vector.shape_cast %75 : vector<8x8x128xf32> to vector<1x8x8x128xf32>
    tpu.vector_store %arg4[%c0_9, %c0_10, %c0_11, %c0_12], %78 {strides = array<i32>} : memref<1x8x8x128xf32, #tpu.memory_space<vmem>>, vector<1x8x8x128xf32>,
    return
  }
  func.func @transform_0(%arg0: i32) -> (i32, i32, i32, i32) {
    %c0_i32 = arith.constant 0 : i32
    %c0_i32_0 = arith.constant 0 : i32
    %c0_i32_1 = arith.constant 0 : i32
    %c0_i32_2 = arith.constant 0 : i32
    return %arg0, %c0_i32, %c0_i32_0, %c0_i32_1 : i32, i32, i32, i32
  }
  func.func @transform_1(%arg0: i32) -> (i32, i32, i32) {
    %c0_i32 = arith.constant 0 : i32
    %c0_i32_0 = arith.constant 0 : i32
    %c0_i32_1 = arith.constant 0 : i32
    %c0_i32_2 = arith.constant 0 : i32
    return %c0_i32, %c0_i32_0, %c0_i32_1 : i32, i32, i32
  }
  func.func @transform_2(%arg0: i32) -> (i32, i32) {
    %c0_i32 = arith.constant 0 : i32
    %c0_i32_0 = arith.constant 0 : i32
    %c0_i32_1 = arith.constant 0 : i32
    return %c0_i32, %c0_i32_0 : i32, i32
  }
  func.func @transform_3(%arg0: i32) -> (i32, i32, i32, i32) {
    %c0_i32 = arith.constant 0 : i32
    %c0_i32_0 = arith.constant 0 : i32
    %c0_i32_1 = arith.constant 0 : i32
    %c0_i32_2 = arith.constant 0 : i32
    return %arg0, %c0_i32, %c0_i32_0, %c0_i32_1 : i32, i32, i32, i32
  }
}

module attributes {stable_mosaic.version = 11 : i64} {
  func.func @_se_kernel(%arg0: i32, %arg1: memref<1x64x128xf32, #tpu.memory_space<vmem>>, %arg2: memref<128x8xf32, #tpu.memory_space<vmem>>, %arg3: memref<1x8xf32, #tpu.memory_space<vmem>>, %arg4: memref<8x128xf32, #tpu.memory_space<vmem>>, %arg5: memref<1x128xf32, #tpu.memory_space<vmem>>, %arg6: memref<1x1x128xf32, #tpu.memory_space<vmem>>) attributes {dimension_semantics = [#tpu.dimension_semantics<parallel>], iteration_bounds = array<i64: 2>, scalar_prefetch = 0 : i64, scratch_operands = 0 : i64, tpu.core_type = #tpu.core_type<tc>, window_params = [{transform_indices = @transform_0, window_bounds = array<i64: 1, 64, 128>}, {pipeline_mode = #tpu.pipeline_mode<synchronous>, transform_indices = @transform_1, window_bounds = array<i64: 128, 8>}, {pipeline_mode = #tpu.pipeline_mode<synchronous>, transform_indices = @transform_2, window_bounds = array<i64: 1, 8>}, {pipeline_mode = #tpu.pipeline_mode<synchronous>, transform_indices = @transform_3, window_bounds = array<i64: 8, 128>}, {pipeline_mode = #tpu.pipeline_mode<synchronous>, transform_indices = @transform_4, window_bounds = array<i64: 1, 128>}, {transform_indices = @transform_5, window_bounds = array<i64: 1, 1, 128>}]} {
    %c0 = arith.constant 0 : index
    %c0_0 = arith.constant 0 : index
    %c0_1 = arith.constant 0 : index
    %0 = vector.load %arg1[%c0, %c0_0, %c0_1] : memref<1x64x128xf32, #tpu.memory_space<vmem>>, vector<1x64x128xf32>
    %1 = vector.shape_cast %0 : vector<1x64x128xf32> to vector<64x128xf32>
    %cst = arith.constant dense<0.000000e+00> : vector<128xf32>
    %2 = vector.multi_reduction <add>, %1, %cst [0] : vector<64x128xf32> to vector<128xf32>
    %3 = vector.shape_cast %2 : vector<128xf32> to vector<1x128xf32>
    %cst_2 = arith.constant 1.562500e-02 : f32
    %4 = vector.broadcast %cst_2 : f32 to vector<1x128xf32>
    %5 = arith.mulf %3, %4 : vector<1x128xf32>
    %c0_3 = arith.constant 0 : index
    %c0_4 = arith.constant 0 : index
    %6 = vector.load %arg2[%c0_3, %c0_4] : memref<128x8xf32, #tpu.memory_space<vmem>>, vector<128x8xf32>
    %cst_5 = arith.constant dense<0.000000e+00> : vector<1x8xf32>
    %7 = tpu.matmul %5, %6, %cst_5 {dimension_numbers = #tpu.dot_dimension_numbers<[1], [0], [0], [1], [0, 0, 1, 1], [], []>} : vector<1x128xf32>, vector<128x8xf32>, vector<1x8xf32> -> vector<1x8xf32>
    %c0_6 = arith.constant 0 : index
    %c0_7 = arith.constant 0 : index
    %8 = vector.load %arg3[%c0_6, %c0_7] : memref<1x8xf32, #tpu.memory_space<vmem>>, vector<1x8xf32>
    %9 = arith.addf %7, %8 : vector<1x8xf32>
    %cst_8 = arith.constant 0.000000e+00 : f32
    %10 = vector.broadcast %cst_8 : f32 to vector<1x8xf32>
    %11 = arith.subf %10, %9 : vector<1x8xf32>
    %12 = math.exp %11 : vector<1x8xf32>
    %cst_9 = arith.constant 1.000000e+00 : f32
    %13 = vector.broadcast %cst_9 : f32 to vector<1x8xf32>
    %14 = arith.addf %13, %12 : vector<1x8xf32>
    %15 = tpu.reciprocal %14 {approx = true} : vector<1x8xf32> -> vector<1x8xf32>
    %16 = arith.mulf %9, %15 : vector<1x8xf32>
    %c0_10 = arith.constant 0 : index
    %c0_11 = arith.constant 0 : index
    %17 = vector.load %arg4[%c0_10, %c0_11] : memref<8x128xf32, #tpu.memory_space<vmem>>, vector<8x128xf32>
    %cst_12 = arith.constant dense<0.000000e+00> : vector<1x128xf32>
    %18 = tpu.matmul %16, %17, %cst_12 {dimension_numbers = #tpu.dot_dimension_numbers<[1], [0], [0], [1], [0, 0, 1, 1], [], []>} : vector<1x8xf32>, vector<8x128xf32>, vector<1x128xf32> -> vector<1x128xf32>
    %c0_13 = arith.constant 0 : index
    %c0_14 = arith.constant 0 : index
    %19 = vector.load %arg5[%c0_13, %c0_14] : memref<1x128xf32, #tpu.memory_space<vmem>>, vector<1x128xf32>
    %20 = arith.addf %18, %19 : vector<1x128xf32>
    %cst_15 = arith.constant 0.000000e+00 : f32
    %21 = vector.broadcast %cst_15 : f32 to vector<1x128xf32>
    %22 = arith.subf %21, %20 : vector<1x128xf32>
    %23 = math.exp %22 : vector<1x128xf32>
    %cst_16 = arith.constant 1.000000e+00 : f32
    %24 = vector.broadcast %cst_16 : f32 to vector<1x128xf32>
    %25 = arith.addf %24, %23 : vector<1x128xf32>
    %26 = tpu.reciprocal %25 {approx = true} : vector<1x128xf32> -> vector<1x128xf32>
    %c0_17 = arith.constant 0 : index
    %c0_18 = arith.constant 0 : index
    %c0_19 = arith.constant 0 : index
    %27 = vector.load %arg6[%c0_17, %c0_18, %c0_19] : memref<1x1x128xf32, #tpu.memory_space<vmem>>, vector<1x1x128xf32>
    %28 = vector.shape_cast %27 : vector<1x1x128xf32> to vector<1x128xf32>
    %29 = vector.shape_cast %26 : vector<1x128xf32> to vector<1x1x128xf32>
    tpu.vector_store %arg6[%c0_17, %c0_18, %c0_19], %29 {strides = array<i32>} : memref<1x1x128xf32, #tpu.memory_space<vmem>>, vector<1x1x128xf32>,
    return
  }
  func.func @transform_0(%arg0: i32) -> (i32, i32, i32) {
    %c0_i32 = arith.constant 0 : i32
    %c0_i32_0 = arith.constant 0 : i32
    %c0_i32_1 = arith.constant 0 : i32
    return %arg0, %c0_i32, %c0_i32_0 : i32, i32, i32
  }
  func.func @transform_1(%arg0: i32) -> (i32, i32) {
    %c0_i32 = arith.constant 0 : i32
    %c0_i32_0 = arith.constant 0 : i32
    %c0_i32_1 = arith.constant 0 : i32
    return %c0_i32, %c0_i32_0 : i32, i32
  }
  func.func @transform_2(%arg0: i32) -> (i32, i32) {
    %c0_i32 = arith.constant 0 : i32
    %c0_i32_0 = arith.constant 0 : i32
    %c0_i32_1 = arith.constant 0 : i32
    return %c0_i32, %c0_i32_0 : i32, i32
  }
  func.func @transform_3(%arg0: i32) -> (i32, i32) {
    %c0_i32 = arith.constant 0 : i32
    %c0_i32_0 = arith.constant 0 : i32
    %c0_i32_1 = arith.constant 0 : i32
    return %c0_i32, %c0_i32_0 : i32, i32
  }
  func.func @transform_4(%arg0: i32) -> (i32, i32) {
    %c0_i32 = arith.constant 0 : i32
    %c0_i32_0 = arith.constant 0 : i32
    %c0_i32_1 = arith.constant 0 : i32
    return %c0_i32, %c0_i32_0 : i32, i32
  }
  func.func @transform_5(%arg0: i32) -> (i32, i32, i32) {
    %c0_i32 = arith.constant 0 : i32
    %c0_i32_0 = arith.constant 0 : i32
    %c0_i32_1 = arith.constant 0 : i32
    return %arg0, %c0_i32, %c0_i32_0 : i32, i32, i32
  }
}

module attributes {stable_mosaic.version = 11 : i64} {
  func.func @_scale_proj_res_kernel(%arg0: i32, %arg1: i32, %arg2: memref<1x64x128xf32, #tpu.memory_space<vmem>>, %arg3: memref<1x1x128xf32, #tpu.memory_space<vmem>>, %arg4: memref<1x64x32xf32, #tpu.memory_space<vmem>>, %arg5: memref<128x32xf32, #tpu.memory_space<vmem>>, %arg6: memref<1x32xf32, #tpu.memory_space<vmem>>, %arg7: memref<1x64x32xf32, #tpu.memory_space<vmem>>) attributes {dimension_semantics = [#tpu.dimension_semantics<parallel>, #tpu.dimension_semantics<parallel>], iteration_bounds = array<i64: 2, 1>, scalar_prefetch = 0 : i64, scratch_operands = 0 : i64, tpu.core_type = #tpu.core_type<tc>, window_params = [{transform_indices = @transform_0, window_bounds = array<i64: 1, 64, 128>}, {transform_indices = @transform_1, window_bounds = array<i64: 1, 1, 128>}, {transform_indices = @transform_2, window_bounds = array<i64: 1, 64, 32>}, {pipeline_mode = #tpu.pipeline_mode<synchronous>, transform_indices = @transform_3, window_bounds = array<i64: 128, 32>}, {pipeline_mode = #tpu.pipeline_mode<synchronous>, transform_indices = @transform_4, window_bounds = array<i64: 1, 32>}, {transform_indices = @transform_5, window_bounds = array<i64: 1, 64, 32>}]} {
    %c0 = arith.constant 0 : index
    %c0_0 = arith.constant 0 : index
    %c0_1 = arith.constant 0 : index
    %0 = vector.load %arg2[%c0, %c0_0, %c0_1] : memref<1x64x128xf32, #tpu.memory_space<vmem>>, vector<1x64x128xf32>
    %1 = vector.shape_cast %0 : vector<1x64x128xf32> to vector<64x128xf32>
    %c0_2 = arith.constant 0 : index
    %c0_3 = arith.constant 0 : index
    %c0_4 = arith.constant 0 : index
    %2 = vector.load %arg3[%c0_2, %c0_3, %c0_4] : memref<1x1x128xf32, #tpu.memory_space<vmem>>, vector<1x1x128xf32>
    %3 = vector.shape_cast %2 : vector<1x1x128xf32> to vector<1x128xf32>
    %4 = vector.broadcast %3 : vector<1x128xf32> to vector<64x128xf32>
    %5 = arith.mulf %1, %4 : vector<64x128xf32>
    %c0_5 = arith.constant 0 : index
    %c0_6 = arith.constant 0 : index
    %6 = vector.load %arg5[%c0_5, %c0_6] : memref<128x32xf32, #tpu.memory_space<vmem>>, vector<128x32xf32>
    %cst = arith.constant dense<0.000000e+00> : vector<64x32xf32>
    %7 = tpu.matmul %5, %6, %cst {dimension_numbers = #tpu.dot_dimension_numbers<[1], [0], [0], [1], [0, 0, 1, 1], [], []>} : vector<64x128xf32>, vector<128x32xf32>, vector<64x32xf32> -> vector<64x32xf32>
    %c0_7 = arith.constant 0 : index
    %c0_8 = arith.constant 0 : index
    %8 = vector.load %arg6[%c0_7, %c0_8] : memref<1x32xf32, #tpu.memory_space<vmem>>, vector<1x32xf32>
    %9 = vector.broadcast %8 : vector<1x32xf32> to vector<64x32xf32>
    %10 = arith.addf %7, %9 : vector<64x32xf32>
    %c0_9 = arith.constant 0 : index
    %c0_10 = arith.constant 0 : index
    %c0_11 = arith.constant 0 : index
    %11 = vector.load %arg4[%c0_9, %c0_10, %c0_11] : memref<1x64x32xf32, #tpu.memory_space<vmem>>, vector<1x64x32xf32>
    %12 = vector.shape_cast %11 : vector<1x64x32xf32> to vector<64x32xf32>
    %13 = arith.addf %10, %12 : vector<64x32xf32>
    %c0_12 = arith.constant 0 : index
    %c0_13 = arith.constant 0 : index
    %c0_14 = arith.constant 0 : index
    %14 = vector.load %arg7[%c0_12, %c0_13, %c0_14] : memref<1x64x32xf32, #tpu.memory_space<vmem>>, vector<1x64x32xf32>
    %15 = vector.shape_cast %14 : vector<1x64x32xf32> to vector<64x32xf32>
    %16 = vector.shape_cast %13 : vector<64x32xf32> to vector<1x64x32xf32>
    tpu.vector_store %arg7[%c0_12, %c0_13, %c0_14], %16 {strides = array<i32>} : memref<1x64x32xf32, #tpu.memory_space<vmem>>, vector<1x64x32xf32>,
    return
  }
  func.func @transform_0(%arg0: i32, %arg1: i32) -> (i32, i32, i32) {
    %c0_i32 = arith.constant 0 : i32
    %c0_i32_0 = arith.constant 0 : i32
    return %arg0, %arg1, %c0_i32 : i32, i32, i32
  }
  func.func @transform_1(%arg0: i32, %arg1: i32) -> (i32, i32, i32) {
    %c0_i32 = arith.constant 0 : i32
    %c0_i32_0 = arith.constant 0 : i32
    %c0_i32_1 = arith.constant 0 : i32
    return %arg0, %c0_i32, %c0_i32_0 : i32, i32, i32
  }
  func.func @transform_2(%arg0: i32, %arg1: i32) -> (i32, i32, i32) {
    %c0_i32 = arith.constant 0 : i32
    %c0_i32_0 = arith.constant 0 : i32
    return %arg0, %arg1, %c0_i32 : i32, i32, i32
  }
  func.func @transform_3(%arg0: i32, %arg1: i32) -> (i32, i32) {
    %c0_i32 = arith.constant 0 : i32
    %c0_i32_0 = arith.constant 0 : i32
    %c0_i32_1 = arith.constant 0 : i32
    return %c0_i32, %c0_i32_0 : i32, i32
  }
  func.func @transform_4(%arg0: i32, %arg1: i32) -> (i32, i32) {
    %c0_i32 = arith.constant 0 : i32
    %c0_i32_0 = arith.constant 0 : i32
    %c0_i32_1 = arith.constant 0 : i32
    return %c0_i32, %c0_i32_0 : i32, i32
  }
  func.func @transform_5(%arg0: i32, %arg1: i32) -> (i32, i32, i32) {
    %c0_i32 = arith.constant 0 : i32
    %c0_i32_0 = arith.constant 0 : i32
    return %arg0, %arg1, %c0_i32 : i32, i32, i32
  }
}

module attributes {stable_mosaic.version = 11 : i64} {
  func.func @_head_gap_kernel(%arg0: i32, %arg1: i32, %arg2: memref<1x64x32xf32, #tpu.memory_space<vmem>>, %arg3: memref<32x1408xf32, #tpu.memory_space<vmem>>, %arg4: memref<1x1408xf32, #tpu.memory_space<vmem>>, %arg5: memref<1x1x1408xf32, #tpu.memory_space<vmem>>, %arg6: memref<1x1408xf32, #tpu.memory_space<vmem>>) attributes {dimension_semantics = [#tpu.dimension_semantics<parallel>, #tpu.dimension_semantics<arbitrary>], iteration_bounds = array<i64: 2, 1>, scalar_prefetch = 0 : i64, scratch_operands = 1 : i64, tpu.core_type = #tpu.core_type<tc>, window_params = [{transform_indices = @transform_0, window_bounds = array<i64: 1, 64, 32>}, {pipeline_mode = #tpu.pipeline_mode<synchronous>, transform_indices = @transform_1, window_bounds = array<i64: 32, 1408>}, {pipeline_mode = #tpu.pipeline_mode<synchronous>, transform_indices = @transform_2, window_bounds = array<i64: 1, 1408>}, {transform_indices = @transform_3, window_bounds = array<i64: 1, 1, 1408>}]} {
    %c0_i32 = arith.constant 0 : i32
    %0 = arith.cmpi eq, %arg1, %c0_i32 : i32
    %1 = arith.extui %0 : i1 to i32
    %c0_i32_0 = arith.constant 0 : i32
    %2 = arith.cmpi ne, %1, %c0_i32_0 : i32
    scf.if %2 {
      %cst_16 = arith.constant 0.000000e+00 : f32
      %25 = vector.broadcast %cst_16 : f32 to vector<1x1408xf32>
      %c0_17 = arith.constant 0 : index
      %c0_18 = arith.constant 0 : index
      %26 = vector.load %arg6[%c0_17, %c0_18] : memref<1x1408xf32, #tpu.memory_space<vmem>>, vector<1x1408xf32>
      tpu.vector_store %arg6[%c0_17, %c0_18], %25 {strides = array<i32>} : memref<1x1408xf32, #tpu.memory_space<vmem>>, vector<1x1408xf32>,
    } else {
    }
    %c0 = arith.constant 0 : index
    %c0_1 = arith.constant 0 : index
    %c0_2 = arith.constant 0 : index
    %3 = vector.load %arg2[%c0, %c0_1, %c0_2] : memref<1x64x32xf32, #tpu.memory_space<vmem>>, vector<1x64x32xf32>
    %4 = vector.shape_cast %3 : vector<1x64x32xf32> to vector<64x32xf32>
    %c0_3 = arith.constant 0 : index
    %c0_4 = arith.constant 0 : index
    %5 = vector.load %arg3[%c0_3, %c0_4] : memref<32x1408xf32, #tpu.memory_space<vmem>>, vector<32x1408xf32>
    %cst = arith.constant dense<0.000000e+00> : vector<64x1408xf32>
    %6 = tpu.matmul %4, %5, %cst {dimension_numbers = #tpu.dot_dimension_numbers<[1], [0], [0], [1], [0, 0, 1, 1], [], []>} : vector<64x32xf32>, vector<32x1408xf32>, vector<64x1408xf32> -> vector<64x1408xf32>
    %c0_5 = arith.constant 0 : index
    %c0_6 = arith.constant 0 : index
    %7 = vector.load %arg4[%c0_5, %c0_6] : memref<1x1408xf32, #tpu.memory_space<vmem>>, vector<1x1408xf32>
    %8 = vector.broadcast %7 : vector<1x1408xf32> to vector<64x1408xf32>
    %9 = arith.addf %6, %8 : vector<64x1408xf32>
    %cst_7 = arith.constant 0.000000e+00 : f32
    %10 = vector.broadcast %cst_7 : f32 to vector<64x1408xf32>
    %11 = arith.subf %10, %9 : vector<64x1408xf32>
    %12 = math.exp %11 : vector<64x1408xf32>
    %cst_8 = arith.constant 1.000000e+00 : f32
    %13 = vector.broadcast %cst_8 : f32 to vector<64x1408xf32>
    %14 = arith.addf %13, %12 : vector<64x1408xf32>
    %15 = tpu.reciprocal %14 {approx = true} : vector<64x1408xf32> -> vector<64x1408xf32>
    %16 = arith.mulf %9, %15 : vector<64x1408xf32>
    %c0_9 = arith.constant 0 : index
    %c0_10 = arith.constant 0 : index
    %17 = vector.load %arg6[%c0_9, %c0_10] : memref<1x1408xf32, #tpu.memory_space<vmem>>, vector<1x1408xf32>
    %cst_11 = arith.constant dense<0.000000e+00> : vector<1408xf32>
    %18 = vector.multi_reduction <add>, %16, %cst_11 [0] : vector<64x1408xf32> to vector<1408xf32>
    %19 = vector.shape_cast %18 : vector<1408xf32> to vector<1x1408xf32>
    %20 = arith.addf %17, %19 : vector<1x1408xf32>
    %c0_12 = arith.constant 0 : index
    %c0_13 = arith.constant 0 : index
    %21 = vector.load %arg6[%c0_12, %c0_13] : memref<1x1408xf32, #tpu.memory_space<vmem>>, vector<1x1408xf32>
    tpu.vector_store %arg6[%c0_12, %c0_13], %20 {strides = array<i32>} : memref<1x1408xf32, #tpu.memory_space<vmem>>, vector<1x1408xf32>,
    %c0_i32_14 = arith.constant 0 : i32
    %22 = arith.cmpi eq, %arg1, %c0_i32_14 : i32
    %23 = arith.extui %22 : i1 to i32
    %c0_i32_15 = arith.constant 0 : i32
    %24 = arith.cmpi ne, %23, %c0_i32_15 : i32
    scf.if %24 {
      %c0_16 = arith.constant 0 : index
      %c0_17 = arith.constant 0 : index
      %25 = vector.load %arg6[%c0_16, %c0_17] : memref<1x1408xf32, #tpu.memory_space<vmem>>, vector<1x1408xf32>
      %cst_18 = arith.constant 1.562500e-02 : f32
      %26 = vector.broadcast %cst_18 : f32 to vector<1x1408xf32>
      %27 = arith.mulf %25, %26 : vector<1x1408xf32>
      %c0_19 = arith.constant 0 : index
      %c0_20 = arith.constant 0 : index
      %c0_21 = arith.constant 0 : index
      %28 = vector.load %arg5[%c0_19, %c0_20, %c0_21] : memref<1x1x1408xf32, #tpu.memory_space<vmem>>, vector<1x1x1408xf32>
      %29 = vector.shape_cast %28 : vector<1x1x1408xf32> to vector<1x1408xf32>
      %30 = vector.shape_cast %27 : vector<1x1408xf32> to vector<1x1x1408xf32>
      tpu.vector_store %arg5[%c0_19, %c0_20, %c0_21], %30 {strides = array<i32>} : memref<1x1x1408xf32, #tpu.memory_space<vmem>>, vector<1x1x1408xf32>,
    } else {
    }
    return
  }
  func.func @transform_0(%arg0: i32, %arg1: i32) -> (i32, i32, i32) {
    %c0_i32 = arith.constant 0 : i32
    %c0_i32_0 = arith.constant 0 : i32
    return %arg0, %arg1, %c0_i32 : i32, i32, i32
  }
  func.func @transform_1(%arg0: i32, %arg1: i32) -> (i32, i32) {
    %c0_i32 = arith.constant 0 : i32
    %c0_i32_0 = arith.constant 0 : i32
    %c0_i32_1 = arith.constant 0 : i32
    return %c0_i32, %c0_i32_0 : i32, i32
  }
  func.func @transform_2(%arg0: i32, %arg1: i32) -> (i32, i32) {
    %c0_i32 = arith.constant 0 : i32
    %c0_i32_0 = arith.constant 0 : i32
    %c0_i32_1 = arith.constant 0 : i32
    return %c0_i32, %c0_i32_0 : i32, i32
  }
  func.func @transform_3(%arg0: i32, %arg1: i32) -> (i32, i32, i32) {
    %c0_i32 = arith.constant 0 : i32
    %c0_i32_0 = arith.constant 0 : i32
    %c0_i32_1 = arith.constant 0 : i32
    return %arg0, %c0_i32, %c0_i32_0 : i32, i32, i32
  }
}

module attributes {stable_mosaic.version = 11 : i64} {
  func.func @_classifier_kernel(%arg0: memref<2x1408xf32, #tpu.memory_space<vmem>>, %arg1: memref<1408x4xf32, #tpu.memory_space<vmem>>, %arg2: memref<1x4xf32, #tpu.memory_space<vmem>>, %arg3: memref<2x4xf32, #tpu.memory_space<vmem>>) attributes {dimension_semantics = [], scalar_prefetch = 0 : i64, scratch_operands = 0 : i64, tpu.core_type = #tpu.core_type<tc>} {
    %c0 = arith.constant 0 : index
    %c0_0 = arith.constant 0 : index
    %0 = vector.load %arg0[%c0, %c0_0] : memref<2x1408xf32, #tpu.memory_space<vmem>>, vector<2x1408xf32>
    %c0_1 = arith.constant 0 : index
    %c0_2 = arith.constant 0 : index
    %1 = vector.load %arg1[%c0_1, %c0_2] : memref<1408x4xf32, #tpu.memory_space<vmem>>, vector<1408x4xf32>
    %cst = arith.constant dense<0.000000e+00> : vector<2x4xf32>
    %2 = tpu.matmul %0, %1, %cst {dimension_numbers = #tpu.dot_dimension_numbers<[1], [0], [0], [1], [0, 0, 1, 1], [], []>} : vector<2x1408xf32>, vector<1408x4xf32>, vector<2x4xf32> -> vector<2x4xf32>
    %c0_3 = arith.constant 0 : index
    %c0_4 = arith.constant 0 : index
    %3 = vector.load %arg2[%c0_3, %c0_4] : memref<1x4xf32, #tpu.memory_space<vmem>>, vector<1x4xf32>
    %4 = vector.broadcast %3 : vector<1x4xf32> to vector<2x4xf32>
    %5 = arith.addf %2, %4 : vector<2x4xf32>
    %cst_5 = arith.constant dense<0xFF800000> : vector<2xf32>
    %6 = vector.multi_reduction <maximumf>, %5, %cst_5 [1] : vector<2x4xf32> to vector<2xf32>
    %7 = vector.shape_cast %6 : vector<2xf32> to vector<2x1xf32>
    %8 = vector.broadcast %7 : vector<2x1xf32> to vector<2x4xf32>
    %9 = arith.subf %5, %8 : vector<2x4xf32>
    %10 = math.exp %9 : vector<2x4xf32>
    %cst_6 = arith.constant dense<0.000000e+00> : vector<2xf32>
    %11 = vector.multi_reduction <add>, %10, %cst_6 [1] : vector<2x4xf32> to vector<2xf32>
    %12 = vector.shape_cast %11 : vector<2xf32> to vector<2x1xf32>
    %13 = vector.broadcast %12 : vector<2x1xf32> to vector<2x4xf32>
    %14 = arith.divf %10, %13 : vector<2x4xf32>
    %c0_7 = arith.constant 0 : index
    %c0_8 = arith.constant 0 : index
    %15 = vector.load %arg3[%c0_7, %c0_8] : memref<2x4xf32, #tpu.memory_space<vmem>>, vector<2x4xf32>
    tpu.vector_store %arg3[%c0_7, %c0_8], %14 {strides = array<i32>} : memref<2x4xf32, #tpu.memory_space<vmem>>, vector<2x4xf32>,
    return
  }
}

</mosaic_0001>

<bundles_post_ra>
// kernel: efficientnet_binary_forward.8
= control target key start
LH: loop header
LB: loop body
LE: loop exit
PB: predicated region body
PF: predicated region fallthrough
CT: control target
= control target key end

     0   :  { %s619_s18 = smov 0   ;;  %s705_s0 = inlined_call_operand.vmem [shape: f32[2,64,128], index: 0, kind: input, shape index: {}]   ;;  %s706_s1 = inlined_call_operand.vmem [shape: f32[128,8], index: 1, kind: input, shape index: {}]   ;;  %s707_s2 = inlined_call_operand.vmem [shape: f32[1,8], index: 2, kind: input, shape index: {}]   ;;  %s708_s3 = inlined_call_operand.vmem [shape: f32[8,128], index: 3, kind: input, shape index: {}]   ;;  %s709_s4 = inlined_call_operand.vmem [shape: f32[1,128], index: 4, kind: input, shape index: {}]   ;;  %s710_s5 = inlined_call_operand.vmem [shape: f32[2,1,128], index: 5, kind: output, shape index: {}]  }
   0x1 LB: > { %s465_s19 = sadd.s32 4294967295, %s584_s18   ;;  %p469_p0 = scmp.ge.s32.totalorder %s584_s18, 1  ;;  %s584_s18 = sphi %s619_s18, %s15_s18  }
   0x2   : > { %p187_p1 = scmp.lt.s32.totalorder %s584_s18, 3 }
   0x4   : > { %p188_p2 = pnand %p469_p0, %p187_p1 }
   0x5   : > { %v243_v0 = vld [vmem:[%s706_s1] sm:$0xff] (!%p188_p2)  ;;  %v244_v1 = vld [vmem:[%s706_s1 + $0x8] sm:$0xff] (!%p188_p2)  ;;  %v245_v2 = vld [vmem:[%s706_s1 + $0x10] sm:$0xff] (!%p188_p2)  ;;  %v586_v3 = vmov (!%p188_p2), 0.0|0.0   ;;  %vm587_vm0 = vmmov (!%p188_p2), 0   ;;  %v588_v6 = vmov (!%p188_p2), 0.0  }
   0x6   : > { %191 = sbr.rel (%p188_p2) target bundleno = 532 (0x214), region = 40  ;;  %535 = vmatprep.subr.bf16.mxu0 (!%p188_p2), %v586_v3  ;;  %v536_v4 = vpack.c.bf16 (!%p188_p2), %v244_v1, %v243_v0  ;;  %v246_v5 = vld [vmem:[%s706_s1 + $0x18] sm:$0xff] (!%p188_p2)  ;;  %527 = vmatprep.mubr.msk.f32.mxu0 (!%p188_p2), %vm587_vm0, %v588_v6  ;;  %p213_p3 = scmp.lt.s32.totalorder (!%p188_p2), %s465_s19, 1  ;;  %v247_v8 = vld [vmem:[%s706_s1 + $0x20] sm:$0xff] (!%p188_p2)  ;;  %v248_v9 = vld [vmem:[%s706_s1 + $0x28] sm:$0xff] (!%p188_p2)  ;;  %vm338_vm1 = vcmask (!%p188_p2), 64512  }
   0x7   : > { %530 = vmatprep.subr.mxu1 (!%p188_p2), %v588_v6  ;;  %532 = vmatprep.mubr.msk.f32.mxu1 (!%p188_p2), %vm587_vm0, %v588_v6  ;;  %v539_v7 = vpack.c.bf16 (!%p188_p2), %v246_v5, %v245_v2  ;;  %v542_v10 = vpack.c.bf16 (!%p188_p2), %v248_v9, %v247_v8  ;;  %v249_v14 = vld [vmem:[%s706_s1 + $0x30] sm:$0xff] (!%p188_p2)  ;;  %v250_v15 = vld [vmem:[%s706_s1 + $0x38] sm:$0xff] (!%p188_p2)  ;;  %v251_v21 = vld [vmem:[%s706_s1 + $0x40] sm:$0xff] (!%p188_p2) }
   0x8   : > { %537 = vmatpush3.bf16.msra.mxu0 (!%p188_p2), %v536_v4  ;;  %v545_v19 = vpack.c.bf16 (!%p188_p2), %v250_v15, %v249_v14  ;;  %v252_v22 = vld [vmem:[%s706_s1 + $0x48] sm:$0xff] (!%p188_p2)  ;;  %v253_v28 = vld [vmem:[%s706_s1 + $0x50] sm:$0xff] (!%p188_p2)  ;;  %v254_v29 = vld [vmem:[%s706_s1 + $0x58] sm:$0xff] (!%p188_p2) }
   0x9   : > { %538 = vmatprep.subr.bf16.mxu0 (!%p188_p2), %v586_v3  ;;  %v548_v26 = vpack.c.bf16 (!%p188_p2), %v252_v22, %v251_v21  ;;  %v551_v33 = vpack.c.bf16 (!%p188_p2), %v254_v29, %v253_v28  ;;  %v255_v34 = vld [vmem:[%s706_s1 + $0x60] sm:$0xff] (!%p188_p2)  ;;  %v256_v35 = vld [vmem:[%s706_s1 + $0x68] sm:$0xff] (!%p188_p2)  ;;  %v257_v39 = vld [vmem:[%s706_s1 + $0x70] sm:$0xff] (!%p188_p2) }
   0xa   : > { %v554_v38 = vpack.c.bf16 (!%p188_p2), %v256_v35, %v255_v34  ;;  %v258_v40 = vld [vmem:[%s706_s1 + $0x78] sm:$0xff] (!%p188_p2)  ;;  %v336_v48 = vld [vmem:[%s708_s3] sm:$0xff] (!%p188_p2) }
   0xb   : > { %v557_v43 = vpack.c.bf16 (!%p188_p2), %v258_v40, %v257_v39  ;;  %531 = vmatpush3.msra.mxu1 (!%p188_p2), %v336_v48  ;;  %v259_v49 = vld [vmem:[%s707_s2] sm:$0x1] (!%p188_p2) }
   0xc   : > { %540 = vmatpush3.bf16.msra.mxu0 (!%p188_p2), %v539_v7  ;;  %v337_v59 = vld [vmem:[%s709_s4] sm:$0x1] (!%p188_p2) }
   0xd   : > { %s712_s19 = smov (!%p213_p3, %s465_s19), 1  ;;  %541 = vmatprep.subr.bf16.mxu0 %v586_v3 }
   0xe   : > { %s475_s7 = sshll.u32 %s712_s19, 6  ;;  %s220_s16 = scalar_lea.vmem %s710_s5, %s712_s19 }
   0xf   : > { %s217_s10 = scalar_lea.vmem %s705_s0, %s475_s7 }
  0x10   : > { %v221_v11 = vld [vmem:[%s217_s10] sm:$0xff]  ;;  %v222_v12 = vld [vmem:[%s217_s10 + $0x8] sm:$0xff]  ;;  %v223_v13 = vld [vmem:[%s217_s10 + $0x10] sm:$0xff]  ;;  %543 = vmatpush3.bf16.msra.mxu0 %v542_v10 }
  0x11   : > { %v229_v16 = vadd.f32 %v222_v12, %v221_v11  ;;  %v224_v17 = vld [vmem:[%s217_s10 + $0x18] sm:$0xff]  ;;  %v225_v20 = vld [vmem:[%s217_s10 + $0x20] sm:$0xff]  ;;  %544 = vmatprep.subr.bf16.mxu0 %v586_v3  ;;  %v226_v24 = vld [vmem:[%s217_s10 + $0x28] sm:$0xff] }
  0x12   : > { %v227_v27 = vld [vmem:[%s217_s10 + $0x30] sm:$0xff]  ;;  %v228_v31 = vld [vmem:[%s217_s10 + $0x38] sm:$0xff] }
  0x13   : > { %v230_v18 = vadd.f32 %v229_v16, %v223_v13 }
  0x14   : > { %546 = vmatpush3.bf16.msra.mxu0 %v545_v19 }
  0x15   : > { %v231_v23 = vadd.f32 %v230_v18, %v224_v17  ;;  %547 = vmatprep.subr.bf16.mxu0 %v586_v3 }
  0x17   : > { %v232_v25 = vadd.f32 %v231_v23, %v225_v20 }
  0x18   : > { %549 = vmatpush3.bf16.msra.mxu0 %v548_v26 }
  0x19   : > { %v233_v30 = vadd.f32 %v232_v25, %v226_v24  ;;  %550 = vmatprep.subr.bf16.mxu0 %v586_v3 }
  0x1b   : > { %v234_v32 = vadd.f32 %v233_v30, %v227_v27 }
  0x1c   : > { %552 = vmatpush3.bf16.msra.mxu0 %v551_v33 }
  0x1d   : > { %v235_v36 = vadd.f32 %v234_v32, %v228_v31  ;;  %553 = vmatprep.subr.bf16.mxu0 %v586_v3 }
  0x1f   : > { %v236_v37 = vrot.slane %v235_v36, 4 }
  0x20   : > { %555 = vmatpush3.bf16.msra.mxu0 %v554_v38 }
  0x21   : > { %v237_v41 = vadd.f32 %v236_v37, %v235_v36  ;;  %556 = vmatprep.subr.bf16.mxu0 %v586_v3 }
  0x23   : > { %v238_v42 = vrot.slane %v237_v41, 2 }
  0x24   : > { %558 = vmatpush3.bf16.msra.mxu0 %v557_v43 }
  0x25   : > { %v239_v44 = vadd.f32 %v238_v42, %v237_v41 }
  0x27   : > { %v240_v45 = vrot.slane %v239_v44, 1 }
  0x29   : > { %v241_v46 = vadd.f32 %v240_v45, %v239_v44 }
  0x2b   : > { %v242_v47 = vmul.f32 0.015625, %v241_v46 }
  0x2d   : > { %528 = vmatmul.mubr.f32.vlgmr.msra.gmra.mrb[0].mxu0 %v242_v47 }
 0x100   : > { %v326_v50 = vpop.f32.mrb[0].mxu0 }
 0x101   : > { %v327_v51 = vadd.f32 %v326_v50, %v259_v49  ;;  %v529_v52 = vpop.f32.mrb[1].mxu0 }
 0x103   : > { %v330_v53 = vsub.f32 0.0, %v327_v51 }
 0x105   : > { %v331_v54 = vmul.f32 1.442695, %v330_v53 }
 0x107   : > { %570 = vpow2.f32 %v331_v54 }
 0x111   : > { %v571_v55 = vpop.eup %570 }
 0x112   : > { %v333_v56 = vadd.f32 1.0, %v571_v55 }
 0x114   : > { %572 = vrcp.f32 %v333_v56 }
 0x11e   : > { %v573_v57 = vpop.eup %572 }
 0x11f   : > { %v335_v58 = vmul.f32 %v573_v57, %v327_v51 }
 0x121   : > { %533 = vmatmul.mubr.msk.f32.vlgmr.msra.gmra.mrb[0].mxu1 %vm338_vm1, %v335_v58 }
 0x1f4   : > { %v408_v60 = vpop.f32.mrb[0].mxu1 }
 0x1f5   : > { %v409_v61 = vadd.f32 %v408_v60, %v337_v59  ;;  %v534_v62 = vpop.f32.mrb[1].mxu1 }
 0x1f7   : > { %v412_v63 = vsub.f32 0.0, %v409_v61 }
 0x1f9   : > { %v413_v0 = vmul.f32 1.442695, %v412_v63 }
 0x1fb   : > { %574 = vpow2.f32 %v413_v0 }
 0x205   : > { %v575_v1 = vpop.eup %574 }
 0x206   : > { %v415_v2 = vadd.f32 1.0, %v575_v1 }
 0x208   : > { %576 = vrcp.f32 %v415_v2 }
 0x212   : > { %v577_v3 = vpop.eup %576 }
 0x213   : > { %417 = vst [vmem:[%s220_s16] sm:$0x1] %v577_v3 }
 0x214 PF: > { %s15_s18 = sadd.s32 1, %s584_s18  }
 0x215   : > { %p12_p4 = scmp.ge.s32.totalorder %s15_s18, 4  }
 0x217   :  { %14 = sbr.rel (!%p12_p4) target bundleno = 1 (0x1), region = 70 }

// kernel: efficientnet_binary_forward.9
= control target key start
LH: loop header
LB: loop body
LE: loop exit
PB: predicated region body
PF: predicated region fallthrough
CT: control target
= control target key end

     0   :  { %s816_s18 = smov 0   ;;  %s818_s19 = smov 0   ;;  %s949_s0 = inlined_call_operand.vmem [shape: f32[2,64,128], index: 0, kind: input, shape index: {}]   ;;  %s950_s1 = inlined_call_operand.vmem [shape: f32[2,1,128], index: 1, kind: input, shape index: {}]   ;;  %s951_s2 = inlined_call_operand.vmem [shape: f32[2,64,32], index: 2, kind: input, shape index: {}]   ;;  %s952_s3 = inlined_call_operand.vmem [shape: f32[128,32], index: 3, kind: input, shape index: {}]   ;;  %s953_s4 = inlined_call_operand.vmem [shape: f32[1,32], index: 4, kind: input, shape index: {}]   ;;  %s954_s5 = inlined_call_operand.vmem [shape: f32[2,64,32], index: 5, kind: output, shape index: {}]  }
   0x1   :  { %s820_s20 = smov 0  }
   0x2 LB: > { %s27_s21 = sadd.s32 1, %s780_s19  ;;  %p608_p0 = scmp.ge.s32.totalorder %s784_s20, 1  ;;  %s784_s20 = sphi %s820_s20, %s15_s20   ;;  %s780_s19 = sphi %s818_s19, %s956_s19   ;;  %s776_s18 = sphi %s816_s18, %s955_s18  }
   0x3   : > { %p29_p1 = scmp.ge.s32.totalorder %s27_s21, 2  ;;  %p233_p2 = scmp.lt.s32.totalorder %s784_s20, 3 }
   0x5   : > { %s958_s21 = smov (%p29_p1, %s27_s21), 0  ;;  %p234_p3 = pnand %p608_p0, %p233_p2 }
   0x6   : > { %v337_v0 = vld [vmem:[%s952_s3] sm:$0xff] (!%p234_p3)  ;;  %v338_v1 = vld [vmem:[%s952_s3 + $0x8] sm:$0xff] (!%p234_p3)  ;;  %v339_v2 = vld [vmem:[%s952_s3 + $0x10] sm:$0xff] (!%p234_p3)  ;;  %p282_p4 = scmp.lt.s32.totalorder (!%p234_p3), %s776_s18, 1  ;;  %vm481_vm0 = vcmask (!%p234_p3), 261120  }
   0x7   : > { %237 = sbr.rel (%p234_p3) target bundleno = 263 (0x107), region = 40  ;;  %v690_v3 = vpack.c.bf16 (!%p234_p3), %v338_v1, %v337_v0  ;;  %v340_v4 = vld [vmem:[%s952_s3 + $0x18] sm:$0xff] (!%p234_p3)  ;;  %v341_v6 = vld [vmem:[%s952_s3 + $0x20] sm:$0xff] (!%p234_p3)  ;;  %v342_v7 = vld [vmem:[%s952_s3 + $0x28] sm:$0xff] (!%p234_p3) }
   0x8   : > { %v694_v5 = vpack.c.bf16 (!%p234_p3), %v340_v4, %v339_v2  ;;  %v698_v8 = vpack.c.bf16 (!%p234_p3), %v342_v7, %v341_v6  ;;  %v343_v9 = vld [vmem:[%s952_s3 + $0x30] sm:$0xff] (!%p234_p3)  ;;  %v344_v11 = vld [vmem:[%s952_s3 + $0x38] sm:$0xff] (!%p234_p3)  ;;  %v345_v17 = vld [vmem:[%s952_s3 + $0x40] sm:$0xff] (!%p234_p3) }
   0x9   : > { %691 = vmatprep.subr.bf16.mxu0 (!%p234_p3), %v690_v3  ;;  %722 = vmatprep.subr.bf16.mxu1 (!%p234_p3), %v690_v3  ;;  %v702_v16 = vpack.c.bf16 (!%p234_p3), %v344_v11, %v343_v9  ;;  %v346_v18 = vld [vmem:[%s952_s3 + $0x48] sm:$0xff] (!%p234_p3)  ;;  %v347_v20 = vld [vmem:[%s952_s3 + $0x50] sm:$0xff] (!%p234_p3)  ;;  %v348_v21 = vld [vmem:[%s952_s3 + $0x58] sm:$0xff] (!%p234_p3) }
   0xa   : > { %693 = vmatpush3.bf16.msra.mxu0 (!%p234_p3), %v690_v3  ;;  %730 = vmatpush3.bf16.msra.mxu1 (!%p234_p3), %v690_v3  ;;  %v706_v19 = vpack.c.bf16 (!%p234_p3), %v346_v18, %v345_v17  ;;  %v710_v22 = vpack.c.bf16 (!%p234_p3), %v348_v21, %v347_v20  ;;  %v349_v23 = vld [vmem:[%s952_s3 + $0x60] sm:$0xff] (!%p234_p3)  ;;  %v350_v24 = vld [vmem:[%s952_s3 + $0x68] sm:$0xff] (!%p234_p3)  ;;  %v351_v26 = vld [vmem:[%s952_s3 + $0x70] sm:$0xff] (!%p234_p3) }
   0xb   : > { %695 = vmatprep.subr.bf16.mxu0 (!%p234_p3), %v694_v5  ;;  %723 = vmatprep.subr.bf16.mxu1 (!%p234_p3), %v694_v5  ;;  %v714_v25 = vpack.c.bf16 (!%p234_p3), %v350_v24, %v349_v23  ;;  %v352_v27 = vld [vmem:[%s952_s3 + $0x78] sm:$0xff] (!%p234_p3)  ;;  %v616_v41 = vld [vmem:[%s953_s4] ss:$0 sm:$0xff] (!%p234_p3) }
   0xc   : > { %v718_v28 = vpack.c.bf16 (!%p234_p3), %v352_v27, %v351_v26 }
   0xe   : > { %s960_s18 = smov (!%p282_p4, %s776_s18), 1  ;;  %697 = vmatpush3.bf16.msra.mxu0 %v694_v5  ;;  %731 = vmatpush3.bf16.msra.mxu1 %v694_v5 }
   0xf   : > { %s852_s9 = sshll.u32 %s960_s18, 6  ;;  %s293_s12 = scalar_lea.vmem %s950_s1, %s960_s18  ;;  %699 = vmatprep.subr.bf16.mxu0 %v698_v8  ;;  %724 = vmatprep.subr.bf16.mxu1 %v698_v8 }
  0x10   : > { %s864_s17 = scalar_lea.vmem %s949_s0, %s852_s9  ;;  %v615_v10 = vld [vmem:[%s293_s12] ss:$0 sm:$0xff]  ;;  %s905_s22 = scalar_lea.vmem %s951_s2, %s852_s9 }
  0x11   : > { %v314_v12 = vld [vmem:[%s864_s17] sm:$0xff]  ;;  %v315_v29 = vld [vmem:[%s864_s17 + $0x8] sm:$0xff]  ;;  %v316_v31 = vld [vmem:[%s864_s17 + $0x10] sm:$0xff]  ;;  %s918_s25 = scalar_lea.vmem %s954_s5, %s852_s9 }
  0x12   : > { %v318_v13 = vld [vmem:[%s864_s17 + $0x20] sm:$0xff]  ;;  %v329_v14 = vmul.f32 %v615_v10, %v314_v12  ;;  %701 = vmatpush3.bf16.msra.mxu0 %v698_v8  ;;  %732 = vmatpush3.bf16.msra.mxu1 %v698_v8  ;;  %v319_v30 = vld [vmem:[%s864_s17 + $0x28] sm:$0xff]  ;;  %v320_v32 = vld [vmem:[%s864_s17 + $0x30] sm:$0xff]  ;;  %v330_v33 = vmul.f32 %v615_v10, %v315_v29  ;;  %v331_v35 = vmul.f32 %v615_v10, %v316_v31 }
  0x13   : > { %v333_v15 = vmul.f32 %v615_v10, %v318_v13  ;;  %703 = vmatprep.subr.bf16.mxu0 %v702_v16  ;;  %725 = vmatprep.subr.bf16.mxu1 %v702_v16  ;;  %v334_v34 = vmul.f32 %v615_v10, %v319_v30  ;;  %v335_v36 = vmul.f32 %v615_v10, %v320_v32  ;;  %v317_v37 = vld [vmem:[%s864_s17 + $0x18] sm:$0xff]  ;;  %v466_v43 = vld [vmem:[%s905_s22 + $0x8] sm:$0xff]  ;;  %v465_v49 = vld [vmem:[%s905_s22] sm:$0xff] }
  0x14   : > { %678 = vmatprep.mubr.f32.mxu0 %v329_v14  ;;  %v321_v38 = vld [vmem:[%s864_s17 + $0x38] sm:$0xff]  ;;  %v332_v39 = vmul.f32 %v615_v10, %v317_v37  ;;  %v470_v45 = vld [vmem:[%s905_s22 + $0x28] sm:$0xff]  ;;  %v469_v51 = vld [vmem:[%s905_s22 + $0x20] sm:$0xff] }
  0x15   : > { %684 = vmatprep.mubr.f32.mxu1 %v333_v15  ;;  %v336_v40 = vmul.f32 %v615_v10, %v321_v38  ;;  %v468_v59 = vld [vmem:[%s905_s22 + $0x18] sm:$0xff]  ;;  %v467_v1 = vld [vmem:[%s905_s22 + $0x10] sm:$0xff] }
  0x16   : > { %705 = vmatpush3.bf16.msra.mxu0 %v702_v16  ;;  %733 = vmatpush3.bf16.msra.mxu1 %v702_v16  ;;  %v472_v61 = vld [vmem:[%s905_s22 + $0x38] sm:$0xff]  ;;  %v471_v3 = vld [vmem:[%s905_s22 + $0x30] sm:$0xff] }
  0x17   : > { %707 = vmatprep.subr.bf16.mxu0 %v706_v19  ;;  %726 = vmatprep.subr.bf16.mxu1 %v706_v19 }
  0x1a   : > { %709 = vmatpush3.bf16.msra.mxu0 %v706_v19  ;;  %734 = vmatpush3.bf16.msra.mxu1 %v706_v19 }
  0x1b   : > { %711 = vmatprep.subr.bf16.mxu0 %v710_v22  ;;  %727 = vmatprep.subr.bf16.mxu1 %v710_v22 }
  0x1e   : > { %713 = vmatpush3.bf16.msra.mxu0 %v710_v22  ;;  %735 = vmatpush3.bf16.msra.mxu1 %v710_v22 }
  0x1f   : > { %715 = vmatprep.subr.bf16.mxu0 %v714_v25  ;;  %728 = vmatprep.subr.bf16.mxu1 %v714_v25 }
  0x22   : > { %717 = vmatpush3.bf16.msra.mxu0 %v714_v25  ;;  %736 = vmatpush3.bf16.msra.mxu1 %v714_v25 }
  0x23   : > { %719 = vmatprep.subr.bf16.mxu0 %v718_v28  ;;  %729 = vmatprep.subr.bf16.mxu1 %v718_v28 }
  0x26   : > { %721 = vmatpush3.bf16.msra.mxu0 %v718_v28  ;;  %737 = vmatpush3.bf16.msra.mxu1 %v718_v28 }
  0x29   : > { %679 = vmatmul.mubr.f32.vlgmr.msra.gmra.mrb[0].mxu0 %v330_v33  ;;  %685 = vmatmul.mubr.f32.vlgmr.msra.gmra.mrb[0].mxu1 %v334_v34 }
  0x2a   : > { %681 = vmatprep.mubr.f32.mxu0 %v331_v35  ;;  %687 = vmatprep.mubr.f32.mxu1 %v335_v36 }
  0x2d   : > { %682 = vmatmul.mubr.f32.gmra.mrb[2].mxu0 %v332_v39  ;;  %688 = vmatmul.mubr.f32.gmra.mrb[2].mxu1 %v336_v40 }
  0xfc   : > { %v680_v42 = vpop.f32.mrb[0].mxu0  ;;  %v686_v44 = vpop.f32.mrb[0].mxu1 }
  0xfd   : > { %v432_v46 = vadd.f32 %v680_v42, %v616_v41  ;;  %v452_v47 = vadd.f32 %v686_v44, %v616_v41  ;;  %v426_v48 = vpop.f32.mrb[1].mxu0  ;;  %v446_v50 = vpop.f32.mrb[1].mxu1 }
  0xfe   : > { %v427_v52 = vadd.f32 %v616_v41, %v426_v48  ;;  %v447_v53 = vadd.f32 %v616_v41, %v446_v50 }
  0xff   : > { %v474_v54 = vadd.f32 %v466_v43, %v432_v46  ;;  %v478_v55 = vadd.f32 %v470_v45, %v452_v47 }
 0x100   : > { %v473_v56 = vadd.f32 %v465_v49, %v427_v52  ;;  %v477_v57 = vadd.f32 %v469_v51, %v447_v53  ;;  %v683_v58 = vpop.f32.mrb[2].mxu0  ;;  %v689_v60 = vpop.f32.mrb[2].mxu1 }
 0x101   : > { %483 = vst.msk [vmem:[%s918_s25 + $0x8] sm:$0xff] %vm481_vm0, %v474_v54  ;;  %487 = vst.msk [vmem:[%s918_s25 + $0x28] sm:$0xff] %vm481_vm0, %v478_v55  ;;  %v442_v62 = vadd.f32 %v683_v58, %v616_v41  ;;  %v462_v63 = vadd.f32 %v689_v60, %v616_v41  ;;  %v436_v0 = vpop.f32.mrb[3].mxu0  ;;  %v456_v2 = vpop.f32.mrb[3].mxu1 }
 0x102   : > { %482 = vst.msk [vmem:[%s918_s25] sm:$0xff] %vm481_vm0, %v473_v56  ;;  %486 = vst.msk [vmem:[%s918_s25 + $0x20] sm:$0xff] %vm481_vm0, %v477_v57  ;;  %v437_v4 = vadd.f32 %v616_v41, %v436_v0  ;;  %v457_v5 = vadd.f32 %v616_v41, %v456_v2 }
 0x103   : > { %v476_v6 = vadd.f32 %v468_v59, %v442_v62  ;;  %v480_v7 = vadd.f32 %v472_v61, %v462_v63 }
 0x104   : > { %v475_v8 = vadd.f32 %v467_v1, %v437_v4  ;;  %v479_v9 = vadd.f32 %v471_v3, %v457_v5 }
 0x105   : > { %485 = vst.msk [vmem:[%s918_s25 + $0x18] sm:$0xff] %vm481_vm0, %v476_v6  ;;  %489 = vst.msk [vmem:[%s918_s25 + $0x38] sm:$0xff] %vm481_vm0, %v480_v7 }
 0x106   : > { %484 = vst.msk [vmem:[%s918_s25 + $0x10] sm:$0xff] %vm481_vm0, %v475_v8  ;;  %488 = vst.msk [vmem:[%s918_s25 + $0x30] sm:$0xff] %vm481_vm0, %v479_v9 }
 0x107 PF: > { %s15_s20 = sadd.s32 1, %s784_s20   ;;  %s955_s18 = smov %s780_s19 }
 0x108   : > { %p12_p5 = scmp.ge.s32.totalorder %s15_s20, 4   ;;  %s956_s19 = smov %s958_s21 }
 0x10a   :  { %14 = sbr.rel (!%p12_p5) target bundleno = 2 (0x2), region = 76 }

// kernel: efficientnet_binary_forward.7
= control target key start
LH: loop header
LB: loop body
LE: loop exit
PB: predicated region body
PF: predicated region fallthrough
CT: control target
= control target key end

     0   :  { %s944_s12 = smov 0   ;;  %s1361_s0 = inlined_call_operand.vmem [shape: f32[2,10,10,128], index: 0, kind: input, shape index: {}]   ;;  %s1362_s1 = inlined_call_operand.vmem [shape: f32[9,1,128], index: 1, kind: input, shape index: {}]   ;;  %s1363_s2 = inlined_call_operand.vmem [shape: f32[1,128], index: 2, kind: input, shape index: {}]   ;;  %s1364_s3 = inlined_call_operand.vmem [shape: f32[2,8,8,128], index: 3, kind: output, shape index: {}]  }
   0x1 LB: > { %s854_s13 = sadd.s32 4294967295, %s922_s12   ;;  %p858_p0 = scmp.ge.s32.totalorder %s922_s12, 1  ;;  %s922_s12 = sphi %s944_s12, %s13_s12  }
   0x2   : > { %p137_p1 = scmp.lt.s32.totalorder %s922_s12, 3 }
   0x4   : > { %p138_p2 = pnand %p858_p0, %p137_p1 }
   0x5   : > { %p161_p3 = scmp.lt.s32.totalorder (!%p138_p2), %s854_s13, 1  ;;  %v958_v0 = vld [vmem:[%s1362_s1] ss:$0 sm:$0xff] (!%p138_p2)  ;;  %v963_v1 = vld [vmem:[%s1362_s1 + $0x1] ss:$0 sm:$0xff] (!%p138_p2)  ;;  %vm252_vm0 = vcmask (!%p138_p2), 1046528  }
   0x6   : > { %141 = sbr.rel (%p138_p2) target bundleno = 151 (0x97), region = 32  ;;  %v968_v2 = vld [vmem:[%s1362_s1 + $0x2] ss:$0 sm:$0xff] (!%p138_p2)  ;;  %v978_v3 = vld [vmem:[%s1362_s1 + $0x3] ss:$0 sm:$0xff] (!%p138_p2)  ;;  %vm331_vm1 = vcmask (!%p138_p2), 1045504  }
   0x7   : > { %v983_v4 = vld [vmem:[%s1362_s1 + $0x4] ss:$0 sm:$0xff] (!%p138_p2)  ;;  %v990_v7 = vld [vmem:[%s1362_s1 + $0x5] ss:$0 sm:$0xff] (!%p138_p2)  ;;  %v1001_v14 = vld [vmem:[%s1362_s1 + $0x6] ss:$0 sm:$0xff] (!%p138_p2) }
   0x8   : > { %v1006_v15 = vld [vmem:[%s1362_s1 + $0x7] ss:$0 sm:$0xff] (!%p138_p2)  ;;  %v1019_v25 = vld [vmem:[%s1362_s1 + $0x8] ss:$0 sm:$0xff] (!%p138_p2) }
   0xd   : > { %s1366_s13 = smov (!%p161_p3, %s854_s13), 1 }
   0xe   : > { %s875_s14 = smul.u32 160, %s1366_s13  ;;  %s874_s11 = sshll.u32 %s1366_s13, 6 }
   0xf   : > { %s1210_s15 = scalar_lea.vmem %s1364_s3, %s874_s11 }
  0x10   : > { %s973_s23 = scalar_lea.vmem %s1361_s0, %s875_s14 }
  0x11   : > { %v171_v5 = vld [vmem:[%s973_s23] sm:$0xff]  ;;  %v172_v6 = vld [vmem:[%s973_s23 + $0x8] sm:$0x3]  ;;  %v173_v8 = vld [vmem:[%s973_s23 + $0x10] sm:$0xff] }
  0x12   : > { %v174_v9 = vld [vmem:[%s973_s23 + $0x18] sm:$0x3]  ;;  %v206_v10 = vmul.f32 %v958_v0, %v171_v5  ;;  %v220_v11 = vmul.f32 %v963_v1, %v171_v5  ;;  %v221_v12 = vmul.f32 %v963_v1, %v172_v6  ;;  %v299_v13 = vmul.f32 %v968_v2, %v171_v5  ;;  %v1014_v24 = vld [vmem:[%s973_s23 + $0x20] sm:$0xff]  ;;  %v1028_v34 = vld [vmem:[%s973_s23 + $0x28] sm:$0x3] }
  0x13   : > { %v300_v16 = vmul.f32 %v968_v2, %v172_v6  ;;  %v378_v17 = vmul.f32 %v978_v3, %v173_v8  ;;  %v400_v18 = vmul.f32 %v983_v4, %v173_v8  ;;  %v401_v19 = vmul.f32 %v983_v4, %v174_v9 }
  0x14   : > { %v253_v20 = vrot.slane %v220_v11, 1  ;;  %v254_v21 = vrot.slane %v221_v12, 1  ;;  %v332_v22 = vrot.slane %v299_v13, 2  ;;  %v478_v23 = vmul.f32 %v990_v7, %v173_v8 }
  0x15   : > { %v333_v26 = vrot.slane %v300_v16, 2  ;;  %v432_v27 = vrot.slane %v400_v18, 1  ;;  %v433_v28 = vrot.slane %v401_v19, 1  ;;  %v479_v29 = vmul.f32 %v990_v7, %v174_v9  ;;  %v1062_v16 = vld [vmem:[%s973_s23 + $0x38] sm:$0x3] }
  0x16   : > { %v255_v30 = vsel %vm252_vm0, %v253_v20, %v254_v21  ;;  %v510_v31 = vrot.slane %v478_v23, 2  ;;  %v556_v32 = vmul.f32 %v1001_v14, %v1014_v24  ;;  %v578_v33 = vmul.f32 %v1006_v15, %v1014_v24 }
  0x17   : > { %v285_v35 = vadd.f32 %v255_v30, %v206_v10  ;;  %v334_v36 = vsel %vm331_vm1, %v332_v22, %v333_v26  ;;  %v434_v37 = vsel %vm252_vm0, %v432_v27, %v433_v28  ;;  %v511_v38 = vrot.slane %v479_v29, 2  ;;  %v1058_v10 = vld [vmem:[%s973_s23 + $0x30] sm:$0xff] }
  0x18   : > { %v579_v39 = vmul.f32 %v1006_v15, %v1028_v34  ;;  %v610_v40 = vrot.slane %v578_v33, 1  ;;  %v656_v41 = vmul.f32 %v1019_v25, %v1014_v24  ;;  %v657_v42 = vmul.f32 %v1019_v25, %v1028_v34 }
  0x19   : > { %v364_v43 = vadd.f32 %v334_v36, %v285_v35  ;;  %v512_v44 = vsel %vm331_vm1, %v510_v31, %v511_v38  ;;  %v207_v45 = vmul.f32 %v958_v0, %v173_v8  ;;  %v222_v46 = vmul.f32 %v963_v1, %v173_v8  ;;  %v1079_v36 = vld [vmem:[%s1363_s2] ss:$0 sm:$0xff] }
  0x1a   : > { %v611_v47 = vrot.slane %v579_v39, 1  ;;  %v688_v48 = vrot.slane %v656_v41, 2  ;;  %v689_v49 = vrot.slane %v657_v42, 2  ;;  %v223_v50 = vmul.f32 %v963_v1, %v174_v9 }
  0x1b   : > { %v386_v51 = vadd.f32 %v378_v17, %v364_v43  ;;  %v256_v52 = vrot.slane %v222_v46, 1  ;;  %v301_v53 = vmul.f32 %v968_v2, %v173_v8  ;;  %v302_v54 = vmul.f32 %v968_v2, %v174_v9 }
  0x1c   : > { %v612_v55 = vsel %vm252_vm0, %v610_v40, %v611_v47  ;;  %v690_v56 = vsel %vm331_vm1, %v688_v48, %v689_v49  ;;  %v257_v57 = vrot.slane %v223_v50, 1  ;;  %v379_v58 = vmul.f32 %v978_v3, %v1014_v24 }
  0x1d   : > { %v464_v59 = vadd.f32 %v434_v37, %v386_v51  ;;  %v335_v60 = vrot.slane %v301_v53, 2  ;;  %v336_v61 = vrot.slane %v302_v54, 2  ;;  %v402_v62 = vmul.f32 %v983_v4, %v1014_v24 }
  0x1e   : > { %v258_v63 = vsel %vm252_vm0, %v256_v52, %v257_v57  ;;  %v403_v5 = vmul.f32 %v983_v4, %v1028_v34  ;;  %v480_v6 = vmul.f32 %v990_v7, %v1014_v24  ;;  %v481_v8 = vmul.f32 %v990_v7, %v1028_v34 }
  0x1f   : > { %v542_v9 = vadd.f32 %v512_v44, %v464_v59  ;;  %v286_v11 = vadd.f32 %v258_v63, %v207_v45  ;;  %v337_v12 = vsel %vm331_vm1, %v335_v60, %v336_v61  ;;  %v435_v13 = vrot.slane %v402_v62, 1 }
  0x20   : > { %v436_v17 = vrot.slane %v403_v5, 1  ;;  %v513_v18 = vrot.slane %v480_v6, 2  ;;  %v514_v19 = vrot.slane %v481_v8, 2  ;;  %v557_v20 = vmul.f32 %v1001_v14, %v1058_v10  ;;  %v1108_v6 = vld [vmem:[%s973_s23 + $0x40] sm:$0xff] }
  0x21   : > { %v564_v21 = vadd.f32 %v556_v32, %v542_v9  ;;  %v365_v22 = vadd.f32 %v337_v12, %v286_v11  ;;  %v580_v23 = vmul.f32 %v1006_v15, %v1058_v10  ;;  %v581_v26 = vmul.f32 %v1006_v15, %v1062_v16  ;;  %v1113_v11 = vld [vmem:[%s973_s23 + $0x48] sm:$0x3] }
  0x22   : > { %v437_v27 = vsel %vm252_vm0, %v435_v13, %v436_v17  ;;  %v515_v28 = vsel %vm331_vm1, %v513_v18, %v514_v19  ;;  %v658_v29 = vmul.f32 %v1019_v25, %v1058_v10  ;;  %v659_v30 = vmul.f32 %v1019_v25, %v1062_v16 }
  0x23   : > { %v642_v31 = vadd.f32 %v612_v55, %v564_v21  ;;  %v387_v33 = vadd.f32 %v379_v58, %v365_v22  ;;  %v613_v32 = vrot.slane %v580_v23, 1  ;;  %v614_v35 = vrot.slane %v581_v26, 1 }
  0x24   : > { %v691_v37 = vrot.slane %v658_v29, 2  ;;  %v692_v38 = vrot.slane %v659_v30, 2  ;;  %v208_v39 = vmul.f32 %v958_v0, %v1014_v24  ;;  %v224_v40 = vmul.f32 %v963_v1, %v1014_v24 }
  0x25   : > { %v720_v41 = vadd.f32 %v690_v56, %v642_v31  ;;  %v465_v42 = vadd.f32 %v437_v27, %v387_v33  ;;  %v615_v43 = vsel %vm252_vm0, %v613_v32, %v614_v35  ;;  %v225_v44 = vmul.f32 %v963_v1, %v1028_v34 }
  0x26   : > { %v693_v45 = vsel %vm331_vm1, %v691_v37, %v692_v38  ;;  %v259_v46 = vrot.slane %v224_v40, 1  ;;  %v303_v47 = vmul.f32 %v968_v2, %v1014_v24  ;;  %v304_v48 = vmul.f32 %v968_v2, %v1028_v34 }
  0x27   : > { %v1094_v49 = vadd.f32 %v1079_v36, %v720_v41  ;;  %v543_v50 = vadd.f32 %v515_v28, %v465_v42  ;;  %v260_v51 = vrot.slane %v225_v44, 1  ;;  %v380_v52 = vmul.f32 %v978_v3, %v1058_v10 }
  0x28   : > { %v338_v53 = vrot.slane %v303_v47, 2  ;;  %v339_v54 = vrot.slane %v304_v48, 2  ;;  %v404_v55 = vmul.f32 %v983_v4, %v1058_v10  ;;  %v405_v24 = vmul.f32 %v983_v4, %v1062_v16 }
  0x29   : > { %v743_v34 = vsub.f32 0.0, %v1094_v49  ;;  %v565_v56 = vadd.f32 %v557_v20, %v543_v50  ;;  %v261_v57 = vsel %vm252_vm0, %v259_v46, %v260_v51  ;;  %v482_v58 = vmul.f32 %v990_v7, %v1058_v10 }
  0x2a   : > { %v287_v59 = vadd.f32 %v261_v57, %v208_v39  ;;  %v340_v60 = vsel %vm331_vm1, %v338_v53, %v339_v54  ;;  %v438_v61 = vrot.slane %v404_v55, 1  ;;  %v439_v62 = vrot.slane %v405_v24, 1 }
  0x2b   : > { %v751_v63 = vmul.f32 1.442695, %v743_v34  ;;  %v643_v5 = vadd.f32 %v615_v43, %v565_v56  ;;  %v483_v8 = vmul.f32 %v990_v7, %v1062_v16  ;;  %v516_v9 = vrot.slane %v482_v58, 2  ;;  %v1155_v34 = vld [vmem:[%s973_s23 + $0x50] sm:$0xff] }
  0x2c   : > { %v366_v12 = vadd.f32 %v340_v60, %v287_v59  ;;  %v440_v13 = vsel %vm252_vm0, %v438_v61, %v439_v62  ;;  %v558_v17 = vmul.f32 %v1001_v14, %v1108_v6  ;;  %v582_v18 = vmul.f32 %v1006_v15, %v1108_v6 }
  0x2d   : > { %884 = vpow2.f32 %v751_v63  ;;  %v721_v19 = vadd.f32 %v693_v45, %v643_v5  ;;  %v517_v20 = vrot.slane %v483_v8, 2  ;;  %v583_v21 = vmul.f32 %v1006_v15, %v1113_v11 }
  0x2e   : > { %v388_v22 = vadd.f32 %v380_v52, %v366_v12  ;;  %v616_v23 = vrot.slane %v582_v18, 1  ;;  %v660_v26 = vmul.f32 %v1019_v25, %v1108_v6  ;;  %v661_v27 = vmul.f32 %v1019_v25, %v1113_v11 }
  0x2f   : > { %v1127_v28 = vadd.f32 %v1079_v36, %v721_v19  ;;  %v518_v29 = vsel %vm331_vm1, %v516_v9, %v517_v20  ;;  %v617_v30 = vrot.slane %v583_v21, 1  ;;  %v209_v31 = vmul.f32 %v958_v0, %v1058_v10  ;;  %v1161_v9 = vld [vmem:[%s973_s23 + $0x58] sm:$0x3] }
  0x30   : > { %v466_v33 = vadd.f32 %v440_v13, %v388_v22  ;;  %v694_v32 = vrot.slane %v660_v26, 2  ;;  %v695_v35 = vrot.slane %v661_v27, 2  ;;  %v226_v37 = vmul.f32 %v963_v1, %v1058_v10 }
  0x31   : > { %v744_v38 = vsub.f32 0.0, %v1127_v28  ;;  %v618_v39 = vsel %vm252_vm0, %v616_v23, %v617_v30  ;;  %v227_v40 = vmul.f32 %v963_v1, %v1062_v16  ;;  %v305_v41 = vmul.f32 %v968_v2, %v1058_v10 }
  0x32   : > { %v544_v42 = vadd.f32 %v518_v29, %v466_v33  ;;  %v696_v43 = vsel %vm331_vm1, %v694_v32, %v695_v35  ;;  %v262_v44 = vrot.slane %v226_v37, 1  ;;  %v306_v45 = vmul.f32 %v968_v2, %v1062_v16 }
  0x33   : > { %v753_v46 = vmul.f32 1.442695, %v744_v38  ;;  %v263_v47 = vrot.slane %v227_v40, 1  ;;  %v341_v48 = vrot.slane %v305_v41, 2  ;;  %v381_v50 = vmul.f32 %v978_v3, %v1108_v6 }
  0x34   : > { %v566_v51 = vadd.f32 %v558_v17, %v544_v42  ;;  %v342_v52 = vrot.slane %v306_v45, 2  ;;  %v406_v53 = vmul.f32 %v983_v4, %v1108_v6  ;;  %v407_v10 = vmul.f32 %v983_v4, %v1113_v11 }
  0x35   : > { %886 = vpow2.f32 %v753_v46  ;;  %v264_v54 = vsel %vm252_vm0, %v262_v44, %v263_v47  ;;  %v484_v16 = vmul.f32 %v990_v7, %v1108_v6  ;;  %v485_v55 = vmul.f32 %v990_v7, %v1113_v11 }
  0x36   : > { %v644_v24 = vadd.f32 %v618_v39, %v566_v51  ;;  %v288_v56 = vadd.f32 %v264_v54, %v209_v31  ;;  %v343_v57 = vsel %vm331_vm1, %v341_v48, %v342_v52  ;;  %v441_v58 = vrot.slane %v406_v53, 1 }
  0x37   : > { %v885_v59 = vpop.eup %884  ;;  %v442_v60 = vrot.slane %v407_v10, 1  ;;  %v519_v61 = vrot.slane %v484_v16, 2  ;;  %v520_v62 = vrot.slane %v485_v55, 2  ;;  %v559_v63 = vmul.f32 %v1001_v14, %v1155_v34  ;;  %v1199_v55 = vld [vmem:[%s973_s23 + $0x60] sm:$0xff] }
  0x38   : > { %v767_v5 = vadd.f32 1.0, %v885_v59  ;;  %v722_v8 = vadd.f32 %v696_v43, %v644_v24  ;;  %v367_v12 = vadd.f32 %v343_v57, %v288_v56  ;;  %v584_v13 = vmul.f32 %v1006_v15, %v1155_v34 }
  0x39   : > { %v443_v17 = vsel %vm252_vm0, %v441_v58, %v442_v60  ;;  %v521_v18 = vsel %vm331_vm1, %v519_v61, %v520_v62  ;;  %v585_v19 = vmul.f32 %v1006_v15, %v1161_v9  ;;  %v662_v20 = vmul.f32 %v1019_v25, %v1155_v34 }
  0x3a   : > { %888 = vrcp.f32 %v767_v5  ;;  %v1172_v21 = vadd.f32 %v1079_v36, %v722_v8  ;;  %v389_v22 = vadd.f32 %v381_v50, %v367_v12  ;;  %v619_v23 = vrot.slane %v584_v13, 1 }
  0x3b   : > { %v620_v26 = vrot.slane %v585_v19, 1  ;;  %v663_v27 = vmul.f32 %v1019_v25, %v1161_v9  ;;  %v697_v29 = vrot.slane %v662_v20, 2  ;;  %v210_v30 = vmul.f32 %v958_v0, %v1108_v6 }
  0x3c   : > { %v745_v31 = vsub.f32 0.0, %v1172_v21  ;;  %v467_v33 = vadd.f32 %v443_v17, %v389_v22  ;;  %v228_v32 = vmul.f32 %v963_v1, %v1108_v6  ;;  %v229_v35 = vmul.f32 %v963_v1, %v1113_v11 }
  0x3d   : > { %v621_v37 = vsel %vm252_vm0, %v619_v23, %v620_v26  ;;  %v698_v38 = vrot.slane %v663_v27, 2  ;;  %v307_v39 = vmul.f32 %v968_v2, %v1108_v6  ;;  %v308_v40 = vmul.f32 %v968_v2, %v1113_v11 }
  0x3e   : > { %v755_v41 = vmul.f32 1.442695, %v745_v31  ;;  %v545_v42 = vadd.f32 %v521_v18, %v467_v33  ;;  %v265_v43 = vrot.slane %v228_v32, 1  ;;  %v266_v44 = vrot.slane %v229_v35, 1 }
  0x3f   : > { %v887_v45 = vpop.eup %886  ;;  %v699_v46 = vsel %vm331_vm1, %v697_v29, %v698_v38  ;;  %v344_v47 = vrot.slane %v307_v39, 2  ;;  %v345_v48 = vrot.slane %v308_v40, 2  ;;  %v382_v50 = vmul.f32 %v978_v3, %v1155_v34 }
  0x40   : > { %v768_v51 = vadd.f32 1.0, %v887_v45  ;;  %890 = vpow2.f32 %v755_v41  ;;  %v567_v52 = vadd.f32 %v559_v63, %v545_v42  ;;  %v267_v6 = vsel %vm252_vm0, %v265_v43, %v266_v44  ;;  %v1213_v63 = vld [vmem:[%s973_s23 + $0x68] sm:$0x3] }
  0x41   : > { %v289_v11 = vadd.f32 %v267_v6, %v210_v30  ;;  %v346_v53 = vsel %vm331_vm1, %v344_v47, %v345_v48  ;;  %v408_v10 = vmul.f32 %v983_v4, %v1155_v34  ;;  %v409_v54 = vmul.f32 %v983_v4, %v1161_v9 }
  0x42   : > { %892 = vrcp.f32 %v768_v51  ;;  %v645_v16 = vadd.f32 %v621_v37, %v567_v52  ;;  %v486_v24 = vmul.f32 %v990_v7, %v1155_v34  ;;  %v487_v56 = vmul.f32 %v990_v7, %v1161_v9 }
  0x43   : > { %v368_v57 = vadd.f32 %v346_v53, %v289_v11  ;;  %v444_v58 = vrot.slane %v408_v10, 1  ;;  %v445_v59 = vrot.slane %v409_v54, 1  ;;  %v560_v60 = vmul.f32 %v1001_v14, %v1199_v55  ;;  %v1248_v10 = vld [vmem:[%s973_s23 + $0x70] sm:$0xff] }
  0x44   : > { %v889_v61 = vpop.eup %888  ;;  %v723_v62 = vadd.f32 %v699_v46, %v645_v16  ;;  %v522_v5 = vrot.slane %v486_v24, 2  ;;  %v523_v8 = vrot.slane %v487_v56, 2  ;;  %v586_v12 = vmul.f32 %v1006_v15, %v1199_v55 }
  0x45   : > { %v783_v13 = vmul.f32 %v889_v61, %v1094_v49  ;;  %v390_v17 = vadd.f32 %v382_v50, %v368_v57  ;;  %v446_v18 = vsel %vm252_vm0, %v444_v58, %v445_v59  ;;  %v587_v19 = vmul.f32 %v1006_v15, %v1213_v63 }
  0x46   : > { %v1222_v20 = vadd.f32 %v1079_v36, %v723_v62  ;;  %v524_v22 = vsel %vm331_vm1, %v522_v5, %v523_v8  ;;  %v622_v23 = vrot.slane %v586_v12, 1  ;;  %v664_v26 = vmul.f32 %v1019_v25, %v1199_v55 }
  0x47   : > { %791 = vst [vmem:[%s1210_s15] sm:$0xff] %v783_v13  ;;  %v468_v27 = vadd.f32 %v446_v18, %v390_v17  ;;  %v623_v29 = vrot.slane %v587_v19, 1  ;;  %v665_v49 = vmul.f32 %v1019_v25, %v1213_v63  ;;  %v211_v30 = vmul.f32 %v958_v0, %v1155_v34 }
  0x48   : > { %v746_v31 = vsub.f32 0.0, %v1222_v20  ;;  %v700_v33 = vrot.slane %v664_v26, 2  ;;  %v230_v32 = vmul.f32 %v963_v1, %v1155_v34  ;;  %v231_v35 = vmul.f32 %v963_v1, %v1161_v9 }
  0x49   : > { %v546_v37 = vadd.f32 %v524_v22, %v468_v27  ;;  %v624_v38 = vsel %vm252_vm0, %v622_v23, %v623_v29  ;;  %v701_v39 = vrot.slane %v665_v49, 2  ;;  %v309_v40 = vmul.f32 %v968_v2, %v1155_v34 }
  0x4a   : > { %v891_v41 = vpop.eup %890  ;;  %v757_v42 = vmul.f32 1.442695, %v746_v31  ;;  %v268_v43 = vrot.slane %v230_v32, 1  ;;  %v269_v44 = vrot.slane %v231_v35, 1  ;;  %v310_v45 = vmul.f32 %v968_v2, %v1161_v9 }
  0x4b   : > { %v769_v46 = vadd.f32 1.0, %v891_v41  ;;  %v568_v47 = vadd.f32 %v560_v60, %v546_v37  ;;  %v702_v48 = vsel %vm331_vm1, %v700_v33, %v701_v39  ;;  %v347_v50 = vrot.slane %v309_v40, 2  ;;  %v1263_v60 = vld [vmem:[%s973_s23 + $0x78] sm:$0x3] }
  0x4c   : > { %v893_v51 = vpop.eup %892  ;;  %894 = vpow2.f32 %v757_v42  ;;  %v270_v52 = vsel %vm252_vm0, %v268_v43, %v269_v44  ;;  %v348_v6 = vrot.slane %v310_v45, 2  ;;  %v383_v34 = vmul.f32 %v978_v3, %v1199_v55 }
  0x4d   : > { %v784_v11 = vmul.f32 %v893_v51, %v1127_v28  ;;  %896 = vrcp.f32 %v769_v46  ;;  %v646_v53 = vadd.f32 %v624_v38, %v568_v47  ;;  %v290_v9 = vadd.f32 %v270_v52, %v211_v30 }
  0x4e   : > { %v349_v54 = vsel %vm331_vm1, %v347_v50, %v348_v6  ;;  %v410_v16 = vmul.f32 %v983_v4, %v1199_v55  ;;  %v411_v24 = vmul.f32 %v983_v4, %v1213_v63  ;;  %v488_v56 = vmul.f32 %v990_v7, %v1199_v55 }
  0x4f   : > { %792 = vst [vmem:[%s1210_s15 + $0x8] sm:$0xff] %v784_v11  ;;  %v724_v57 = vadd.f32 %v702_v48, %v646_v53  ;;  %v369_v58 = vadd.f32 %v349_v54, %v290_v9  ;;  %v489_v28 = vmul.f32 %v990_v7, %v1213_v63  ;;  %v561_v59 = vmul.f32 %v1001_v14, %v1248_v10  ;;  %v187_v53 = vld [vmem:[%s973_s23 + $0x80] sm:$0xff] }
  0x50   : > { %v447_v61 = vrot.slane %v410_v16, 1  ;;  %v448_v62 = vrot.slane %v411_v24, 1  ;;  %v525_v5 = vrot.slane %v488_v56, 2  ;;  %v588_v8 = vmul.f32 %v1006_v15, %v1248_v10 }
  0x51   : > { %v1268_v12 = vadd.f32 %v1079_v36, %v724_v57  ;;  %v391_v13 = vadd.f32 %v383_v34, %v369_v58  ;;  %v526_v17 = vrot.slane %v489_v28, 2  ;;  %v589_v18 = vmul.f32 %v1006_v15, %v1263_v60  ;;  %v188_v28 = vld [vmem:[%s973_s23 + $0x88] sm:$0x3] }
  0x52   : > { %v449_v19 = vsel %vm252_vm0, %v447_v61, %v448_v62  ;;  %v625_v22 = vrot.slane %v588_v8, 1  ;;  %v666_v23 = vmul.f32 %v1019_v25, %v1248_v10  ;;  %v667_v26 = vmul.f32 %v1019_v25, %v1263_v60 }
  0x53   : > { %v747_v27 = vsub.f32 0.0, %v1268_v12  ;;  %v469_v29 = vadd.f32 %v449_v19, %v391_v13  ;;  %v527_v49 = vsel %vm331_vm1, %v525_v5, %v526_v17  ;;  %v626_v30 = vrot.slane %v589_v18, 1 }
  0x54   : > { %v703_v31 = vrot.slane %v666_v23, 2  ;;  %v704_v33 = vrot.slane %v667_v26, 2  ;;  %v212_v32 = vmul.f32 %v958_v0, %v1199_v55  ;;  %v232_v35 = vmul.f32 %v963_v1, %v1199_v55 }
  0x55   : > { %v759_v37 = vmul.f32 1.442695, %v747_v27  ;;  %v547_v38 = vadd.f32 %v527_v49, %v469_v29  ;;  %v627_v39 = vsel %vm252_vm0, %v625_v22, %v626_v30  ;;  %v233_v40 = vmul.f32 %v963_v1, %v1213_v63 }
  0x56   : > { %v895_v41 = vpop.eup %894  ;;  %v705_v42 = vsel %vm331_vm1, %v703_v31, %v704_v33  ;;  %v271_v43 = vrot.slane %v232_v35, 1  ;;  %v311_v44 = vmul.f32 %v968_v2, %v1199_v55  ;;  %v312_v45 = vmul.f32 %v968_v2, %v1213_v63 }
  0x57   : > { %v897_v46 = vpop.eup %896  ;;  %v770_v47 = vadd.f32 1.0, %v895_v41  ;;  %898 = vpow2.f32 %v759_v37  ;;  %v569_v48 = vadd.f32 %v561_v59, %v547_v38  ;;  %v272_v50 = vrot.slane %v233_v40, 1 }
  0x58   : > { %v785_v51 = vmul.f32 %v897_v46, %v1172_v21  ;;  %v350_v52 = vrot.slane %v311_v44, 2  ;;  %v351_v6 = vrot.slane %v312_v45, 2  ;;  %v384_v34 = vmul.f32 %v978_v3, %v1248_v10 }
  0x59   : > { %900 = vrcp.f32 %v770_v47  ;;  %v647_v11 = vadd.f32 %v627_v39, %v569_v48  ;;  %v273_v55 = vsel %vm252_vm0, %v271_v43, %v272_v50  ;;  %v412_v63 = vmul.f32 %v983_v4, %v1248_v10 }
  0x5a   : > { %793 = vst [vmem:[%s1210_s15 + $0x10] sm:$0xff] %v785_v51  ;;  %v291_v9 = vadd.f32 %v273_v55, %v212_v32  ;;  %v352_v54 = vsel %vm331_vm1, %v350_v52, %v351_v6  ;;  %v413_v21 = vmul.f32 %v983_v4, %v1263_v60  ;;  %v490_v16 = vmul.f32 %v990_v7, %v1248_v10  ;;  %v189_v55 = vld [vmem:[%s973_s23 + $0x90] sm:$0xff] }
  0x5b   : > { %v725_v24 = vadd.f32 %v705_v42, %v647_v11  ;;  %v450_v56 = vrot.slane %v412_v63, 1  ;;  %v491_v57 = vmul.f32 %v990_v7, %v1263_v60  ;;  %v562_v58 = vmul.f32 %v1001_v14, %v187_v53  ;;  %v190_v63 = vld [vmem:[%s973_s23 + $0x98] sm:$0x3] }
  0x5c   : > { %v370_v59 = vadd.f32 %v352_v54, %v291_v9  ;;  %v451_v61 = vrot.slane %v413_v21, 1  ;;  %v528_v62 = vrot.slane %v490_v16, 2  ;;  %v590_v5 = vmul.f32 %v1006_v15, %v187_v53 }
  0x5d   : > { %v1310_v8 = vadd.f32 %v1079_v36, %v725_v24  ;;  %v529_v13 = vrot.slane %v491_v57, 2  ;;  %v591_v17 = vmul.f32 %v1006_v15, %v188_v28  ;;  %v668_v18 = vmul.f32 %v1019_v25, %v187_v53 }
  0x5e   : > { %v392_v19 = vadd.f32 %v384_v34, %v370_v59  ;;  %v452_v22 = vsel %vm252_vm0, %v450_v56, %v451_v61  ;;  %v628_v23 = vrot.slane %v590_v5, 1  ;;  %v669_v26 = vmul.f32 %v1019_v25, %v188_v28 }
  0x5f   : > { %v748_v27 = vsub.f32 0.0, %v1310_v8  ;;  %v530_v29 = vsel %vm331_vm1, %v528_v62, %v529_v13  ;;  %v629_v49 = vrot.slane %v591_v17, 1  ;;  %v706_v30 = vrot.slane %v668_v18, 2 }
  0x60   : > { %v470_v31 = vadd.f32 %v452_v22, %v392_v19  ;;  %v707_v33 = vrot.slane %v669_v26, 2  ;;  %v213_v32 = vmul.f32 %v958_v0, %v1248_v10  ;;  %v234_v35 = vmul.f32 %v963_v1, %v1248_v10 }
  0x61   : > { %v899_v37 = vpop.eup %898  ;;  %v761_v38 = vmul.f32 1.442695, %v748_v27  ;;  %v630_v39 = vsel %vm252_vm0, %v628_v23, %v629_v49  ;;  %v235_v40 = vmul.f32 %v963_v1, %v1263_v60  ;;  %v313_v41 = vmul.f32 %v968_v2, %v1248_v10 }
  0x62   : > { %v771_v42 = vadd.f32 1.0, %v899_v37  ;;  %v548_v43 = vadd.f32 %v530_v29, %v470_v31  ;;  %v708_v44 = vsel %vm331_vm1, %v706_v30, %v707_v33  ;;  %v274_v45 = vrot.slane %v234_v35, 1 }
  0x63   : > { %v901_v0 = vpop.eup %900  ;;  %902 = vpow2.f32 %v761_v38  ;;  %v275_v46 = vrot.slane %v235_v40, 1  ;;  %v314_v47 = vmul.f32 %v968_v2, %v1263_v60  ;;  %v353_v48 = vrot.slane %v313_v41, 2 }
  0x64   : > { %v786_v1 = vmul.f32 %v901_v0, %v1222_v20  ;;  %904 = vrcp.f32 %v771_v42  ;;  %v570_v50 = vadd.f32 %v562_v58, %v548_v43  ;;  %v385_v10 = vmul.f32 %v978_v3, %v187_v53 }
  0x65   : > { %v276_v51 = vsel %vm252_vm0, %v274_v45, %v275_v46  ;;  %v354_v52 = vrot.slane %v314_v47, 2  ;;  %v414_v6 = vmul.f32 %v983_v4, %v187_v53  ;;  %v415_v34 = vmul.f32 %v983_v4, %v188_v28 }
  0x66   : > { %794 = vst [vmem:[%s1210_s15 + $0x18] sm:$0xff] %v786_v1  ;;  %v648_v11 = vadd.f32 %v630_v39, %v570_v50  ;;  %v292_v9 = vadd.f32 %v276_v51, %v213_v32  ;;  %v492_v2 = vmul.f32 %v990_v7, %v187_v53  ;;  %v493_v20 = vmul.f32 %v990_v7, %v188_v28 }
  0x67   : > { %v355_v60 = vsel %vm331_vm1, %v353_v48, %v354_v52  ;;  %v453_v54 = vrot.slane %v414_v6, 1  ;;  %v454_v3 = vrot.slane %v415_v34, 1  ;;  %v592_v4 = vmul.f32 %v1006_v15, %v189_v55 }
  0x68   : > { %v726_v21 = vadd.f32 %v708_v44, %v648_v11  ;;  %v371_v16 = vadd.f32 %v355_v60, %v292_v9  ;;  %v531_v24 = vrot.slane %v492_v2, 2  ;;  %v532_v56 = vrot.slane %v493_v20, 2 }
  0x69   : > { %v455_v57 = vsel %vm252_vm0, %v453_v54, %v454_v3  ;;  %v593_v58 = vmul.f32 %v1006_v15, %v190_v63  ;;  %v670_v59 = vmul.f32 %v1019_v25, %v189_v55  ;;  %v671_v7 = vmul.f32 %v1019_v25, %v190_v63 }
  0x6a   : > { %v741_v53 = vadd.f32 %v1079_v36, %v726_v21  ;;  %v393_v61 = vadd.f32 %v385_v10, %v371_v16  ;;  %v533_v28 = vsel %vm331_vm1, %v531_v24, %v532_v56  ;;  %v631_v62 = vrot.slane %v592_v4, 1 }
  0x6b   : > { %v632_v5 = vrot.slane %v593_v58, 1  ;;  %v563_v18 = vmul.f32 %v1001_v14, %v189_v55  ;;  %v709_v22 = vrot.slane %v670_v59, 2  ;;  %v710_v23 = vrot.slane %v671_v7, 2 }
  0x6c   : > { %v749_v13 = vsub.f32 0.0, %v741_v53  ;;  %v471_v17 = vadd.f32 %v455_v57, %v393_v61 }
  0x6d   : > { %v903_v19 = vpop.eup %902  ;;  %v633_v25 = vsel %vm252_vm0, %v631_v62, %v632_v5  ;;  %v711_v31 = vsel %vm331_vm1, %v709_v22, %v710_v23 }
  0x6e   : > { %v905_v15 = vpop.eup %904  ;;  %v772_v26 = vadd.f32 1.0, %v903_v19  ;;  %v763_v27 = vmul.f32 1.442695, %v749_v13  ;;  %v549_v29 = vadd.f32 %v533_v28, %v471_v17 }
  0x6f   : > { %v787_v49 = vmul.f32 %v905_v15, %v1268_v12 }
  0x70   : > { %906 = vrcp.f32 %v772_v26  ;;  %v571_v30 = vadd.f32 %v563_v18, %v549_v29 }
  0x71   : > { %795 = vst [vmem:[%s1210_s15 + $0x20] sm:$0xff] %v787_v49  ;;  %908 = vpow2.f32 %v763_v27 }
  0x72   : > { %v649_v33 = vadd.f32 %v633_v25, %v571_v30 }
  0x74   : > { %v727_v14 = vadd.f32 %v711_v31, %v649_v33 }
  0x76   : > { %v742_v32 = vadd.f32 %v1079_v36, %v727_v14 }
  0x78   : > { %v750_v35 = vsub.f32 0.0, %v742_v32 }
  0x7a   : > { %v907_v37 = vpop.eup %906  ;;  %v765_v38 = vmul.f32 1.442695, %v750_v35 }
  0x7b   : > { %v909_v39 = vpop.eup %908  ;;  %v788_v12 = vmul.f32 %v907_v37, %v1310_v8 }
  0x7c   : > { %v773_v40 = vadd.f32 1.0, %v909_v39  ;;  %910 = vpow2.f32 %v765_v38 }
  0x7d   : > { %796 = vst [vmem:[%s1210_s15 + $0x28] sm:$0xff] %v788_v12 }
  0x7e   : > { %912 = vrcp.f32 %v773_v40 }
  0x86   : > { %v911_v41 = vpop.eup %910 }
  0x87   : > { %v774_v42 = vadd.f32 1.0, %v911_v41 }
  0x88   : > { %v913_v43 = vpop.eup %912 }
  0x89   : > { %v789_v44 = vmul.f32 %v913_v43, %v741_v53  ;;  %914 = vrcp.f32 %v774_v42 }
  0x8b   : > { %797 = vst [vmem:[%s1210_s15 + $0x30] sm:$0xff] %v789_v44 }
  0x93   : > { %v915_v45 = vpop.eup %914 }
  0x94   : > { %v790_v0 = vmul.f32 %v915_v45, %v742_v32 }
  0x96   : > { %798 = vst [vmem:[%s1210_s15 + $0x38] sm:$0xff] %v790_v0 }
  0x97 PF: > { %s13_s12 = sadd.s32 1, %s922_s12  }
  0x98   : > { %p10_p4 = scmp.ge.s32.totalorder %s13_s12, 4  }
  0x9a   :  { %12 = sbr.rel (!%p10_p4) target bundleno = 1 (0x1), region = 62 }

// kernel: efficientnet_binary_forward.6
= control target key start
LH: loop header
LB: loop body
LE: loop exit
PB: predicated region body
PF: predicated region fallthrough
CT: control target
= control target key end

     0   :  { %vm49_vm0 = vcmask 261120   ;;  %s1382_s1 = inlined_call_operand.vmem [shape: f32[32,32], index: 1, kind: input, shape index: {}]   ;;  %s1383_s0 = inlined_call_operand.vmem [shape: f32[128,32], index: 0, kind: input, shape index: {}]   ;;  %s1384_s3 = inlined_call_operand.vmem [shape: f32[32,128], index: 3, kind: input, shape index: {}]   ;;  %s1385_s2 = inlined_call_operand.vmem [shape: f32[1,32], index: 2, kind: input, shape index: {}]   ;;  %s1386_s5 = inlined_call_operand.vmem [shape: f32[128,32], index: 5, kind: output, shape index: {0}]   ;;  %s1387_s4 = inlined_call_operand.vmem [shape: f32[1,128], index: 4, kind: input, shape index: {}]   ;;  %s1388_s6 = inlined_call_operand.vmem [shape: f32[128,128], index: 6, kind: output, shape index: {1}]  }
   0x1   :  { %v38_v0 = vld [vmem:[%s1382_s1] sm:$0xff]  ;;  %v39_v1 = vld [vmem:[%s1382_s1 + $0x8] sm:$0xff]  ;;  %v40_v2 = vld [vmem:[%s1382_s1 + $0x10] sm:$0xff] }
   0x2   :  { %v817_v3 = vpack.c.bf16 %v39_v1, %v38_v0  ;;  %v41_v4 = vld [vmem:[%s1382_s1 + $0x18] sm:$0xff]  ;;  %v22_v5 = vld [vmem:[%s1383_s0] sm:$0xff]  ;;  %v23_v7 = vld [vmem:[%s1383_s0 + $0x8] sm:$0xff] }
   0x3   :  { %v821_v6 = vpack.c.bf16 %v41_v4, %v40_v2  ;;  %761 = vmatprep.mubr.msk.f32.mxu0 %vm49_vm0, %v22_v5  ;;  %v24_v8 = vld [vmem:[%s1383_s0 + $0x10] sm:$0xff]  ;;  %v25_v9 = vld [vmem:[%s1383_s0 + $0x18] sm:$0xff]  ;;  %v26_v10 = vld [vmem:[%s1383_s0 + $0x20] sm:$0xff] }
   0x4   :  { %818 = vmatprep.subr.bf16.mxu0 %v817_v3  ;;  %v27_v11 = vld [vmem:[%s1383_s0 + $0x28] sm:$0xff]  ;;  %v28_v12 = vld [vmem:[%s1383_s0 + $0x30] sm:$0xff]  ;;  %v29_v13 = vld [vmem:[%s1383_s0 + $0x38] sm:$0xff] }
   0x5   :  { %820 = vmatpush3.bf16.msra.mxu0 %v817_v3  ;;  %v30_v14 = vld [vmem:[%s1383_s0 + $0x40] sm:$0xff]  ;;  %v31_v15 = vld [vmem:[%s1383_s0 + $0x48] sm:$0xff]  ;;  %v32_v16 = vld [vmem:[%s1383_s0 + $0x50] sm:$0xff] }
   0x6   :  { %822 = vmatprep.subr.bf16.mxu0 %v821_v6  ;;  %v33_v17 = vld [vmem:[%s1383_s0 + $0x58] sm:$0xff]  ;;  %v34_v18 = vld [vmem:[%s1383_s0 + $0x60] sm:$0xff]  ;;  %v35_v19 = vld [vmem:[%s1383_s0 + $0x68] sm:$0xff] }
   0x7   :  { %v36_v20 = vld [vmem:[%s1383_s0 + $0x70] sm:$0xff]  ;;  %v37_v21 = vld [vmem:[%s1383_s0 + $0x78] sm:$0xff]  ;;  %v339_v22 = vld [vmem:[%s1384_s3] sm:$0xff] }
   0x8   :  { %v340_v23 = vld [vmem:[%s1384_s3 + $0x8] sm:$0xff]  ;;  %v341_v25 = vld [vmem:[%s1384_s3 + $0x10] sm:$0xff]  ;;  %v342_v26 = vld [vmem:[%s1384_s3 + $0x18] sm:$0xff] }
   0x9   :  { %824 = vmatpush3.bf16.msra.mxu0 %v821_v6  ;;  %v825_v24 = vpack.c.bf16 %v340_v23, %v339_v22  ;;  %v829_v27 = vpack.c.bf16 %v342_v26, %v341_v25  ;;  %v1087_v28 = vld [vmem:[%s1385_s2] ss:$0 sm:$0xff] }
   0xb   :  { %826 = vmatprep.subr.bf16.mxu1 %v825_v24 }
   0xc   :  { %762 = vmatmul.mubr.msk.f32.vlgmr.msra.gmra.mrb[0].mxu0 %vm49_vm0, %v23_v7  ;;  %828 = vmatpush3.bf16.msra.mxu1 %v825_v24 }
   0xd   :  { %764 = vmatprep.mubr.msk.f32.mxu0 %vm49_vm0, %v24_v8  ;;  %830 = vmatprep.subr.bf16.mxu1 %v829_v27 }
  0x10   :  { %765 = vmatmul.mubr.msk.f32.gmra.mrb[2].mxu0 %vm49_vm0, %v25_v9  ;;  %832 = vmatpush3.bf16.msra.mxu1 %v829_v27 }
  0x11   :  { %767 = vmatprep.mubr.msk.f32.mxu0 %vm49_vm0, %v26_v10 }
  0x14   :  { %768 = vmatmul.mubr.msk.f32.gmra.mrb[4].mxu0 %vm49_vm0, %v27_v11 }
  0x15   :  { %770 = vmatprep.mubr.msk.f32.mxu0 %vm49_vm0, %v28_v12 }
  0x18   :  { %771 = vmatmul.mubr.msk.f32.gmra.mrb[6].mxu0 %vm49_vm0, %v29_v13 }
  0x19   :  { %773 = vmatprep.mubr.msk.f32.mxu0 %vm49_vm0, %v30_v14 }
  0x1c   :  { %774 = vmatmul.mubr.msk.f32.gmra.mrb[8].mxu0 %vm49_vm0, %v31_v15 }
  0x1d   :  { %776 = vmatprep.mubr.msk.f32.mxu0 %vm49_vm0, %v32_v16 }
  0x20   :  { %777 = vmatmul.mubr.msk.f32.gmra.mrb[10].mxu0 %vm49_vm0, %v33_v17 }
  0x21   :  { %779 = vmatprep.mubr.msk.f32.mxu0 %vm49_vm0, %v34_v18 }
  0x24   :  { %780 = vmatmul.mubr.msk.f32.gmra.mrb[12].mxu0 %vm49_vm0, %v35_v19 }
  0x25   :  { %782 = vmatprep.mubr.msk.f32.mxu0 %vm49_vm0, %v36_v20 }
  0x28   :  { %783 = vmatmul.mubr.msk.f32.gmra.mrb[14].mxu0 %vm49_vm0, %v37_v21 }
  0xdf   :  { %v763_v29 = vpop.f32.mrb[0].mxu0 }
  0xe0   :  { %v1090_v30 = vadd.f32 %v763_v29, %v1087_v28  ;;  %v164_v31 = vpop.f32.mrb[1].mxu0 }
  0xe1   :  { %v1093_v32 = vadd.f32 %v1087_v28, %v164_v31 }
  0xe2   :  { %v244_v33 = vsub.f32 0.0, %v1090_v30 }
  0xe3   :  { %v243_v34 = vsub.f32 0.0, %v1093_v32  ;;  %v766_v35 = vpop.f32.mrb[2].mxu0 }
  0xe4   :  { %v261_v36 = vmul.f32 1.442695, %v244_v33  ;;  %v1098_v37 = vadd.f32 %v766_v35, %v1087_v28  ;;  %v174_v38 = vpop.f32.mrb[3].mxu0 }
  0xe5   :  { %v259_v39 = vmul.f32 1.442695, %v243_v34  ;;  %v1101_v40 = vadd.f32 %v1087_v28, %v174_v38 }
  0xe6   :  { %833 = vpow2.f32 %v261_v36  ;;  %v246_v41 = vsub.f32 0.0, %v1098_v37 }
  0xe7   :  { %835 = vpow2.f32 %v259_v39  ;;  %v245_v42 = vsub.f32 0.0, %v1101_v40  ;;  %v769_v43 = vpop.f32.mrb[4].mxu0 }
  0xe8   :  { %v265_v44 = vmul.f32 1.442695, %v246_v41  ;;  %v1106_v45 = vadd.f32 %v769_v43, %v1087_v28  ;;  %v184_v46 = vpop.f32.mrb[5].mxu0 }
  0xe9   :  { %v263_v47 = vmul.f32 1.442695, %v245_v42  ;;  %v1109_v48 = vadd.f32 %v1087_v28, %v184_v46 }
  0xea   :  { %837 = vpow2.f32 %v265_v44  ;;  %v248_v49 = vsub.f32 0.0, %v1106_v45 }
  0xeb   :  { %839 = vpow2.f32 %v263_v47  ;;  %v247_v50 = vsub.f32 0.0, %v1109_v48  ;;  %v772_v51 = vpop.f32.mrb[6].mxu0 }
  0xec   :  { %v269_v52 = vmul.f32 1.442695, %v248_v49  ;;  %v1114_v53 = vadd.f32 %v772_v51, %v1087_v28  ;;  %v194_v54 = vpop.f32.mrb[7].mxu0 }
  0xed   :  { %v267_v55 = vmul.f32 1.442695, %v247_v50  ;;  %v1117_v56 = vadd.f32 %v1087_v28, %v194_v54 }
  0xee   :  { %841 = vpow2.f32 %v269_v52  ;;  %v250_v57 = vsub.f32 0.0, %v1114_v53 }
  0xef   :  { %843 = vpow2.f32 %v267_v55  ;;  %v249_v58 = vsub.f32 0.0, %v1117_v56  ;;  %v775_v59 = vpop.f32.mrb[8].mxu0 }
  0xf0   :  { %v834_v60 = vpop.eup %833  ;;  %v273_v61 = vmul.f32 1.442695, %v250_v57  ;;  %v1122_v62 = vadd.f32 %v775_v59, %v1087_v28  ;;  %v204_v63 = vpop.f32.mrb[9].mxu0 }
  0xf1   :  { %v836_v0 = vpop.eup %835  ;;  %v292_v1 = vadd.f32 1.0, %v834_v60  ;;  %v271_v2 = vmul.f32 1.442695, %v249_v58  ;;  %v1125_v3 = vadd.f32 %v1087_v28, %v204_v63 }
  0xf2   :  { %v291_v4 = vadd.f32 1.0, %v836_v0  ;;  %845 = vpow2.f32 %v273_v61  ;;  %v252_v5 = vsub.f32 0.0, %v1122_v62 }
  0xf3   :  { %847 = vrcp.f32 %v292_v1  ;;  %v251_v6 = vsub.f32 0.0, %v1125_v3  ;;  %v778_v7 = vpop.f32.mrb[10].mxu0 }
  0xf4   :  { %v838_v8 = vpop.eup %837  ;;  %849 = vrcp.f32 %v291_v4  ;;  %v277_v9 = vmul.f32 1.442695, %v252_v5  ;;  %v1130_v10 = vadd.f32 %v778_v7, %v1087_v28  ;;  %v214_v11 = vpop.f32.mrb[11].mxu0 }
  0xf5   :  { %v840_v12 = vpop.eup %839  ;;  %v294_v13 = vadd.f32 1.0, %v838_v8  ;;  %851 = vpow2.f32 %v271_v2  ;;  %v275_v14 = vmul.f32 1.442695, %v251_v6  ;;  %v1133_v15 = vadd.f32 %v1087_v28, %v214_v11 }
  0xf6   :  { %v293_v16 = vadd.f32 1.0, %v840_v12  ;;  %853 = vpow2.f32 %v277_v9  ;;  %v254_v17 = vsub.f32 0.0, %v1130_v10 }
  0xf7   :  { %855 = vrcp.f32 %v294_v13  ;;  %v253_v18 = vsub.f32 0.0, %v1133_v15  ;;  %v781_v19 = vpop.f32.mrb[12].mxu0 }
  0xf8   :  { %v842_v20 = vpop.eup %841  ;;  %857 = vrcp.f32 %v293_v16  ;;  %v281_v21 = vmul.f32 1.442695, %v254_v17  ;;  %v1138_v22 = vadd.f32 %v781_v19, %v1087_v28  ;;  %v224_v23 = vpop.f32.mrb[13].mxu0 }
  0xf9   :  { %v844_v24 = vpop.eup %843  ;;  %v296_v25 = vadd.f32 1.0, %v842_v20  ;;  %859 = vpow2.f32 %v275_v14  ;;  %v279_v26 = vmul.f32 1.442695, %v253_v18  ;;  %v1141_v27 = vadd.f32 %v1087_v28, %v224_v23 }
  0xfa   :  { %v295_v29 = vadd.f32 1.0, %v844_v24  ;;  %861 = vpow2.f32 %v281_v21  ;;  %v256_v31 = vsub.f32 0.0, %v1138_v22 }
  0xfb   :  { %863 = vrcp.f32 %v296_v25  ;;  %v255_v33 = vsub.f32 0.0, %v1141_v27  ;;  %v784_v34 = vpop.f32.mrb[14].mxu0 }
  0xfc   :  { %v846_v35 = vpop.eup %845  ;;  %865 = vrcp.f32 %v295_v29  ;;  %v285_v36 = vmul.f32 1.442695, %v256_v31  ;;  %v1146_v38 = vadd.f32 %v784_v34, %v1087_v28  ;;  %v234_v39 = vpop.f32.mrb[15].mxu0 }
  0xfd   :  { %v848_v41 = vpop.eup %847  ;;  %v298_v42 = vadd.f32 1.0, %v846_v35  ;;  %867 = vpow2.f32 %v279_v26  ;;  %v283_v43 = vmul.f32 1.442695, %v255_v33  ;;  %v1149_v44 = vadd.f32 %v1087_v28, %v234_v39 }
  0xfe   :  { %v850_v46 = vpop.eup %849  ;;  %v324_v47 = vmul.f32 %v848_v41, %v1090_v30  ;;  %869 = vpow2.f32 %v285_v36  ;;  %v258_v49 = vsub.f32 0.0, %v1146_v38 }
  0xff   :  { %v852_v50 = vpop.eup %851  ;;  %871 = vrcp.f32 %v298_v42  ;;  %v257_v51 = vsub.f32 0.0, %v1149_v44  ;;  %v323_v52 = vmul.f32 %v850_v46, %v1093_v32 }
 0x100   :  { %v854_v54 = vpop.eup %853  ;;  %344 = vst.msk [vmem:[%s1386_s5 + $0x8] sm:$0xff] %vm49_vm0, %v324_v47  ;;  %v297_v28 = vadd.f32 1.0, %v852_v50  ;;  %873 = vpow2.f32 %v283_v43  ;;  %v289_v55 = vmul.f32 1.442695, %v258_v49 }
 0x101   :  { %v856_v57 = vpop.eup %855  ;;  %v300_v30 = vadd.f32 1.0, %v854_v54  ;;  %v287_v58 = vmul.f32 1.442695, %v257_v51  ;;  %343 = vst.msk [vmem:[%s1386_s5] sm:$0xff] %vm49_vm0, %v323_v52  ;;  %793 = vmatprep.mubr.msk.f32.mxu1 %vm49_vm0, %v323_v52 }
 0x102   :  { %v858_v32 = vpop.eup %857  ;;  %v326_v59 = vmul.f32 %v856_v57, %v1098_v37  ;;  %875 = vrcp.f32 %v297_v28  ;;  %794 = vmatmul.mubr.msk.f32.vlgmr.msra.gmra.mrb[0].mxu1 %vm49_vm0, %v324_v47 }
 0x103   :  { %v860_v60 = vpop.eup %859  ;;  %v325_v61 = vmul.f32 %v858_v32, %v1101_v40  ;;  %877 = vrcp.f32 %v300_v30 }
 0x104   :  { %v862_v63 = vpop.eup %861  ;;  %346 = vst.msk [vmem:[%s1386_s5 + $0x18] sm:$0xff] %vm49_vm0, %v326_v59  ;;  %v299_v0 = vadd.f32 1.0, %v860_v60  ;;  %879 = vpow2.f32 %v289_v55 }
 0x105   :  { %v864_v1 = vpop.eup %863  ;;  %345 = vst.msk [vmem:[%s1386_s5 + $0x10] sm:$0xff] %vm49_vm0, %v325_v61  ;;  %v302_v37 = vadd.f32 1.0, %v862_v63  ;;  %881 = vpow2.f32 %v287_v58  ;;  %796 = vmatprep.mubr.msk.f32.mxu1 %vm49_vm0, %v325_v61 }
 0x106   :  { %v866_v40 = vpop.eup %865  ;;  %v328_v2 = vmul.f32 %v864_v1, %v1106_v45  ;;  %883 = vrcp.f32 %v299_v0  ;;  %797 = vmatmul.mubr.msk.f32.gmra.mrb[2].mxu1 %vm49_vm0, %v326_v59 }
 0x107   :  { %v868_v4 = vpop.eup %867  ;;  %v327_v5 = vmul.f32 %v866_v40, %v1109_v48  ;;  %885 = vrcp.f32 %v302_v37 }
 0x108   :  { %v870_v6 = vpop.eup %869  ;;  %348 = vst.msk [vmem:[%s1386_s5 + $0x28] sm:$0xff] %vm49_vm0, %v328_v2  ;;  %v301_v7 = vadd.f32 1.0, %v868_v4 }
 0x109   :  { %v872_v8 = vpop.eup %871  ;;  %347 = vst.msk [vmem:[%s1386_s5 + $0x20] sm:$0xff] %vm49_vm0, %v327_v5  ;;  %v304_v45 = vadd.f32 1.0, %v870_v6  ;;  %799 = vmatprep.mubr.msk.f32.mxu1 %vm49_vm0, %v327_v5 }
 0x10a   :  { %v874_v9 = vpop.eup %873  ;;  %v330_v48 = vmul.f32 %v872_v8, %v1114_v53  ;;  %887 = vrcp.f32 %v301_v7  ;;  %800 = vmatmul.mubr.msk.f32.gmra.mrb[4].mxu1 %vm49_vm0, %v328_v2 }
 0x10b   :  { %889 = vrcp.f32 %v304_v45  ;;  %v303_v11 = vadd.f32 1.0, %v874_v9 }
 0x10c   :  { %v876_v12 = vpop.eup %875  ;;  %350 = vst.msk [vmem:[%s1386_s5 + $0x38] sm:$0xff] %vm49_vm0, %v330_v48 }
 0x10d   :  { %v878_v13 = vpop.eup %877  ;;  %v329_v14 = vmul.f32 %v876_v12, %v1117_v56  ;;  %891 = vrcp.f32 %v303_v11 }
 0x10e   :  { %v880_v16 = vpop.eup %879  ;;  %v332_v17 = vmul.f32 %v878_v13, %v1122_v62 }
 0x10f   :  { %v882_v18 = vpop.eup %881  ;;  %349 = vst.msk [vmem:[%s1386_s5 + $0x30] sm:$0xff] %vm49_vm0, %v329_v14  ;;  %v306_v53 = vadd.f32 1.0, %v880_v16  ;;  %802 = vmatprep.mubr.msk.f32.mxu1 %vm49_vm0, %v329_v14 }
 0x110   :  { %v884_v19 = vpop.eup %883  ;;  %352 = vst.msk [vmem:[%s1386_s5 + $0x48] sm:$0xff] %vm49_vm0, %v332_v17  ;;  %v305_v56 = vadd.f32 1.0, %v882_v18  ;;  %803 = vmatmul.mubr.msk.f32.gmra.mrb[6].mxu1 %vm49_vm0, %v330_v48 }
 0x111   :  { %v886_v20 = vpop.eup %885  ;;  %v331_v62 = vmul.f32 %v884_v19, %v1125_v3  ;;  %893 = vrcp.f32 %v306_v53 }
 0x112   :  { %v334_v21 = vmul.f32 %v886_v20, %v1130_v10  ;;  %895 = vrcp.f32 %v305_v56 }
 0x113   :  { %351 = vst.msk [vmem:[%s1386_s5 + $0x40] sm:$0xff] %vm49_vm0, %v331_v62  ;;  %805 = vmatprep.mubr.msk.f32.mxu1 %vm49_vm0, %v331_v62 }
 0x114   :  { %v888_v23 = vpop.eup %887  ;;  %354 = vst.msk [vmem:[%s1386_s5 + $0x58] sm:$0xff] %vm49_vm0, %v334_v21  ;;  %806 = vmatmul.mubr.msk.f32.gmra.mrb[8].mxu1 %vm49_vm0, %v332_v17 }
 0x115   :  { %v890_v3 = vpop.eup %889  ;;  %v333_v24 = vmul.f32 %v888_v23, %v1133_v15 }
 0x116   :  { %v336_v10 = vmul.f32 %v890_v3, %v1138_v22 }
 0x117   :  { %v892_v25 = vpop.eup %891  ;;  %353 = vst.msk [vmem:[%s1386_s5 + $0x50] sm:$0xff] %vm49_vm0, %v333_v24  ;;  %808 = vmatprep.mubr.msk.f32.mxu1 %vm49_vm0, %v333_v24 }
 0x118   :  { %356 = vst.msk [vmem:[%s1386_s5 + $0x68] sm:$0xff] %vm49_vm0, %v336_v10  ;;  %v335_v26 = vmul.f32 %v892_v25, %v1141_v27  ;;  %809 = vmatmul.mubr.msk.f32.gmra.mrb[10].mxu1 %vm49_vm0, %v334_v21  ;;  %v1252_v27 = vld [vmem:[%s1387_s4] ss:$0 sm:$0xff] }
 0x11a   :  { %355 = vst.msk [vmem:[%s1386_s5 + $0x60] sm:$0xff] %vm49_vm0, %v335_v26  ;;  %811 = vmatprep.mubr.msk.f32.mxu1 %vm49_vm0, %v335_v26 }
 0x11b   :  { %v894_v15 = vpop.eup %893 }
 0x11c   :  { %v896_v22 = vpop.eup %895  ;;  %v338_v29 = vmul.f32 %v894_v15, %v1146_v38  ;;  %812 = vmatmul.mubr.msk.f32.gmra.mrb[12].mxu1 %vm49_vm0, %v336_v10 }
 0x11d   :  { %v337_v31 = vmul.f32 %v896_v22, %v1149_v44 }
 0x11e   :  { %358 = vst.msk [vmem:[%s1386_s5 + $0x78] sm:$0xff] %vm49_vm0, %v338_v29 }
 0x11f   :  { %357 = vst.msk [vmem:[%s1386_s5 + $0x70] sm:$0xff] %vm49_vm0, %v337_v31  ;;  %814 = vmatprep.mubr.msk.f32.mxu1 %vm49_vm0, %v337_v31 }
 0x120   :  { %815 = vmatmul.mubr.msk.f32.gmra.mrb[14].mxu1 %vm49_vm0, %v338_v29 }
 0x1d5   :  { %v795_v33 = vpop.f32.mrb[0].mxu1 }
 0x1d6   :  { %v1255_v34 = vadd.f32 %v795_v33, %v1252_v27  ;;  %v480_v35 = vpop.f32.mrb[1].mxu1 }
 0x1d7   :  { %v1258_v36 = vadd.f32 %v1252_v27, %v480_v35 }
 0x1d8   :  { %v560_v38 = vsub.f32 0.0, %v1255_v34 }
 0x1d9   :  { %v559_v39 = vsub.f32 0.0, %v1258_v36  ;;  %v798_v41 = vpop.f32.mrb[2].mxu1 }
 0x1da   :  { %v577_v42 = vmul.f32 1.442695, %v560_v38  ;;  %v1263_v43 = vadd.f32 %v798_v41, %v1252_v27  ;;  %v490_v44 = vpop.f32.mrb[3].mxu1 }
 0x1db   :  { %v575_v46 = vmul.f32 1.442695, %v559_v39  ;;  %v1266_v47 = vadd.f32 %v1252_v27, %v490_v44 }
 0x1dc   :  { %897 = vpow2.f32 %v577_v42  ;;  %v562_v49 = vsub.f32 0.0, %v1263_v43 }
 0x1dd   :  { %899 = vpow2.f32 %v575_v46  ;;  %v561_v50 = vsub.f32 0.0, %v1266_v47  ;;  %v801_v51 = vpop.f32.mrb[4].mxu1 }
 0x1de   :  { %v581_v52 = vmul.f32 1.442695, %v562_v49  ;;  %v1271_v54 = vadd.f32 %v801_v51, %v1252_v27  ;;  %v500_v28 = vpop.f32.mrb[5].mxu1 }
 0x1df   :  { %v579_v55 = vmul.f32 1.442695, %v561_v50  ;;  %v1274_v57 = vadd.f32 %v1252_v27, %v500_v28 }
 0x1e0   :  { %901 = vpow2.f32 %v581_v52  ;;  %v564_v30 = vsub.f32 0.0, %v1271_v54 }
 0x1e1   :  { %903 = vpow2.f32 %v579_v55  ;;  %v563_v58 = vsub.f32 0.0, %v1274_v57 }
 0x1e2   :  { %v585_v32 = vmul.f32 1.442695, %v564_v30 }
 0x1e3   :  { %v583_v59 = vmul.f32 1.442695, %v563_v58  ;;  %v804_v60 = vpop.f32.mrb[6].mxu1 }
 0x1e4   :  { %905 = vpow2.f32 %v585_v32  ;;  %v1279_v61 = vadd.f32 %v804_v60, %v1252_v27  ;;  %v510_v63 = vpop.f32.mrb[7].mxu1 }
 0x1e5   :  { %907 = vpow2.f32 %v583_v59  ;;  %v1282_v0 = vadd.f32 %v1252_v27, %v510_v63 }
 0x1e6   :  { %v898_v1 = vpop.eup %897  ;;  %v566_v37 = vsub.f32 0.0, %v1279_v61 }
 0x1e7   :  { %v900_v40 = vpop.eup %899  ;;  %v608_v2 = vadd.f32 1.0, %v898_v1  ;;  %v565_v4 = vsub.f32 0.0, %v1282_v0  ;;  %v807_v5 = vpop.f32.mrb[8].mxu1 }
 0x1e8   :  { %v607_v6 = vadd.f32 1.0, %v900_v40  ;;  %v589_v7 = vmul.f32 1.442695, %v566_v37  ;;  %v1287_v8 = vadd.f32 %v807_v5, %v1252_v27  ;;  %v520_v45 = vpop.f32.mrb[9].mxu1 }
 0x1e9   :  { %909 = vrcp.f32 %v608_v2  ;;  %v587_v9 = vmul.f32 1.442695, %v565_v4  ;;  %v1290_v48 = vadd.f32 %v1252_v27, %v520_v45 }
 0x1ea   :  { %v902_v11 = vpop.eup %901  ;;  %911 = vrcp.f32 %v607_v6  ;;  %v568_v12 = vsub.f32 0.0, %v1287_v8 }
 0x1eb   :  { %v904_v13 = vpop.eup %903  ;;  %v610_v14 = vadd.f32 1.0, %v902_v11  ;;  %913 = vpow2.f32 %v589_v7  ;;  %v567_v16 = vsub.f32 0.0, %v1290_v48  ;;  %v810_v17 = vpop.f32.mrb[10].mxu1 }
 0x1ec   :  { %v609_v18 = vadd.f32 1.0, %v904_v13  ;;  %915 = vpow2.f32 %v587_v9  ;;  %v593_v53 = vmul.f32 1.442695, %v568_v12  ;;  %v1295_v19 = vadd.f32 %v810_v17, %v1252_v27  ;;  %v530_v56 = vpop.f32.mrb[11].mxu1 }
 0x1ed   :  { %917 = vrcp.f32 %v610_v14  ;;  %v591_v20 = vmul.f32 1.442695, %v567_v16  ;;  %v1298_v62 = vadd.f32 %v1252_v27, %v530_v56 }
 0x1ee   :  { %v906_v21 = vpop.eup %905  ;;  %919 = vrcp.f32 %v609_v18  ;;  %v570_v23 = vsub.f32 0.0, %v1295_v19 }
 0x1ef   :  { %v908_v3 = vpop.eup %907  ;;  %v612_v24 = vadd.f32 1.0, %v906_v21  ;;  %921 = vpow2.f32 %v593_v53  ;;  %v569_v10 = vsub.f32 0.0, %v1298_v62  ;;  %v813_v25 = vpop.f32.mrb[12].mxu1 }
 0x1f0   :  { %v611_v26 = vadd.f32 1.0, %v908_v3  ;;  %923 = vpow2.f32 %v591_v20  ;;  %v597_v15 = vmul.f32 1.442695, %v570_v23  ;;  %v1303_v22 = vadd.f32 %v813_v25, %v1252_v27  ;;  %v540_v29 = vpop.f32.mrb[13].mxu1 }
 0x1f1   :  { %925 = vrcp.f32 %v612_v24  ;;  %v595_v31 = vmul.f32 1.442695, %v569_v10  ;;  %v1306_v33 = vadd.f32 %v1252_v27, %v540_v29 }
 0x1f2   :  { %927 = vrcp.f32 %v611_v26  ;;  %v572_v35 = vsub.f32 0.0, %v1303_v22 }
 0x1f3   :  { %v910_v38 = vpop.eup %909  ;;  %929 = vpow2.f32 %v597_v15  ;;  %v571_v39 = vsub.f32 0.0, %v1306_v33  ;;  %v816_v41 = vpop.f32.mrb[14].mxu1 }
 0x1f4   :  { %v912_v42 = vpop.eup %911  ;;  %v640_v44 = vmul.f32 %v910_v38, %v1255_v34  ;;  %931 = vpow2.f32 %v595_v31  ;;  %v601_v46 = vmul.f32 1.442695, %v572_v35  ;;  %v1312_v49 = vadd.f32 %v816_v41, %v1252_v27  ;;  %v550_v50 = vpop.f32.mrb[15].mxu1 }
 0x1f5   :  { %v914_v51 = vpop.eup %913  ;;  %v639_v52 = vmul.f32 %v912_v42, %v1258_v36  ;;  %v599_v28 = vmul.f32 1.442695, %v571_v39  ;;  %v1316_v55 = vadd.f32 %v1252_v27, %v550_v50 }
 0x1f6   :  { %v916_v30 = vpop.eup %915  ;;  %656 = vst [vmem:[%s1388_s6 + $0x8] sm:$0xff] %v640_v44  ;;  %v614_v58 = vadd.f32 1.0, %v914_v51  ;;  %933 = vpow2.f32 %v601_v46  ;;  %v574_v34 = vsub.f32 0.0, %v1312_v49 }
 0x1f7   :  { %v918_v32 = vpop.eup %917  ;;  %655 = vst [vmem:[%s1388_s6] sm:$0xff] %v639_v52  ;;  %v613_v59 = vadd.f32 1.0, %v916_v30  ;;  %935 = vpow2.f32 %v599_v28  ;;  %v573_v36 = vsub.f32 0.0, %v1316_v55 }
 0x1f8   :  { %v920_v27 = vpop.eup %919  ;;  %v642_v60 = vmul.f32 %v918_v32, %v1263_v43  ;;  %937 = vrcp.f32 %v614_v58  ;;  %v605_v63 = vmul.f32 1.442695, %v574_v34 }
 0x1f9   :  { %v922_v1 = vpop.eup %921  ;;  %v641_v37 = vmul.f32 %v920_v27, %v1266_v47  ;;  %939 = vrcp.f32 %v613_v59  ;;  %v603_v40 = vmul.f32 1.442695, %v573_v36 }
 0x1fa   :  { %v924_v2 = vpop.eup %923  ;;  %658 = vst [vmem:[%s1388_s6 + $0x18] sm:$0xff] %v642_v60  ;;  %v616_v4 = vadd.f32 1.0, %v922_v1  ;;  %941 = vpow2.f32 %v605_v63 }
 0x1fb   :  { %v926_v5 = vpop.eup %925  ;;  %657 = vst [vmem:[%s1388_s6 + $0x10] sm:$0xff] %v641_v37  ;;  %v615_v43 = vadd.f32 1.0, %v924_v2  ;;  %943 = vpow2.f32 %v603_v40 }
 0x1fc   :  { %v928_v6 = vpop.eup %927  ;;  %v644_v7 = vmul.f32 %v926_v5, %v1271_v54  ;;  %945 = vrcp.f32 %v616_v4 }
 0x1fd   :  { %v930_v47 = vpop.eup %929  ;;  %v643_v45 = vmul.f32 %v928_v6, %v1274_v57  ;;  %947 = vrcp.f32 %v615_v43 }
 0x1fe   :  { %v932_v9 = vpop.eup %931  ;;  %660 = vst [vmem:[%s1388_s6 + $0x28] sm:$0xff] %v644_v7  ;;  %v618_v11 = vadd.f32 1.0, %v930_v47 }
 0x1ff   :  { %659 = vst [vmem:[%s1388_s6 + $0x20] sm:$0xff] %v643_v45  ;;  %v617_v12 = vadd.f32 1.0, %v932_v9 }
 0x200   :  { %v934_v13 = vpop.eup %933  ;;  %949 = vrcp.f32 %v618_v11 }
 0x201   :  { %v936_v14 = vpop.eup %935  ;;  %951 = vrcp.f32 %v617_v12  ;;  %v620_v54 = vadd.f32 1.0, %v934_v13 }
 0x202   :  { %v938_v16 = vpop.eup %937  ;;  %v619_v17 = vadd.f32 1.0, %v936_v14 }
 0x203   :  { %v940_v57 = vpop.eup %939  ;;  %v646_v18 = vmul.f32 %v938_v16, %v1279_v61  ;;  %953 = vrcp.f32 %v620_v54 }
 0x204   :  { %v942_v53 = vpop.eup %941  ;;  %v645_v56 = vmul.f32 %v940_v57, %v1282_v0  ;;  %955 = vrcp.f32 %v619_v17 }
 0x205   :  { %v944_v20 = vpop.eup %943  ;;  %662 = vst [vmem:[%s1388_s6 + $0x38] sm:$0xff] %v646_v18  ;;  %v622_v21 = vadd.f32 1.0, %v942_v53 }
 0x206   :  { %v946_v23 = vpop.eup %945  ;;  %661 = vst [vmem:[%s1388_s6 + $0x30] sm:$0xff] %v645_v56  ;;  %v621_v3 = vadd.f32 1.0, %v944_v20 }
 0x207   :  { %v948_v24 = vpop.eup %947  ;;  %v648_v61 = vmul.f32 %v946_v23, %v1287_v8  ;;  %957 = vrcp.f32 %v622_v21 }
 0x208   :  { %v647_v10 = vmul.f32 %v948_v24, %v1290_v48  ;;  %959 = vrcp.f32 %v621_v3 }
 0x209   :  { %664 = vst [vmem:[%s1388_s6 + $0x48] sm:$0xff] %v648_v61 }
 0x20a   :  { %v950_v0 = vpop.eup %949  ;;  %663 = vst [vmem:[%s1388_s6 + $0x40] sm:$0xff] %v647_v10 }
 0x20b   :  { %v952_v25 = vpop.eup %951  ;;  %v650_v26 = vmul.f32 %v950_v0, %v1295_v19 }
 0x20c   :  { %v649_v15 = vmul.f32 %v952_v25, %v1298_v62 }
 0x20d   :  { %v954_v29 = vpop.eup %953  ;;  %666 = vst [vmem:[%s1388_s6 + $0x58] sm:$0xff] %v650_v26 }
 0x20e   :  { %v956_v8 = vpop.eup %955  ;;  %665 = vst [vmem:[%s1388_s6 + $0x50] sm:$0xff] %v649_v15  ;;  %v652_v48 = vmul.f32 %v954_v29, %v1303_v22 }
 0x20f   :  { %v651_v31 = vmul.f32 %v956_v8, %v1306_v33 }
 0x210   :  { %668 = vst [vmem:[%s1388_s6 + $0x68] sm:$0xff] %v652_v48 }
 0x211   :  { %v958_v19 = vpop.eup %957  ;;  %667 = vst [vmem:[%s1388_s6 + $0x60] sm:$0xff] %v651_v31 }
 0x212   :  { %v960_v62 = vpop.eup %959  ;;  %v654_v35 = vmul.f32 %v958_v19, %v1312_v49 }
 0x213   :  { %v653_v38 = vmul.f32 %v960_v62, %v1316_v55 }
 0x214   :  { %670 = vst [vmem:[%s1388_s6 + $0x78] sm:$0xff] %v654_v35 }
 0x215   :  { %669 = vst [vmem:[%s1388_s6 + $0x70] sm:$0xff] %v653_v38 }

// kernel: efficientnet_binary_forward.11
= control target key start
LH: loop header
LB: loop body
LE: loop exit
PB: predicated region body
PF: predicated region fallthrough
CT: control target
= control target key end

     0   :  { %v1160_v43 = vmov 1983009808   ;;  %v208_v45 = vlaneseq  ;;  %s1776_s0 = inlined_call_operand.vmem [shape: f32[2,1408], index: 0, kind: input, shape index: {}]   ;;  %s1777_s1 = inlined_call_operand.vmem [shape: f32[1408,4], index: 1, kind: input, shape index: {}]   ;;  %s1778_s2 = inlined_call_operand.vmem [shape: f32[1,4], index: 2, kind: input, shape index: {}]   ;;  %s1779_s3 = inlined_call_operand.hbm [shape: f32[2,4], index: 3, kind: output, shape index: {}]  }
   0x1   :  { %v34_v0 = vld [vmem:[%s1777_s1 + $0x80] sm:$0xff]  ;;  %v35_v1 = vld [vmem:[%s1777_s1 + $0x88] sm:$0xff]  ;;  %v36_v11 = vld [vmem:[%s1777_s1 + $0x90] sm:$0xff]  ;;  %v206_v44 = vunpack.c.l.s4 %v1160_v43 }
   0x2   :  { %v18_v2 = vld [vmem:[%s1777_s1] sm:$0xff]  ;;  %v940_v3 = vpack.c.bf16 %v35_v1, %v34_v0  ;;  %v19_v4 = vld [vmem:[%s1777_s1 + $0x8] sm:$0xff]  ;;  %v37_v13 = vld [vmem:[%s1777_s1 + $0x98] sm:$0xff]  ;;  %v209_v60 = vshrl.u32 %v208_v45, 7 }
   0x3   :  { %v66_v5 = vld [vmem:[%s1777_s1 + $0x180] sm:$0xff]  ;;  %v67_v6 = vld [vmem:[%s1777_s1 + $0x188] sm:$0xff]  ;;  %v942_v7 = vpack.c.bf16 %v19_v4, %v18_v2  ;;  %v20_v14 = vld [vmem:[%s1777_s1 + $0x10] sm:$0xff]  ;;  %v944_v16 = vpack.c.bf16 %v37_v13, %v36_v11  ;;  %v207_v59 = vunpack.c.0.s8 %v206_v44 }
   0x4   :  { %v972_v8 = vpack.c.bf16 %v67_v6, %v66_v5  ;;  %v50_v9 = vld [vmem:[%s1777_s1 + $0x100] sm:$0xff]  ;;  %v51_v10 = vld [vmem:[%s1777_s1 + $0x108] sm:$0xff]  ;;  %941 = vmatprep.subr.bf16.mxu0 %v940_v3  ;;  %v21_v15 = vld [vmem:[%s1777_s1 + $0x18] sm:$0xff] }
   0x5   :  { %v974_v12 = vpack.c.bf16 %v51_v10, %v50_v9  ;;  %943 = vmatpush3.bf16.msra.mxu0 %v942_v7  ;;  %v946_v17 = vpack.c.bf16 %v21_v15, %v20_v14  ;;  %v68_v18 = vld [vmem:[%s1777_s1 + $0x190] sm:$0xff]  ;;  %v69_v19 = vld [vmem:[%s1777_s1 + $0x198] sm:$0xff]  ;;  %v38_v23 = vld [vmem:[%s1777_s1 + $0xa0] sm:$0xff]  ;;  %v1329_v10 = vsub.s32 %v207_v59, %v209_v60 }
   0x6   :  { %973 = vmatprep.subr.bf16.mxu1 %v972_v8  ;;  %v52_v20 = vld [vmem:[%s1777_s1 + $0x110] sm:$0xff]  ;;  %v976_v21 = vpack.c.bf16 %v69_v19, %v68_v18  ;;  %v53_v22 = vld [vmem:[%s1777_s1 + $0x118] sm:$0xff]  ;;  %v39_v24 = vld [vmem:[%s1777_s1 + $0xa8] sm:$0xff]  ;;  %945 = vmatprep.subr.bf16.mxu0 %v944_v16 }
   0x7   :  { %975 = vmatpush3.bf16.msra.mxu1 %v974_v12  ;;  %v978_v25 = vpack.c.bf16 %v53_v22, %v52_v20  ;;  %v948_v26 = vpack.c.bf16 %v39_v24, %v38_v23  ;;  %v22_v27 = vld [vmem:[%s1777_s1 + $0x20] sm:$0xff]  ;;  %v23_v28 = vld [vmem:[%s1777_s1 + $0x28] sm:$0xff]  ;;  %v40_v35 = vld [vmem:[%s1777_s1 + $0xb0] sm:$0xff] }
   0x8   :  { %v70_v29 = vld [vmem:[%s1777_s1 + $0x1a0] sm:$0xff]  ;;  %977 = vmatprep.subr.bf16.mxu1 %v976_v21  ;;  %v71_v30 = vld [vmem:[%s1777_s1 + $0x1a8] sm:$0xff]  ;;  %v950_v33 = vpack.c.bf16 %v23_v28, %v22_v27  ;;  %v41_v36 = vld [vmem:[%s1777_s1 + $0xb8] sm:$0xff] }
   0x9   :  { %v54_v31 = vld [vmem:[%s1777_s1 + $0x120] sm:$0xff]  ;;  %v55_v32 = vld [vmem:[%s1777_s1 + $0x128] sm:$0xff]  ;;  %947 = vmatpush3.bf16.msra.mxu0 %v946_v17  ;;  %v980_v34 = vpack.c.bf16 %v71_v30, %v70_v29  ;;  %v24_v37 = vld [vmem:[%s1777_s1 + $0x30] sm:$0xff]  ;;  %v952_v39 = vpack.c.bf16 %v41_v36, %v40_v35 }
   0xa   :  { %949 = vmatprep.subr.bf16.mxu0 %v948_v26  ;;  %v982_v38 = vpack.c.bf16 %v55_v32, %v54_v31  ;;  %v25_v40 = vld [vmem:[%s1777_s1 + $0x38] sm:$0xff]  ;;  %v72_v41 = vld [vmem:[%s1777_s1 + $0x1b0] sm:$0xff]  ;;  %v42_v49 = vld [vmem:[%s1777_s1 + $0xc0] sm:$0xff] }
   0xb   :  { %979 = vmatpush3.bf16.msra.mxu1 %v978_v25  ;;  %v73_v42 = vld [vmem:[%s1777_s1 + $0x1b8] sm:$0xff]  ;;  %v56_v47 = vld [vmem:[%s1777_s1 + $0x130] sm:$0xff]  ;;  %v43_v50 = vld [vmem:[%s1777_s1 + $0xc8] sm:$0xff]  ;;  %v954_v51 = vpack.c.bf16 %v25_v40, %v24_v37 }
   0xc   :  { %981 = vmatprep.subr.bf16.mxu1 %v980_v34  ;;  %v984_v46 = vpack.c.bf16 %v73_v42, %v72_v41  ;;  %v57_v48 = vld [vmem:[%s1777_s1 + $0x138] sm:$0xff]  ;;  %v74_v52 = vld [vmem:[%s1777_s1 + $0x1c0] sm:$0xff]  ;;  %v75_v53 = vld [vmem:[%s1777_s1 + $0x1c8] sm:$0xff]  ;;  %v956_v55 = vpack.c.bf16 %v43_v50, %v42_v49 }
   0xd   :  { %951 = vmatpush3.bf16.msra.mxu0 %v950_v33  ;;  %v986_v54 = vpack.c.bf16 %v57_v48, %v56_v47  ;;  %v26_v56 = vld [vmem:[%s1777_s1 + $0x40] sm:$0xff]  ;;  %v27_v57 = vld [vmem:[%s1777_s1 + $0x48] sm:$0xff]  ;;  %v988_v61 = vpack.c.bf16 %v75_v53, %v74_v52  ;;  %v44_v63 = vld [vmem:[%s1777_s1 + $0xd0] sm:$0xff] }
   0xe   :  { %953 = vmatprep.subr.bf16.mxu0 %v952_v39  ;;  %v58_v58 = vld [vmem:[%s1777_s1 + $0x140] sm:$0xff]  ;;  %v59_v62 = vld [vmem:[%s1777_s1 + $0x148] sm:$0xff]  ;;  %v45_v0 = vld [vmem:[%s1777_s1 + $0xd8] sm:$0xff]  ;;  %v958_v3 = vpack.c.bf16 %v27_v57, %v26_v56 }
   0xf   :  { %983 = vmatpush3.bf16.msra.mxu1 %v982_v38  ;;  %v76_v1 = vld [vmem:[%s1777_s1 + $0x1d0] sm:$0xff]  ;;  %v77_v2 = vld [vmem:[%s1777_s1 + $0x1d8] sm:$0xff]  ;;  %v990_v5 = vpack.c.bf16 %v59_v62, %v58_v58  ;;  %v960_v6 = vpack.c.bf16 %v45_v0, %v44_v63  ;;  %v46_v12 = vld [vmem:[%s1777_s1 + $0xe0] sm:$0xff] }
  0x10   :  { %985 = vmatprep.subr.bf16.mxu1 %v984_v46  ;;  %v28_v4 = vld [vmem:[%s1777_s1 + $0x50] sm:$0xff]  ;;  %v29_v7 = vld [vmem:[%s1777_s1 + $0x58] sm:$0xff]  ;;  %v992_v11 = vpack.c.bf16 %v77_v2, %v76_v1  ;;  %v47_v13 = vld [vmem:[%s1777_s1 + $0xe8] sm:$0xff] }
  0x11   :  { %955 = vmatpush3.bf16.msra.mxu0 %v954_v51  ;;  %v60_v8 = vld [vmem:[%s1777_s1 + $0x150] sm:$0xff]  ;;  %v61_v9 = vld [vmem:[%s1777_s1 + $0x158] sm:$0xff]  ;;  %v78_v14 = vld [vmem:[%s1777_s1 + $0x1e0] sm:$0xff]  ;;  %v962_v16 = vpack.c.bf16 %v29_v7, %v28_v4  ;;  %v964_v19 = vpack.c.bf16 %v47_v13, %v46_v12 }
  0x12   :  { %957 = vmatprep.subr.bf16.mxu0 %v956_v55  ;;  %v79_v15 = vld [vmem:[%s1777_s1 + $0x1e8] sm:$0xff]  ;;  %v994_v17 = vpack.c.bf16 %v61_v9, %v60_v8  ;;  %v15_v18 = vld [vmem:[%s1776_s0] sm:$0xff]  ;;  %v48_v27 = vld [vmem:[%s1777_s1 + $0xf0] sm:$0xff] }
  0x13   :  { %987 = vmatpush3.bf16.msra.mxu1 %v986_v54  ;;  %v30_v20 = vld [vmem:[%s1777_s1 + $0x60] sm:$0xff]  ;;  %v31_v21 = vld [vmem:[%s1777_s1 + $0x68] sm:$0xff]  ;;  %v211_v23 = vrot.slane %v15_v18, %v1329_v10  ;;  %v204_v24 = vcombine.high %v15_v18, %v15_v18  ;;  %v996_v25 = vpack.c.bf16 %v79_v15, %v78_v14  ;;  %v49_v28 = vld [vmem:[%s1777_s1 + $0xf8] sm:$0xff] }
  0x14   :  { %989 = vmatprep.subr.bf16.mxu1 %v988_v61  ;;  %v62_v22 = vld [vmem:[%s1777_s1 + $0x160] sm:$0xff]  ;;  %v63_v26 = vld [vmem:[%s1777_s1 + $0x168] sm:$0xff]  ;;  %v80_v29 = vld [vmem:[%s1777_s1 + $0x1f0] sm:$0xff]  ;;  %v966_v33 = vpack.c.bf16 %v31_v21, %v30_v20  ;;  %v968_v35 = vpack.c.bf16 %v49_v28, %v48_v27 }
  0x15   :  { %959 = vmatpush3.bf16.msra.mxu0 %v958_v3  ;;  %v81_v30 = vld [vmem:[%s1777_s1 + $0x1f8] sm:$0xff]  ;;  %v219_v31 = vcombine.high %v211_v23, %v211_v23  ;;  %v218_v32 = vrot.slane %v204_v24, %v1329_v10  ;;  %v998_v34 = vpack.c.bf16 %v63_v26, %v62_v22  ;;  %v32_v36 = vld [vmem:[%s1777_s1 + $0x70] sm:$0xff]  ;;  %v98_v42 = vld [vmem:[%s1777_s1 + $0x280] sm:$0xff] }
  0x16   :  { %961 = vmatprep.subr.bf16.mxu0 %v960_v6  ;;  %v33_v37 = vld [vmem:[%s1777_s1 + $0x78] sm:$0xff]  ;;  %v64_v38 = vld [vmem:[%s1777_s1 + $0x170] sm:$0xff]  ;;  %v1000_v40 = vpack.c.bf16 %v81_v30, %v80_v29  ;;  %v99_v43 = vld [vmem:[%s1777_s1 + $0x288] sm:$0xff] }
  0x17   :  { %991 = vmatpush3.bf16.msra.mxu1 %v990_v5  ;;  %v220_v39 = vcombine.high %v218_v32, %v218_v32  ;;  %329 = vmatprep.mubr.f32.mxu0 %v219_v31  ;;  %v65_v41 = vld [vmem:[%s1777_s1 + $0x178] sm:$0xff]  ;;  %v130_v44 = vld [vmem:[%s1777_s1 + $0x380] sm:$0xff]  ;;  %v131_v45 = vld [vmem:[%s1777_s1 + $0x388] sm:$0xff]  ;;  %v970_v46 = vpack.c.bf16 %v33_v37, %v32_v36  ;;  %v1004_v48 = vpack.c.bf16 %v99_v43, %v98_v42 }
  0x18   :  { %993 = vmatprep.subr.bf16.mxu1 %v992_v11  ;;  %v1002_v47 = vpack.c.bf16 %v65_v41, %v64_v38  ;;  %v82_v49 = vld [vmem:[%s1777_s1 + $0x200] sm:$0xff]  ;;  %v83_v50 = vld [vmem:[%s1777_s1 + $0x208] sm:$0xff]  ;;  %v1036_v52 = vpack.c.bf16 %v131_v45, %v130_v44  ;;  %v100_v54 = vld [vmem:[%s1777_s1 + $0x290] sm:$0xff] }
  0x19   :  { %963 = vmatpush3.bf16.msra.mxu0 %v962_v16  ;;  %399 = vmatprep.mubr.f32.mxu1 %v220_v39  ;;  %v114_v51 = vld [vmem:[%s1777_s1 + $0x300] sm:$0xff]  ;;  %v115_v53 = vld [vmem:[%s1777_s1 + $0x308] sm:$0xff]  ;;  %v101_v55 = vld [vmem:[%s1777_s1 + $0x298] sm:$0xff]  ;;  %v1006_v58 = vpack.c.bf16 %v83_v50, %v82_v49 }
  0x1a   :  { %965 = vmatprep.subr.bf16.mxu0 %v964_v19  ;;  %v132_v56 = vld [vmem:[%s1777_s1 + $0x390] sm:$0xff]  ;;  %v133_v57 = vld [vmem:[%s1777_s1 + $0x398] sm:$0xff]  ;;  %v1038_v59 = vpack.c.bf16 %v115_v53, %v114_v51  ;;  %v1008_v60 = vpack.c.bf16 %v101_v55, %v100_v54  ;;  %v102_v2 = vld [vmem:[%s1777_s1 + $0x2a0] sm:$0xff] }
  0x1b   :  { %995 = vmatpush3.bf16.msra.mxu1 %v994_v17  ;;  %v84_v61 = vld [vmem:[%s1777_s1 + $0x210] sm:$0xff]  ;;  %v85_v62 = vld [vmem:[%s1777_s1 + $0x218] sm:$0xff]  ;;  %v1040_v0 = vpack.c.bf16 %v133_v57, %v132_v56  ;;  %v103_v3 = vld [vmem:[%s1777_s1 + $0x2a8] sm:$0xff] }
  0x1c   :  { %997 = vmatprep.subr.bf16.mxu1 %v996_v25  ;;  %v116_v63 = vld [vmem:[%s1777_s1 + $0x310] sm:$0xff]  ;;  %v117_v1 = vld [vmem:[%s1777_s1 + $0x318] sm:$0xff]  ;;  %v134_v4 = vld [vmem:[%s1777_s1 + $0x3a0] sm:$0xff]  ;;  %v1010_v6 = vpack.c.bf16 %v85_v62, %v84_v61  ;;  %v1012_v8 = vpack.c.bf16 %v103_v3, %v102_v2 }
  0x1d   :  { %967 = vmatpush3.bf16.msra.mxu0 %v966_v33  ;;  %v135_v5 = vld [vmem:[%s1777_s1 + $0x3a8] sm:$0xff]  ;;  %v1042_v7 = vpack.c.bf16 %v117_v1, %v116_v63  ;;  %v86_v9 = vld [vmem:[%s1777_s1 + $0x220] sm:$0xff]  ;;  %v104_v15 = vld [vmem:[%s1777_s1 + $0x2b0] sm:$0xff] }
  0x1e   :  { %969 = vmatprep.subr.bf16.mxu0 %v968_v35  ;;  %v87_v11 = vld [vmem:[%s1777_s1 + $0x228] sm:$0xff]  ;;  %v118_v12 = vld [vmem:[%s1777_s1 + $0x320] sm:$0xff]  ;;  %v1044_v13 = vpack.c.bf16 %v135_v5, %v134_v4  ;;  %v105_v16 = vld [vmem:[%s1777_s1 + $0x2b8] sm:$0xff] }
  0x1f   :  { %999 = vmatpush3.bf16.msra.mxu1 %v998_v34  ;;  %v119_v14 = vld [vmem:[%s1777_s1 + $0x328] sm:$0xff]  ;;  %v136_v17 = vld [vmem:[%s1777_s1 + $0x3b0] sm:$0xff]  ;;  %v137_v18 = vld [vmem:[%s1777_s1 + $0x3b8] sm:$0xff]  ;;  %v1014_v19 = vpack.c.bf16 %v87_v11, %v86_v9  ;;  %v1016_v22 = vpack.c.bf16 %v105_v16, %v104_v15 }
  0x20   :  { %1001 = vmatprep.subr.bf16.mxu1 %v1000_v40  ;;  %v88_v20 = vld [vmem:[%s1777_s1 + $0x230] sm:$0xff]  ;;  %v1046_v21 = vpack.c.bf16 %v119_v14, %v118_v12  ;;  %v121_v25 = vld [vmem:[%s1777_s1 + $0x338] sm:$0xff]  ;;  %v1048_v26 = vpack.c.bf16 %v137_v18, %v136_v17  ;;  %v106_v27 = vld [vmem:[%s1777_s1 + $0x2c0] sm:$0xff] }
  0x21   :  { %971 = vmatpush3.bf16.msra.mxu0 %v970_v46  ;;  %v120_v24 = vld [vmem:[%s1777_s1 + $0x330] sm:$0xff]  ;;  %v107_v28 = vld [vmem:[%s1777_s1 + $0x2c8] sm:$0xff]  ;;  %v138_v30 = vld [vmem:[%s1777_s1 + $0x3c0] sm:$0xff] }
  0x22   :  { %1005 = vmatprep.subr.bf16.mxu0 %v1004_v48  ;;  %v16_v29 = vld [vmem:[%s1776_s0 + $0x8] sm:$0xff]  ;;  %v1050_v35 = vpack.c.bf16 %v121_v25, %v120_v24  ;;  %v1020_v36 = vpack.c.bf16 %v107_v28, %v106_v27  ;;  %v90_v37 = vld [vmem:[%s1777_s1 + $0x240] sm:$0xff]  ;;  %v108_v44 = vld [vmem:[%s1777_s1 + $0x2d0] sm:$0xff] }
  0x23   :  { %1003 = vmatpush3.bf16.msra.mxu1 %v1002_v47  ;;  %v139_v31 = vld [vmem:[%s1777_s1 + $0x3c8] sm:$0xff]  ;;  %v221_v33 = vcombine.high %v16_v29, %v16_v29  ;;  %v122_v39 = vld [vmem:[%s1777_s1 + $0x340] sm:$0xff]  ;;  %v109_v45 = vld [vmem:[%s1777_s1 + $0x2d8] sm:$0xff] }
  0x24   :  { %1037 = vmatprep.subr.bf16.mxu1 %v1036_v52  ;;  %330 = vmatmul.mubr.f32.vlgmr.msra.gmra.mrb[0].mxu0 %v211_v23  ;;  %v89_v23 = vld [vmem:[%s1777_s1 + $0x238] sm:$0xff]  ;;  %v91_v38 = vld [vmem:[%s1777_s1 + $0x248] sm:$0xff]  ;;  %v1052_v42 = vpack.c.bf16 %v139_v31, %v138_v30  ;;  %v140_v46 = vld [vmem:[%s1777_s1 + $0x3d0] sm:$0xff]  ;;  %v1024_v51 = vpack.c.bf16 %v109_v45, %v108_v44 }
  0x25   :  { %1007 = vmatpush3.bf16.msra.mxu0 %v1006_v58  ;;  %v1018_v34 = vpack.c.bf16 %v89_v23, %v88_v20  ;;  %v1510_v41 = vrot.slane %v221_v33, %v1329_v10  ;;  %v123_v43 = vld [vmem:[%s1777_s1 + $0x348] sm:$0xff]  ;;  %v141_v47 = vld [vmem:[%s1777_s1 + $0x3d8] sm:$0xff]  ;;  %v1022_v49 = vpack.c.bf16 %v91_v38, %v90_v37  ;;  %v92_v52 = vld [vmem:[%s1777_s1 + $0x250] sm:$0xff] }
  0x26   :  { %400 = vmatmul.mubr.f32.vlgmr.msra.gmra.mrb[0].mxu1 %v218_v32  ;;  %1009 = vmatprep.subr.bf16.mxu0 %v1008_v60  ;;  %v1496_v32 = vrot.slane %v16_v29, %v1329_v10  ;;  %v1054_v50 = vpack.c.bf16 %v123_v43, %v122_v39  ;;  %v93_v53 = vld [vmem:[%s1777_s1 + $0x258] sm:$0xff]  ;;  %v124_v54 = vld [vmem:[%s1777_s1 + $0x350] sm:$0xff]  ;;  %v1056_v55 = vpack.c.bf16 %v141_v47, %v140_v46  ;;  %v110_v57 = vld [vmem:[%s1777_s1 + $0x2e0] sm:$0xff] }
  0x27   :  { %1039 = vmatpush3.bf16.msra.mxu1 %v1038_v59  ;;  %v237_v48 = vcombine.high %v1510_v41, %v1510_v41  ;;  %v125_v56 = vld [vmem:[%s1777_s1 + $0x358] sm:$0xff]  ;;  %v111_v58 = vld [vmem:[%s1777_s1 + $0x2e8] sm:$0xff]  ;;  %v142_v59 = vld [vmem:[%s1777_s1 + $0x3e0] sm:$0xff]  ;;  %v1026_v61 = vpack.c.bf16 %v93_v53, %v92_v52 }
  0x28   :  { %1041 = vmatprep.subr.bf16.mxu1 %v1040_v0  ;;  %v236_v40 = vcombine.high %v1496_v32, %v1496_v32  ;;  %v143_v60 = vld [vmem:[%s1777_s1 + $0x3e8] sm:$0xff]  ;;  %v1058_v62 = vpack.c.bf16 %v125_v56, %v124_v54  ;;  %v1028_v63 = vpack.c.bf16 %v111_v58, %v110_v57  ;;  %v94_v0 = vld [vmem:[%s1777_s1 + $0x260] sm:$0xff]  ;;  %v112_v5 = vld [vmem:[%s1777_s1 + $0x2f0] sm:$0xff] }
  0x29   :  { %1011 = vmatpush3.bf16.msra.mxu0 %v1010_v6  ;;  %539 = vmatprep.mubr.f32.mxu1 %v237_v48  ;;  %v95_v1 = vld [vmem:[%s1777_s1 + $0x268] sm:$0xff]  ;;  %v126_v2 = vld [vmem:[%s1777_s1 + $0x360] sm:$0xff]  ;;  %v1060_v3 = vpack.c.bf16 %v143_v60, %v142_v59  ;;  %v113_v6 = vld [vmem:[%s1777_s1 + $0x2f8] sm:$0xff] }
  0x2a   :  { %1013 = vmatprep.subr.bf16.mxu0 %v1012_v8  ;;  %469 = vmatprep.mubr.f32.mxu0 %v236_v40  ;;  %v127_v4 = vld [vmem:[%s1777_s1 + $0x368] sm:$0xff]  ;;  %v145_v8 = vld [vmem:[%s1777_s1 + $0x3f8] sm:$0xff]  ;;  %v1030_v9 = vpack.c.bf16 %v95_v1, %v94_v0  ;;  %v1032_v12 = vpack.c.bf16 %v113_v6, %v112_v5  ;;  %v128_v15 = vld [vmem:[%s1777_s1 + $0x370] sm:$0xff] }
  0x2b   :  { %1043 = vmatpush3.bf16.msra.mxu1 %v1042_v7  ;;  %v144_v7 = vld [vmem:[%s1777_s1 + $0x3f0] sm:$0xff]  ;;  %v1062_v11 = vpack.c.bf16 %v127_v4, %v126_v2  ;;  %v97_v14 = vld [vmem:[%s1777_s1 + $0x278] sm:$0xff]  ;;  %v162_v18 = vld [vmem:[%s1777_s1 + $0x480] sm:$0xff] }
  0x2c   :  { %1045 = vmatprep.subr.bf16.mxu1 %v1044_v13  ;;  %v96_v13 = vld [vmem:[%s1777_s1 + $0x270] sm:$0xff]  ;;  %v1064_v16 = vpack.c.bf16 %v145_v8, %v144_v7  ;;  %v129_v17 = vld [vmem:[%s1777_s1 + $0x378] sm:$0xff] }
  0x2d   :  { %1015 = vmatpush3.bf16.msra.mxu0 %v1014_v19  ;;  %v163_v19 = vld [vmem:[%s1777_s1 + $0x488] sm:$0xff]  ;;  %v1598_v20 = vld [vmem:[%s1776_s0 + $0x10] sm:$0x3f] }
  0x2e   :  { %1017 = vmatprep.subr.bf16.mxu0 %v1016_v22 }
  0x2f   :  { %1047 = vmatpush3.bf16.msra.mxu1 %v1046_v21 }
  0x30   :  { %1049 = vmatprep.subr.bf16.mxu1 %v1048_v26 }
  0x31   :  { %1019 = vmatpush3.bf16.msra.mxu0 %v1018_v34 }
  0x32   :  { %1021 = vmatprep.subr.bf16.mxu0 %v1020_v36 }
  0x33   :  { %1051 = vmatpush3.bf16.msra.mxu1 %v1050_v35 }
  0x34   :  { %1053 = vmatprep.subr.bf16.mxu1 %v1052_v42 }
  0x35   :  { %1023 = vmatpush3.bf16.msra.mxu0 %v1022_v49 }
  0x36   :  { %1025 = vmatprep.subr.bf16.mxu0 %v1024_v51 }
  0x37   :  { %1055 = vmatpush3.bf16.msra.mxu1 %v1054_v50 }
  0x38   :  { %1057 = vmatprep.subr.bf16.mxu1 %v1056_v55 }
  0x39   :  { %1027 = vmatpush3.bf16.msra.mxu0 %v1026_v61 }
  0x3a   :  { %1029 = vmatprep.subr.bf16.mxu0 %v1028_v63 }
  0x3b   :  { %1059 = vmatpush3.bf16.msra.mxu1 %v1058_v62 }
  0x3c   :  { %1061 = vmatprep.subr.bf16.mxu1 %v1060_v3 }
  0x3d   :  { %8 = vsyncpa [#allocation3], 0  ;;  %1031 = vmatpush3.bf16.msra.mxu0 %v1030_v9  ;;  %v1034_v21 = vpack.c.bf16 %v97_v14, %v96_v13  ;;  %v1066_v22 = vpack.c.bf16 %v129_v17, %v128_v15  ;;  %v1068_v23 = vpack.c.bf16 %v163_v19, %v162_v18  ;;  %v146_v24 = vld [vmem:[%s1777_s1 + $0x400] sm:$0xff]  ;;  %v147_v25 = vld [vmem:[%s1777_s1 + $0x408] sm:$0xff]  ;;  %v1620_v30 = vrot.slane %v1598_v20, %v1329_v10 }
  0x3e   :  { %1033 = vmatprep.subr.bf16.mxu0 %v1032_v12  ;;  %v164_v26 = vld [vmem:[%s1777_s1 + $0x490] sm:$0xff]  ;;  %v165_v27 = vld [vmem:[%s1777_s1 + $0x498] sm:$0xff]  ;;  %v178_v28 = vld [vmem:[%s1777_s1 + $0x500] sm:$0xff]  ;;  %v1070_v31 = vpack.c.bf16 %v147_v25, %v146_v24  ;;  %v1161_v38 = vmov 0.0|0.0   ;;  %vm1162_vm0 = vmmov 0   ;;  %v1163_v51 = vmov 0.0  }
  0x3f   :  { %1063 = vmatpush3.bf16.msra.mxu1 %v1062_v11  ;;  %v179_v29 = vld [vmem:[%s1777_s1 + $0x508] sm:$0xff]  ;;  %v1072_v33 = vpack.c.bf16 %v165_v27, %v164_v26  ;;  %v148_v34 = vld [vmem:[%s1777_s1 + $0x410] sm:$0xff]  ;;  %v149_v35 = vld [vmem:[%s1777_s1 + $0x418] sm:$0xff]  ;;  %v253_v43 = vcombine.high %v1620_v30, %v1620_v30  ;;  %vm685_vm1 = vcmask 25600  }
  0x40   :  { %1065 = vmatprep.subr.bf16.mxu1 %v1064_v16  ;;  %v1101_v36 = vpack.c.bf16 %v179_v29, %v178_v28  ;;  %v166_v37 = vld [vmem:[%s1777_s1 + $0x4a0] sm:$0xff]  ;;  %v167_v39 = vld [vmem:[%s1777_s1 + $0x4a8] sm:$0xff]  ;;  %v180_v40 = vld [vmem:[%s1777_s1 + $0x510] sm:$0xff]  ;;  %v1074_v44 = vpack.c.bf16 %v149_v35, %v148_v34 }
  0x41   :  { %1035 = vmatpush3.bf16.msra.mxu0 %v1034_v21  ;;  %v181_v42 = vld [vmem:[%s1777_s1 + $0x518] sm:$0xff]  ;;  %v1076_v45 = vpack.c.bf16 %v167_v39, %v166_v37  ;;  %v150_v46 = vld [vmem:[%s1777_s1 + $0x420] sm:$0xff]  ;;  %v151_v47 = vld [vmem:[%s1777_s1 + $0x428] sm:$0xff] }
  0x42   :  { %1069 = vmatprep.subr.bf16.mxu0 %v1068_v23  ;;  %v1104_v48 = vpack.c.bf16 %v181_v42, %v180_v40  ;;  %v182_v49 = vld [vmem:[%s1777_s1 + $0x520] sm:$0xff]  ;;  %v183_v50 = vld [vmem:[%s1777_s1 + $0x528] sm:$0xff]  ;;  %v1078_v52 = vpack.c.bf16 %v151_v47, %v150_v46  ;;  %v152_v54 = vld [vmem:[%s1777_s1 + $0x430] sm:$0xff] }
  0x43   :  { %1067 = vmatpush3.bf16.msra.mxu1 %v1066_v22  ;;  %v153_v55 = vld [vmem:[%s1777_s1 + $0x438] sm:$0xff]  ;;  %v1107_v56 = vpack.c.bf16 %v183_v50, %v182_v49  ;;  %v170_v57 = vld [vmem:[%s1777_s1 + $0x4c0] sm:$0xff]  ;;  %v171_v58 = vld [vmem:[%s1777_s1 + $0x4c8] sm:$0xff] }
  0x44   :  { %1100 = vmatprep.subr.bf16.mxu1 %v1161_v38  ;;  %470 = vmatmul.mubr.f32.vlgmr.msra.gmra.mrb[2].mxu0 %v1496_v32  ;;  %v168_v32 = vld [vmem:[%s1777_s1 + $0x4b0] sm:$0xff]  ;;  %v185_v60 = vld [vmem:[%s1777_s1 + $0x538] sm:$0xff]  ;;  %v1082_v61 = vpack.c.bf16 %v153_v55, %v152_v54  ;;  %v1084_v62 = vpack.c.bf16 %v171_v58, %v170_v57  ;;  %v154_v63 = vld [vmem:[%s1777_s1 + $0x440] sm:$0xff] }
  0x45   :  { %1071 = vmatpush3.bf16.msra.mxu0 %v1070_v31  ;;  %609 = vmatprep.mubr.f32.mxu0 %v253_v43  ;;  %v184_v59 = vld [vmem:[%s1777_s1 + $0x530] sm:$0xff]  ;;  %v155_v0 = vld [vmem:[%s1777_s1 + $0x448] sm:$0xff]  ;;  %v173_v3 = vld [vmem:[%s1777_s1 + $0x4d8] sm:$0xff] }
  0x46   :  { %540 = vmatmul.mubr.f32.vlgmr.msra.gmra.mrb[2].mxu1 %v1510_v41  ;;  %1073 = vmatprep.subr.bf16.mxu0 %v1072_v33  ;;  %v169_v41 = vld [vmem:[%s1777_s1 + $0x4b8] sm:$0xff]  ;;  %v1110_v1 = vpack.c.bf16 %v185_v60, %v184_v59  ;;  %v172_v2 = vld [vmem:[%s1777_s1 + $0x4d0] sm:$0xff]  ;;  %v186_v4 = vld [vmem:[%s1777_s1 + $0x540] sm:$0xff]  ;;  %v1086_v6 = vpack.c.bf16 %v155_v0, %v154_v63 }
  0x47   :  { %1102 = vmatpush3.bf16.msra.mxu1 %v1101_v36  ;;  %937 = vmatprep.mubr.msk.f32.mxu1 %vm1162_vm0, %v1163_v51  ;;  %v1080_v53 = vpack.c.bf16 %v169_v41, %v168_v32  ;;  %v187_v5 = vld [vmem:[%s1777_s1 + $0x548] sm:$0xff]  ;;  %v1088_v7 = vpack.c.bf16 %v173_v3, %v172_v2  ;;  %v156_v8 = vld [vmem:[%s1777_s1 + $0x450] sm:$0xff]  ;;  %v157_v9 = vld [vmem:[%s1777_s1 + $0x458] sm:$0xff]  ;;  %v238_v36 = vcombine.high %v1598_v20, %v1598_v20 }
  0x48   :  { %1103 = vmatprep.subr.bf16.mxu1 %v1161_v38  ;;  %v1113_v11 = vpack.c.bf16 %v187_v5, %v186_v4  ;;  %v174_v12 = vld [vmem:[%s1777_s1 + $0x4e0] sm:$0xff]  ;;  %v175_v13 = vld [vmem:[%s1777_s1 + $0x4e8] sm:$0xff]  ;;  %v188_v14 = vld [vmem:[%s1777_s1 + $0x550] sm:$0xff]  ;;  %v1090_v16 = vpack.c.bf16 %v157_v9, %v156_v8 }
  0x49   :  { %1075 = vmatpush3.bf16.msra.mxu0 %v1074_v44  ;;  %v189_v15 = vld [vmem:[%s1777_s1 + $0x558] sm:$0xff]  ;;  %v1092_v17 = vpack.c.bf16 %v175_v13, %v174_v12  ;;  %v158_v18 = vld [vmem:[%s1777_s1 + $0x460] sm:$0xff]  ;;  %v159_v19 = vld [vmem:[%s1777_s1 + $0x468] sm:$0xff]  ;;  %v252_v39 = vrot.slane %v238_v36, %v1329_v10 }
  0x4a   :  { %1077 = vmatprep.subr.bf16.mxu0 %v1076_v45  ;;  %v1116_v21 = vpack.c.bf16 %v189_v15, %v188_v14  ;;  %v176_v22 = vld [vmem:[%s1777_s1 + $0x4f0] sm:$0xff]  ;;  %v177_v23 = vld [vmem:[%s1777_s1 + $0x4f8] sm:$0xff]  ;;  %v190_v24 = vld [vmem:[%s1777_s1 + $0x560] sm:$0xff]  ;;  %v1094_v26 = vpack.c.bf16 %v159_v19, %v158_v18 }
  0x4b   :  { %1105 = vmatpush3.bf16.msra.mxu1 %v1104_v48  ;;  %v191_v25 = vld [vmem:[%s1777_s1 + $0x568] sm:$0xff]  ;;  %v1096_v27 = vpack.c.bf16 %v177_v23, %v176_v22  ;;  %v160_v28 = vld [vmem:[%s1777_s1 + $0x470] sm:$0xff]  ;;  %v161_v29 = vld [vmem:[%s1777_s1 + $0x478] sm:$0xff] }
  0x4c   :  { %1106 = vmatprep.subr.bf16.mxu1 %v1161_v38  ;;  %v1119_v31 = vpack.c.bf16 %v191_v25, %v190_v24  ;;  %v192_v33 = vld [vmem:[%s1777_s1 + $0x570] sm:$0xff]  ;;  %v193_v34 = vld [vmem:[%s1777_s1 + $0x578] sm:$0xff]  ;;  %v1098_v35 = vpack.c.bf16 %v161_v29, %v160_v28  ;;  %v712_v42 = vld [vmem:[%s1778_s2] ss:$0 sm:$0xff]  ;;  %s1164_s2 = smov [#allocation2]  }
  0x4d   :  { %1079 = vmatpush3.bf16.msra.mxu0 %v1078_v52  ;;  %v1122_v37 = vpack.c.bf16 %v193_v34, %v192_v33  ;;  %s704_s16 = sshll.u32 %s1164_s2, 4  ;;  %s705_s16 = int_to_ptr.vmem [resolvable:$true] %s704_s16 }
  0x4e   :  { %1081 = vmatprep.subr.bf16.mxu0 %v1080_v53  ;;  %s1136_s17 = scalar_lea.vmem %s705_s16, 32  ;;  %p1141_p1 = scmp.lt.s32.totalorder %s705_s16, %s705_s16 }
  0x4f   :  { %1108 = vmatpush3.bf16.msra.mxu1 %v1107_v56  ;;  %p1137_p0 = scmp.ne.s32.totalorder %s705_s16, %s1136_s17  ;;  %p1142_p2 = scmp.lt.s32.totalorder %s1136_s17, %s1136_s17 }
  0x50   :  { %1109 = vmatprep.subr.bf16.mxu1 %v1161_v38 }
  0x51   :  { %1083 = vmatpush3.bf16.msra.mxu0 %v1082_v61  ;;  %p1143_p3 = por %p1142_p2, %p1141_p1 }
  0x52   :  { %1085 = vmatprep.subr.bf16.mxu0 %v1084_v62 }
  0x53   :  { %1111 = vmatpush3.bf16.msra.mxu1 %v1110_v1  ;;  %p1144_p4 = pnand %p1143_p3, %p1137_p0 }
  0x54   :  { %1112 = vmatprep.subr.bf16.mxu1 %v1161_v38 }
  0x55   :  { %1087 = vmatpush3.bf16.msra.mxu0 %v1086_v6 }
  0x56   :  { %1089 = vmatprep.subr.bf16.mxu0 %v1088_v7 }
  0x57   :  { %1114 = vmatpush3.bf16.msra.mxu1 %v1113_v11 }
  0x58   :  { %1115 = vmatprep.subr.bf16.mxu1 %v1161_v38 }
  0x59   :  { %1091 = vmatpush3.bf16.msra.mxu0 %v1090_v16 }
  0x5a   :  { %1093 = vmatprep.subr.bf16.mxu0 %v1092_v17 }
  0x5b   :  { %1117 = vmatpush3.bf16.msra.mxu1 %v1116_v21 }
  0x5c   :  { %1118 = vmatprep.subr.bf16.mxu1 %v1161_v38 }
  0x5d   :  { %1095 = vmatpush3.bf16.msra.mxu0 %v1094_v26 }
  0x5e   :  { %1097 = vmatprep.subr.bf16.mxu0 %v1096_v27 }
  0x5f   :  { %1120 = vmatpush3.bf16.msra.mxu1 %v1119_v31 }
  0x60   :  { %1121 = vmatprep.subr.bf16.mxu1 %v1161_v38 }
  0x61   :  { %1099 = vmatpush3.bf16.msra.mxu0 %v1098_v35 }
  0x63   :  { %1123 = vmatpush3.bf16.msra.mxu1 %v1122_v37 }
  0x64   :  { %610 = vmatmul.mubr.f32.vlgmr.msra.gmra.mrb[4].mxu0 %v1620_v30 }
  0x66   :  { %938 = vmatmul.mubr.f32.vlgmr.msra.gmra.mrb[4].mxu1 %v252_v39 }
  0xf7   :  { %v745_v40 = vpop.f32.mrb[0].mxu0 }
  0xf8   :  { %v746_v43 = vpop.f32.mrb[1].mxu0 }
  0xf9   :  { %v780_v44 = vpop.f32.mrb[0].mxu1  ;;  %v747_v20 = vadd.f32 %v746_v43, %v745_v40 }
  0xfa   :  { %v781_v45 = vpop.f32.mrb[1].mxu1 }
  0xfb   :  { %v782_v46 = vadd.f32 %v781_v45, %v780_v44  ;;  %v332_v47 = vadd.f32 %v747_v20, %v712_v42 }
  0xfd   :  { %v402_v48 = vadd.f32 %v782_v46, %v332_v47 }
 0x117   :  { %v815_v38 = vpop.f32.mrb[2].mxu0 }
 0x118   :  { %v816_v32 = vpop.f32.mrb[3].mxu0 }
 0x119   :  { %v850_v41 = vpop.f32.mrb[2].mxu1  ;;  %v817_v10 = vadd.f32 %v816_v32, %v815_v38 }
 0x11a   :  { %v851_v49 = vpop.f32.mrb[3].mxu1 }
 0x11b   :  { %v852_v50 = vadd.f32 %v851_v49, %v850_v41  ;;  %v472_v30 = vadd.f32 %v817_v10, %v402_v48 }
 0x11d   :  { %v542_v51 = vadd.f32 %v852_v50, %v472_v30 }
 0x137   :  { %v885_v52 = vpop.f32.mrb[4].mxu0 }
 0x138   :  { %v886_v53 = vpop.f32.mrb[5].mxu0 }
 0x139   :  { %v681_v54 = vpop.f32.mrb[4].mxu1  ;;  %v887_v55 = vadd.f32 %v886_v53, %v885_v52 }
 0x13a   :  { %v939_v56 = vpop.f32.mrb[5].mxu1 }
 0x13b   :  { %v612_v57 = vadd.f32 %v887_v55, %v542_v51 }
 0x13d   :  { %v682_v58 = vadd.f32 %v681_v54, %v612_v57 }
 0x13f   :  { %v686_v59 = vsel %vm685_vm1, %v682_v58, -inf }
 0x140   :  { %687 = vmax.xlane.f32.xlu0 %v686_v59 }
 0x1cd   :  { %v688_v60 = vpop.xlane.xlu0 %687 }
 0x1ce   :  { %v689_v61 = vsub.f32 %v682_v58, %v688_v60 }
 0x1d0   :  { %v690_v62 = vmul.f32 1.442695, %v689_v61 }
 0x1d2   :  { %1132 = vpow2.f32 %v690_v62 }
 0x1dc   :  { %v1133_v63 = vpop.eup %1132 }
 0x1dd   :  { %v692_v0 = vsel %vm685_vm1, %v1133_v63, 0.0 }
 0x1de   :  { %693 = vadd.xlane.f32.xlu0 %v692_v0 }
 0x26b   :  { %v694_v1 = vpop.xlane.xlu0 %693 }
 0x26c   :  { %1134 = vrcp.f32 %v694_v1 }
 0x276   :  { %v1135_v2 = vpop.eup %1134 }
 0x277   :  { %v696_v3 = vmul.f32 %v1135_v2, %v1133_v63 }
 0x279   :  { %697 = vst.msk [vmem:[#allocation2] sm:$0x3] %vm685_vm1, %v696_v3 }
 0x27a   :  { %1147 = shalt.err (!%p1144_p4)
}
 0x27b   :  { %s1148_s20 = scalar_lea.hbm %s1779_s3, 32 }
 0x27c   :  { %p1149_p5 = scmp.ne.s32.totalorder %s1779_s3, %s1148_s20  ;;  %p1152_p6 = scmp.lt.u32.totalorder %s1148_s20, %s1779_s3 }
 0x27e   :  { %p1154_p7 = pnand %p1152_p6, %p1149_p5 }
 0x280   :  { %1157 = shalt.err (!%p1154_p7)
}
 0x281   :  { %707 = dma.vmem_to_hbm [thread:$0]  %s705_s16, 32, %s1779_s3, [#allocation3]  }
 0x282   :  { %1158 = dma.done.wait [#allocation3], 32  }
 0x283   :  { %1159 = vsyncadd [#allocation3], 4294967264 }
 0x284   :  { %711 = vsyncpa [#allocation3], 1 }

// kernel: efficientnet_binary_forward.10
= control target key start
LH: loop header
LB: loop body
LE: loop exit
PB: predicated region body
PF: predicated region fallthrough
CT: control target
= control target key end

     0   :  { %s2423_s12 = smov 0   ;;  %s2425_s13 = smov 0   ;;  %s3647_s0 = inlined_call_operand.vmem [shape: f32[2,64,32], index: 0, kind: input, shape index: {}]   ;;  %s3648_s1 = inlined_call_operand.vmem [shape: f32[32,1408], index: 1, kind: input, shape index: {}]   ;;  %s3649_s2 = inlined_call_operand.vmem [shape: f32[1,1408], index: 2, kind: input, shape index: {}]   ;;  %s3650_s3 = inlined_call_operand.vmem [shape: f32[2,1,1408], index: 3, kind: output, shape index: {}]  }
   0x1   :  { %s2427_s14 = smov 0  }
   0x2 LB: > { %s25_s15 = sadd.s32 1, %s2395_s13  ;;  %p1859_p0 = scmp.ge.s32.totalorder %s2399_s14, 1  ;;  %s2399_s14 = sphi %s2427_s14, %s13_s14   ;;  %s2395_s13 = sphi %s2425_s13, %s3773_s13   ;;  %s2391_s12 = sphi %s2423_s12, %s3772_s12  }
   0x3   : > { %p27_p1 = scmp.ge.s32.totalorder %s25_s15, 2  ;;  %p156_p2 = scmp.lt.s32.totalorder %s2399_s14, 3 }
   0x5   : > { %s3775_s15 = smov (%p27_p1, %s25_s15), 0  ;;  %p157_p3 = pnand %p1859_p0, %p156_p2 }
   0x7   : > { %160 = sbr.rel (%p157_p3) target bundleno = 485 (0x1e5), region = 32 }
   0xe   : > { %v216_v0 = vld [vmem:[%s3648_s1 + $0x8] sm:$0xff]  ;;  %v227_v1 = vld [vmem:[%s3648_s1 + $0x60] sm:$0xff]  ;;  %p184_p4 = scmp.lt.s32.totalorder %s2391_s12, 1  ;;  %v226_v4 = vld [vmem:[%s3648_s1 + $0x58] sm:$0xff]  ;;  %v3651_v7 = vmov 0.0   ;;  %vm318_vm0 = vcmask 261120  }
   0xf   : > { %v215_v2 = vld [vmem:[%s3648_s1] sm:$0xff]  ;;  %v1945_v3 = vpack.c.bf16 %v227_v1, %v216_v0  ;;  %v238_v5 = vld [vmem:[%s3648_s1 + $0xb8] sm:$0xff]  ;;  %v249_v6 = vld [vmem:[%s3648_s1 + $0x110] sm:$0xff]  ;;  %407 = vmatprep.mubr.f32.mxu0 %v3651_v7  ;;  %443 = vmatprep.mubr.f32.mxu1 %v3651_v7 }
  0x10   : > { %v1947_v8 = vpack.c.bf16 %v226_v4, %v215_v2  ;;  %v1949_v9 = vpack.c.bf16 %v249_v6, %v238_v5  ;;  %v237_v10 = vld [vmem:[%s3648_s1 + $0xb0] sm:$0xff]  ;;  %v248_v11 = vld [vmem:[%s3648_s1 + $0x108] sm:$0xff]  ;;  %s3777_s12 = smov (!%p184_p4, %s2391_s12), 1  ;;  %v218_v12 = vld [vmem:[%s3648_s1 + $0x18] sm:$0xff] }
  0x11   : > { %1946 = vmatprep.subr.bf16.mxu0 %v1945_v3  ;;  %1993 = vmatprep.subr.bf16.mxu1 %v1945_v3  ;;  %v229_v13 = vld [vmem:[%s3648_s1 + $0x70] sm:$0xff]  ;;  %v220_v14 = vld [vmem:[%s3648_s1 + $0x28] sm:$0xff]  ;;  %v231_v15 = vld [vmem:[%s3648_s1 + $0x80] sm:$0xff]  ;;  %v1951_v16 = vpack.c.bf16 %v248_v11, %v237_v10  ;;  %s1912_s17 = sshll.u32 %s3777_s12, 6  ;;  %s1997_s24 = smul.u32 11, %s3777_s12 }
  0x12   : > { %1948 = vmatpush1.bf16.msra.mxu0 %v1947_v8  ;;  %1995 = vmatpush1.bf16.msra.mxu1 %v1947_v8  ;;  %v217_v17 = vld [vmem:[%s3648_s1 + $0x10] sm:$0xff]  ;;  %s2488_s22 = scalar_lea.vmem %s3647_s0, %s1912_s17  ;;  %v1953_v18 = vpack.c.bf16 %v229_v13, %v218_v12  ;;  %v1961_v19 = vpack.c.bf16 %v231_v15, %v220_v14  ;;  %v228_v20 = vld [vmem:[%s3648_s1 + $0x68] sm:$0xff]  ;;  %v219_v21 = vld [vmem:[%s3648_s1 + $0x20] sm:$0xff]  ;;  %v3652_v12 = vlaneseq }
  0x13   : > { %1950 = vmatprep.subr.bf16.mxu0 %v1949_v9  ;;  %1994 = vmatprep.subr.bf16.mxu1 %v1949_v9  ;;  %v230_v22 = vld [vmem:[%s3648_s1 + $0x78] sm:$0xff]  ;;  %v240_v23 = vld [vmem:[%s3648_s1 + $0xc8] sm:$0xff]  ;;  %v251_v24 = vld [vmem:[%s3648_s1 + $0x120] sm:$0xff]  ;;  %v1955_v27 = vpack.c.bf16 %v228_v20, %v217_v17  ;;  %s3621_s27 = scalar_lea.vmem %s3650_s3, %s1997_s24 }
  0x14   : > { %v2506_v25 = vld [vmem:[%s2488_s22] sm:$0xff]  ;;  %v2509_v26 = vld [vmem:[%s2488_s22 + $0x30] sm:$0xff]  ;;  %v1963_v28 = vpack.c.bf16 %v230_v22, %v219_v21  ;;  %v250_v30 = vld [vmem:[%s3648_s1 + $0x118] sm:$0xff]  ;;  %v1957_v32 = vpack.c.bf16 %v251_v24, %v240_v23  ;;  %v2742_v13 = vshrl.u32 %v3652_v12, 7 }
  0x15   : > { %v239_v29 = vld [vmem:[%s3648_s1 + $0xc0] sm:$0xff]  ;;  %v222_v31 = vld [vmem:[%s3648_s1 + $0x38] sm:$0xff]  ;;  %v233_v33 = vld [vmem:[%s3648_s1 + $0x90] sm:$0xff] }
  0x16   : > { %1952 = vmatpush1.bf16.msra.mxu0 %v1951_v16  ;;  %1996 = vmatpush1.bf16.msra.mxu1 %v1951_v16  ;;  %v242_v34 = vld [vmem:[%s3648_s1 + $0xd8] sm:$0xff]  ;;  %v253_v35 = vld [vmem:[%s3648_s1 + $0x130] sm:$0xff]  ;;  %v252_v38 = vld [vmem:[%s3648_s1 + $0x128] sm:$0xff]  ;;  %v1959_v41 = vpack.c.bf16 %v250_v30, %v239_v29  ;;  %v1969_v42 = vpack.c.bf16 %v233_v33, %v222_v31  ;;  %3676 = vst [vmem:[#allocation3_spill] sm:$0xff] %v2742_v13  ;;  %v265_v14 = vsub.s32 0, %v2742_v13  ;;  %v269_v16 = vsub.s32 1, %v2742_v13 }
  0x17   : > { %1954 = vmatprep.subr.bf16.mxu1 %v1953_v18  ;;  %1962 = vmatprep.subr.bf16.mxu0 %v1961_v19  ;;  %v1965_v36 = vpack.c.bf16 %v253_v35, %v242_v34  ;;  %v241_v37 = vld [vmem:[%s3648_s1 + $0xd0] sm:$0xff]  ;;  %v2540_v39 = vld [vmem:[%s2488_s22 + $0x8] sm:$0xff]  ;;  %v2543_v40 = vld [vmem:[%s2488_s22 + $0x38] sm:$0xff]  ;;  %v3653_v18 = vsub.s32 2, %v2742_v13  ;;  %v277_v20 = vsub.s32 3, %v2742_v13  ;;  %v281_v21 = vsub.s32 4, %v2742_v13 }
  0x18   : > { %v221_v43 = vld [vmem:[%s3648_s1 + $0x30] sm:$0xff]  ;;  %v232_v44 = vld [vmem:[%s3648_s1 + $0x88] sm:$0xff]  ;;  %v1967_v45 = vpack.c.bf16 %v252_v38, %v241_v37  ;;  %v255_v47 = vld [vmem:[%s3648_s1 + $0x140] sm:$0xff]  ;;  %v285_v22 = vsub.s32 5, %v2742_v13 }
  0x19   : > { %1862 = vmatmul.mubr.msk.f32.vlgmr.msra.gmra.mrb[0].mxu0 %vm318_vm0, %v2506_v25  ;;  %1868 = vmatmul.mubr.msk.f32.vlgmr.msra.gmra.mrb[0].mxu1 %vm318_vm0, %v2509_v26  ;;  %v244_v46 = vld [vmem:[%s3648_s1 + $0xe8] sm:$0xff]  ;;  %v235_v49 = vld [vmem:[%s3648_s1 + $0xa0] sm:$0xff]  ;;  %v2571_v50 = vld [vmem:[%s2488_s22 + $0x10] sm:$0xff]  ;;  %v1971_v51 = vpack.c.bf16 %v232_v44, %v221_v43 }
  0x1a   : > { %1956 = vmatpush1.bf16.msra.mxu1 %v1955_v27  ;;  %1964 = vmatpush1.bf16.msra.mxu0 %v1963_v28  ;;  %v224_v48 = vld [vmem:[%s3648_s1 + $0x48] sm:$0xff]  ;;  %v1973_v52 = vpack.c.bf16 %v255_v47, %v244_v46  ;;  %v243_v54 = vld [vmem:[%s3648_s1 + $0xe0] sm:$0xff]  ;;  %v254_v55 = vld [vmem:[%s3648_s1 + $0x138] sm:$0xff] }
  0x1b   : > { %413 = vmatprep.mubr.f32.mxu0 %v3651_v7  ;;  %449 = vmatprep.mubr.f32.mxu1 %v3651_v7  ;;  %v1977_v53 = vpack.c.bf16 %v235_v49, %v224_v48  ;;  %v225_v56 = vld [vmem:[%s3648_s1 + $0x50] sm:$0xff]  ;;  %v236_v57 = vld [vmem:[%s3648_s1 + $0xa8] sm:$0xff]  ;;  %v2592_v58 = vld [vmem:[%s2488_s22 + $0x18] sm:$0xff]  ;;  %v1975_v59 = vpack.c.bf16 %v254_v55, %v243_v54 }
  0x1c   : > { %1958 = vmatprep.subr.bf16.mxu1 %v1957_v32  ;;  %1966 = vmatprep.subr.bf16.mxu0 %v1965_v36  ;;  %v1985_v60 = vpack.c.bf16 %v236_v57, %v225_v56  ;;  %v2602_v61 = vld [vmem:[%s2488_s22 + $0x20] sm:$0xff]  ;;  %v2611_v62 = vld [vmem:[%s2488_s22 + $0x28] sm:$0xff]  ;;  %v234_v0 = vld [vmem:[%s3648_s1 + $0x98] sm:$0xff] }
  0x1d   : > { %1863 = vmatmul.mubr.msk.f32.gmra.mrb[2].mxu0 %vm318_vm0, %v2540_v39  ;;  %1869 = vmatmul.mubr.msk.f32.gmra.mrb[2].mxu1 %vm318_vm0, %v2543_v40  ;;  %v223_v63 = vld [vmem:[%s3648_s1 + $0x40] sm:$0xff]  ;;  %v246_v1 = vld [vmem:[%s3648_s1 + $0xf8] sm:$0xff]  ;;  %v257_v2 = vld [vmem:[%s3648_s1 + $0x150] sm:$0xff] }
  0x1e   : > { %1960 = vmatpush1.bf16.msra.mxu1 %v1959_v41  ;;  %419 = vmatprep.mubr.f32.mxu0 %v3651_v7  ;;  %v1979_v3 = vpack.c.bf16 %v234_v0, %v223_v63  ;;  %v1981_v4 = vpack.c.bf16 %v257_v2, %v246_v1  ;;  %v245_v5 = vld [vmem:[%s3648_s1 + $0xf0] sm:$0xff]  ;;  %v256_v6 = vld [vmem:[%s3648_s1 + $0x148] sm:$0xff]  ;;  %v247_v9 = vld [vmem:[%s3648_s1 + $0x100] sm:$0xff] }
  0x1f   : > { %520 = vmatprep.mubr.f32.mxu1 %v3651_v7  ;;  %1970 = vmatprep.subr.bf16.mxu1 %v1969_v42  ;;  %v1983_v8 = vpack.c.bf16 %v256_v6, %v245_v5  ;;  %v258_v10 = vld [vmem:[%s3648_s1 + $0x158] sm:$0xff]  ;;  %v259_v15 = vld [vmem:[%s3649_s2] sm:$0xff] }
  0x20   : > { %1968 = vmatpush1.bf16.msra.mxu0 %v1967_v45  ;;  %v1989_v11 = vpack.c.bf16 %v258_v10, %v247_v9  ;;  %v2749_v17 = vrot.slane %v259_v15, %v265_v14  ;;  %v2754_v19 = vrot.slane %v259_v15, %v269_v16  ;;  %v2769_v31 = vrot.slane %v259_v15, %v3653_v18  ;;  %v260_v45 = vld [vmem:[%s3649_s2 + $0x8] sm:$0x7] }
  0x21   : > { %1864 = vmatmul.mubr.msk.f32.gmra.mrb[4].mxu0 %vm318_vm0, %v2571_v50  ;;  %1870 = vmatmul.mubr.msk.f32.vlgmr.msra.gmra.mrb[4].mxu1 %vm318_vm0, %v2506_v25  ;;  %v2777_v34 = vrot.slane %v259_v15, %v277_v20  ;;  %v2779_v35 = vrot.slane %v259_v15, %v281_v21  ;;  %v2783_v38 = vrot.slane %v259_v15, %v285_v22 }
  0x22   : > { %1972 = vmatpush1.bf16.msra.mxu1 %v1971_v51  ;;  %425 = vmatprep.mubr.f32.mxu0 %v3651_v7  ;;  %v2810_v0 = vrot.slane %v260_v45, %v265_v14 }
  0x23   : > { %526 = vmatprep.mubr.f32.mxu1 %v3651_v7  ;;  %1974 = vmatprep.subr.bf16.mxu1 %v1973_v52 }
  0x24   : > { %1978 = vmatprep.subr.bf16.mxu0 %v1977_v53  ;;  %3677 = vst [vmem:[#allocation4_spill] sm:$0xff] %v2810_v0 }
  0x25   : > { %1865 = vmatmul.mubr.msk.f32.gmra.mrb[6].mxu0 %vm318_vm0, %v2592_v58  ;;  %1871 = vmatmul.mubr.msk.f32.gmra.mrb[6].mxu1 %vm318_vm0, %v2540_v39 }
  0x26   : > { %431 = vmatprep.mubr.f32.mxu0 %v3651_v7  ;;  %532 = vmatprep.mubr.f32.mxu1 %v3651_v7 }
  0x27   : > { %1976 = vmatpush1.bf16.msra.mxu1 %v1975_v59 }
  0x28   : > { %1986 = vmatprep.subr.bf16.mxu1 %v1985_v60 }
  0x29   : > { %1866 = vmatmul.mubr.msk.f32.gmra.mrb[8].mxu0 %vm318_vm0, %v2602_v61  ;;  %1872 = vmatmul.mubr.msk.f32.gmra.mrb[8].mxu1 %vm318_vm0, %v2571_v50 }
  0x2a   : > { %437 = vmatprep.mubr.f32.mxu0 %v3651_v7  ;;  %538 = vmatprep.mubr.f32.mxu1 %v3651_v7 }
  0x2d   : > { %1867 = vmatmul.mubr.msk.f32.gmra.mrb[10].mxu0 %vm318_vm0, %v2611_v62  ;;  %1873 = vmatmul.mubr.msk.f32.gmra.mrb[10].mxu1 %vm318_vm0, %v2592_v58 }
  0x2e   : > { %544 = vmatprep.mubr.f32.mxu1 %v3651_v7  ;;  %633 = vmatprep.mubr.f32.mxu0 %v3651_v7 }
  0x31   : > { %1874 = vmatmul.mubr.msk.f32.gmra.mrb[12].mxu1 %vm318_vm0, %v2602_v61  ;;  %1878 = vmatmul.mubr.msk.f32.vlgmr.msra.gmra.mrb[12].mxu0 %vm318_vm0, %v2506_v25 }
  0x32   : > { %1980 = vmatpush1.bf16.msra.mxu0 %v1979_v3  ;;  %550 = vmatprep.mubr.f32.mxu1 %v3651_v7 }
  0x33   : > { %639 = vmatprep.mubr.f32.mxu0 %v3651_v7  ;;  %1982 = vmatprep.subr.bf16.mxu0 %v1981_v4 }
  0x35   : > { %1875 = vmatmul.mubr.msk.f32.gmra.mrb[14].mxu1 %vm318_vm0, %v2611_v62  ;;  %1879 = vmatmul.mubr.msk.f32.gmra.mrb[14].mxu0 %vm318_vm0, %v2540_v39 }
  0x36   : > { %556 = vmatprep.mubr.f32.mxu1 %v3651_v7  ;;  %645 = vmatprep.mubr.f32.mxu0 %v3651_v7 }
  0x37   : > { %1984 = vmatpush1.bf16.msra.mxu0 %v1983_v8 }
  0x39   : > { %1876 = vmatmul.mubr.msk.f32.gmra.mrb[16].mxu1 %vm318_vm0, %v2509_v26  ;;  %1880 = vmatmul.mubr.msk.f32.gmra.mrb[16].mxu0 %vm318_vm0, %v2571_v50 }
  0x3a   : > { %562 = vmatprep.mubr.f32.mxu1 %v3651_v7  ;;  %651 = vmatprep.mubr.f32.mxu0 %v3651_v7 }
  0x3d   : > { %1877 = vmatmul.mubr.msk.f32.gmra.mrb[18].mxu1 %vm318_vm0, %v2543_v40  ;;  %1881 = vmatmul.mubr.msk.f32.gmra.mrb[18].mxu0 %vm318_vm0, %v2592_v58 }
  0x3e   : > { %657 = vmatprep.mubr.f32.mxu0 %v3651_v7  ;;  %746 = vmatprep.mubr.f32.mxu1 %v3651_v7 }
  0x41   : > { %1882 = vmatmul.mubr.msk.f32.gmra.mrb[20].mxu0 %vm318_vm0, %v2602_v61  ;;  %1886 = vmatmul.mubr.msk.f32.vlgmr.msra.gmra.mrb[20].mxu1 %vm318_vm0, %v2506_v25 }
  0x42   : > { %1988 = vmatpush3.bf16.msra.mxu1 %v1985_v60  ;;  %663 = vmatprep.mubr.f32.mxu0 %v3651_v7 }
  0x43   : > { %752 = vmatprep.mubr.f32.mxu1 %v3651_v7  ;;  %1990 = vmatprep.subr.bf16.mxu1 %v1989_v11 }
  0x45   : > { %1883 = vmatmul.mubr.msk.f32.gmra.mrb[22].mxu0 %vm318_vm0, %v2611_v62  ;;  %1887 = vmatmul.mubr.msk.f32.gmra.mrb[22].mxu1 %vm318_vm0, %v2540_v39 }
  0x46   : > { %669 = vmatprep.mubr.f32.mxu0 %v3651_v7  ;;  %758 = vmatprep.mubr.f32.mxu1 %v3651_v7 }
  0x47   : > { %1992 = vmatpush3.bf16.msra.mxu1 %v1989_v11 }
  0x49   : > { %1884 = vmatmul.mubr.msk.f32.gmra.mrb[24].mxu0 %vm318_vm0, %v2509_v26  ;;  %1888 = vmatmul.mubr.msk.f32.gmra.mrb[24].mxu1 %vm318_vm0, %v2571_v50 }
  0x4a   : > { %675 = vmatprep.mubr.f32.mxu0 %v3651_v7  ;;  %764 = vmatprep.mubr.f32.mxu1 %v3651_v7 }
  0x4d   : > { %1885 = vmatmul.mubr.msk.f32.gmra.mrb[26].mxu0 %vm318_vm0, %v2543_v40  ;;  %1889 = vmatmul.mubr.msk.f32.gmra.mrb[26].mxu1 %vm318_vm0, %v2592_v58 }
  0x4e   : > { %770 = vmatprep.mubr.f32.mxu1 %v3651_v7  ;;  %859 = vmatprep.mubr.f32.mxu0 %v3651_v7 }
  0x51   : > { %1890 = vmatmul.mubr.msk.f32.gmra.mrb[28].mxu1 %vm318_vm0, %v2602_v61  ;;  %1894 = vmatmul.mubr.msk.f32.vlgmr.msra.gmra.mrb[28].mxu0 %vm318_vm0, %v2506_v25 }
  0x52   : > { %776 = vmatprep.mubr.f32.mxu1 %v3651_v7  ;;  %865 = vmatprep.mubr.f32.mxu0 %v3651_v7 }
  0x55   : > { %1891 = vmatmul.mubr.msk.f32.gmra.mrb[30].mxu1 %vm318_vm0, %v2611_v62  ;;  %1895 = vmatmul.mubr.msk.f32.gmra.mrb[30].mxu0 %vm318_vm0, %v2540_v39 }
  0x56   : > { %782 = vmatprep.mubr.f32.mxu1 %v3651_v7  ;;  %871 = vmatprep.mubr.f32.mxu0 %v3651_v7 }
  0x59   : > { %1892 = vmatmul.mubr.msk.f32.gmra.mrb[32].mxu1 %vm318_vm0, %v2509_v26  ;;  %1896 = vmatmul.mubr.msk.f32.gmra.mrb[32].mxu0 %vm318_vm0, %v2571_v50 }
  0x5a   : > { %788 = vmatprep.mubr.f32.mxu1 %v3651_v7  ;;  %877 = vmatprep.mubr.f32.mxu0 %v3651_v7 }
  0x5d   : > { %1893 = vmatmul.mubr.msk.f32.gmra.mrb[34].mxu1 %vm318_vm0, %v2543_v40  ;;  %1897 = vmatmul.mubr.msk.f32.gmra.mrb[34].mxu0 %vm318_vm0, %v2592_v58 }
  0x5e   : > { %883 = vmatprep.mubr.f32.mxu0 %v3651_v7  ;;  %1933 = vmatprep.mubr.msk.f32.mxu1 %vm318_vm0, %v2506_v25  ;;  %v289_v25 = vsub.s32 6, %v2742_v13 }
  0x60   : > { %v2787_v43 = vrot.slane %v259_v15, %v289_v25 }
  0x61   : > { %1898 = vmatmul.mubr.msk.f32.gmra.mrb[36].mxu0 %vm318_vm0, %v2602_v61  ;;  %1934 = vmatmul.mubr.msk.f32.vlgmr.msra.gmra.mrb[36].mxu1 %vm318_vm0, %v2540_v39 }
  0x62   : > { %889 = vmatprep.mubr.f32.mxu0 %v3651_v7  ;;  %1936 = vmatprep.mubr.msk.f32.mxu1 %vm318_vm0, %v2571_v50 }
  0x65   : > { %1899 = vmatmul.mubr.msk.f32.gmra.mrb[38].mxu0 %vm318_vm0, %v2611_v62  ;;  %1937 = vmatmul.mubr.msk.f32.gmra.mrb[38].mxu1 %vm318_vm0, %v2592_v58  ;;  %v2402_v58 = vmov 1966171168  }
  0x66   : > { %895 = vmatprep.mubr.f32.mxu0 %v3651_v7  ;;  %1939 = vmatprep.mubr.msk.f32.mxu1 %vm318_vm0, %v2602_v61  ;;  %v1702_v59 = vunpack.c.l.s4 %v2402_v58 }
  0x68   : > { %v1703_v22 = vunpack.c.0.s8 %v1702_v59 }
  0x69   : > { %1900 = vmatmul.mubr.msk.f32.gmra.mrb[40].mxu0 %vm318_vm0, %v2509_v26  ;;  %1940 = vmatmul.mubr.msk.f32.gmra.mrb[40].mxu1 %vm318_vm0, %v2611_v62 }
  0x6a   : > { %901 = vmatprep.mubr.f32.mxu0 %v3651_v7  ;;  %1942 = vmatprep.mubr.msk.f32.mxu1 %vm318_vm0, %v2509_v26  ;;  %v293_v26 = vsub.s32 7, %v2742_v13 }
  0x6c   : > { %v2789_v44 = vrot.slane %v259_v15, %v293_v26 }
  0x6d   : > { %1901 = vmatmul.mubr.msk.f32.gmra.mrb[42].mxu0 %vm318_vm0, %v2543_v40  ;;  %1943 = vmatmul.mubr.msk.f32.gmra.mrb[42].mxu1 %vm318_vm0, %v2543_v40 }
  0xec   : > { %v409_v23 = vpop.f32.mrb[0].mxu0  ;;  %v445_v24 = vpop.f32.mrb[0].mxu1 }
  0xed   : > { %v2762_v27 = vadd.f32 %v409_v23, %v2749_v17  ;;  %v2765_v28 = vadd.f32 %v445_v24, %v2749_v17  ;;  %v411_v29 = vpop.f32.mrb[1].mxu0  ;;  %v447_v30 = vpop.f32.mrb[1].mxu1  ;;  %v2828_v23 = vrot.slane %v260_v45, %v269_v16 }
  0xee   : > { %v2772_v32 = vadd.f32 %v411_v29, %v2754_v19  ;;  %v2775_v33 = vadd.f32 %v447_v30, %v2754_v19 }
  0xef   : > { %v1013_v36 = vsub.f32 0.0, %v2762_v27  ;;  %v1079_v37 = vsub.f32 0.0, %v2765_v28  ;;  %3678 = vst [vmem:[#allocation5_spill] sm:$0xff] %v2828_v23 }
  0xf0   : > { %v1014_v39 = vsub.f32 0.0, %v2772_v32  ;;  %v1080_v40 = vsub.f32 0.0, %v2775_v33  ;;  %v415_v41 = vpop.f32.mrb[2].mxu0  ;;  %v451_v42 = vpop.f32.mrb[2].mxu1 }
  0xf1   : > { %v1101_v46 = vmul.f32 1.442695, %v1013_v36  ;;  %v1233_v47 = vmul.f32 1.442695, %v1079_v37  ;;  %v2795_v48 = vadd.f32 %v415_v41, %v2749_v17  ;;  %v2798_v49 = vadd.f32 %v451_v42, %v2749_v17  ;;  %v417_v50 = vpop.f32.mrb[3].mxu0  ;;  %v453_v51 = vpop.f32.mrb[3].mxu1 }
  0xf2   : > { %v1103_v52 = vmul.f32 1.442695, %v1014_v39  ;;  %v1235_v53 = vmul.f32 1.442695, %v1080_v40  ;;  %v2801_v54 = vadd.f32 %v417_v50, %v2754_v19  ;;  %v2804_v55 = vadd.f32 %v453_v51, %v2754_v19 }
  0xf3   : > { %2024 = vpow2.f32 %v1101_v46  ;;  %v1024_v56 = vsub.f32 0.0, %v2795_v48  ;;  %v1090_v57 = vsub.f32 0.0, %v2798_v49 }
  0xf4   : > { %2026 = vpow2.f32 %v1233_v47  ;;  %v1025_v60 = vsub.f32 0.0, %v2801_v54  ;;  %v1091_v61 = vsub.f32 0.0, %v2804_v55  ;;  %v421_v62 = vpop.f32.mrb[4].mxu0  ;;  %v522_v63 = vpop.f32.mrb[4].mxu1 }
  0xf5   : > { %2028 = vpow2.f32 %v1103_v52  ;;  %v1123_v1 = vmul.f32 1.442695, %v1024_v56  ;;  %v1255_v2 = vmul.f32 1.442695, %v1090_v57  ;;  %v2813_v3 = vadd.f32 %v421_v62, %v2749_v17  ;;  %v423_v4 = vpop.f32.mrb[5].mxu0  ;;  %v524_v5 = vpop.f32.mrb[5].mxu1 }
  0xf6   : > { %2030 = vpow2.f32 %v1235_v53  ;;  %v1125_v6 = vmul.f32 1.442695, %v1025_v60  ;;  %v1257_v8 = vmul.f32 1.442695, %v1091_v61  ;;  %v2816_v9 = vadd.f32 %v522_v63, %v2769_v31 }
  0xf7   : > { %2032 = vpow2.f32 %v1123_v1  ;;  %v1035_v10 = vsub.f32 0.0, %v2813_v3  ;;  %v2820_v11 = vadd.f32 %v423_v4, %v2754_v19  ;;  %v2823_v14 = vadd.f32 %v524_v5, %v2777_v34 }
  0xf8   : > { %2034 = vpow2.f32 %v1255_v2  ;;  %v1015_v15 = vsub.f32 0.0, %v2816_v9  ;;  %v427_v20 = vpop.f32.mrb[6].mxu0  ;;  %v528_v21 = vpop.f32.mrb[6].mxu1  ;;  %v2856_v62 = vsub.s32 %v1703_v22, %v2742_v13 }
  0xf9   : > { %2036 = vpow2.f32 %v1125_v6  ;;  %v1145_v24 = vmul.f32 1.442695, %v1035_v10  ;;  %v1036_v25 = vsub.f32 0.0, %v2820_v11  ;;  %v1016_v26 = vsub.f32 0.0, %v2823_v14  ;;  %v429_v29 = vpop.f32.mrb[7].mxu0  ;;  %v530_v30 = vpop.f32.mrb[7].mxu1 }
  0xfa   : > { %2038 = vpow2.f32 %v1257_v8  ;;  %v1105_v36 = vmul.f32 1.442695, %v1015_v15  ;;  %v2833_v37 = vadd.f32 %v427_v20, %v2749_v17  ;;  %v2836_v39 = vadd.f32 %v528_v21, %v2769_v31  ;;  %3679 = vst [vmem:[#allocation6_spill] sm:$0xff] %v2856_v62 }
  0xfb   : > { %2040 = vpow2.f32 %v1145_v24  ;;  %v1147_v40 = vmul.f32 1.442695, %v1036_v25  ;;  %v1107_v16 = vmul.f32 1.442695, %v1016_v26  ;;  %v2839_v41 = vadd.f32 %v429_v29, %v2754_v19 }
  0xfc   : > { %2042 = vpow2.f32 %v1105_v36  ;;  %v1046_v42 = vsub.f32 0.0, %v2833_v37  ;;  %v1026_v45 = vsub.f32 0.0, %v2836_v39  ;;  %v2844_v46 = vadd.f32 %v530_v30, %v2777_v34  ;;  %v433_v47 = vpop.f32.mrb[8].mxu0  ;;  %v534_v50 = vpop.f32.mrb[8].mxu1 }
  0xfd   : > { %v2025_v51 = vpop.eup %2024  ;;  %2044 = vpow2.f32 %v1147_v40  ;;  %v1047_v52 = vsub.f32 0.0, %v2839_v41  ;;  %v2848_v53 = vadd.f32 %v433_v47, %v2749_v17  ;;  %v2851_v56 = vadd.f32 %v534_v50, %v2769_v31  ;;  %v435_v57 = vpop.f32.mrb[9].mxu0 }
  0xfe   : > { %v536_v58 = vpop.f32.mrb[9].mxu1  ;;  %v2027_v59 = vpop.eup %2026  ;;  %v1277_v60 = vadd.f32 1.0, %v2025_v51  ;;  %2046 = vpow2.f32 %v1107_v16  ;;  %v2853_v61 = vmul.f32 1.442695, %v1046_v42  ;;  %v2858_v2 = vmul.f32 1.442695, %v1026_v45 }
  0xff   : > { %v2029_v63 = vpop.eup %2028  ;;  %v1343_v1 = vadd.f32 1.0, %v2027_v59  ;;  %v1027_v4 = vsub.f32 0.0, %v2844_v46  ;;  %v1057_v5 = vsub.f32 0.0, %v2848_v53  ;;  %v1037_v10 = vsub.f32 0.0, %v2851_v56 }
 0x100   : > { %v2031_v6 = vpop.eup %2030  ;;  %2048 = vrcp.f32 %v1277_v60  ;;  %v1278_v8 = vadd.f32 1.0, %v2029_v63  ;;  %v2864_v15 = vadd.f32 %v435_v57, %v2754_v19  ;;  %v439_v20 = vpop.f32.mrb[10].mxu0  ;;  %v2866_v25 = vmul.f32 1.442695, %v1047_v52 }
 0x101   : > { %v540_v21 = vpop.f32.mrb[10].mxu1  ;;  %v2033_v22 = vpop.eup %2032  ;;  %2050 = vrcp.f32 %v1343_v1  ;;  %v1344_v24 = vadd.f32 1.0, %v2031_v6  ;;  %v2868_v26 = vmul.f32 1.442695, %v1027_v4  ;;  %v2870_v40 = vmul.f32 1.442695, %v1057_v5 }
 0x102   : > { %v441_v29 = vpop.f32.mrb[11].mxu0  ;;  %v2035_v30 = vpop.eup %2034  ;;  %2052 = vrcp.f32 %v1278_v8  ;;  %v1288_v36 = vadd.f32 1.0, %v2033_v22  ;;  %v1058_v16 = vsub.f32 0.0, %v2864_v15  ;;  %v2874_v50 = vadd.f32 %v536_v58, %v2777_v34 }
 0x103   : > { %v542_v42 = vpop.f32.mrb[11].mxu1  ;;  %v2037_v45 = vpop.eup %2036  ;;  %2054 = vrcp.f32 %v1344_v24  ;;  %v1354_v47 = vadd.f32 1.0, %v2035_v30  ;;  %v2877_v51 = vadd.f32 %v439_v20, %v2749_v17  ;;  %v2879_v59 = vmul.f32 1.442695, %v1037_v10 }
 0x104   : > { %v2039_v52 = vpop.eup %2038  ;;  %2056 = vrcp.f32 %v1288_v36  ;;  %v1289_v57 = vadd.f32 1.0, %v2037_v45  ;;  %v2882_v60 = vadd.f32 %v540_v21, %v2769_v31  ;;  %v546_v63 = vpop.f32.mrb[12].mxu1  ;;  %v1038_v6 = vsub.f32 0.0, %v2874_v50 }
 0x105   : > { %v635_v1 = vpop.f32.mrb[12].mxu0  ;;  %v2041_v4 = vpop.eup %2040  ;;  %2058 = vrcp.f32 %v1354_v47  ;;  %v1355_v5 = vadd.f32 1.0, %v2039_v52  ;;  %v1068_v58 = vsub.f32 0.0, %v2877_v51  ;;  %v2888_v24 = vadd.f32 %v441_v29, %v2754_v19 }
 0x106   : > { %v548_v8 = vpop.f32.mrb[13].mxu1  ;;  %v637_v17 = vpop.f32.mrb[13].mxu0  ;;  %2060 = vrcp.f32 %v1289_v57  ;;  %v1299_v22 = vadd.f32 1.0, %v2041_v4  ;;  %v1048_v10 = vsub.f32 0.0, %v2882_v60  ;;  %v2890_v36 = vmul.f32 1.442695, %v1058_v16 }
 0x107   : > { %v2043_v20 = vpop.eup %2042  ;;  %2062 = vrcp.f32 %v1355_v5  ;;  %v2892_v45 = vmul.f32 1.442695, %v1038_v6  ;;  %v2894_v7 = vmul.f32 1.442695, %v1068_v58  ;;  %v1069_v57 = vsub.f32 0.0, %v2888_v24 }
 0x108   : > { %v2045_v21 = vpop.eup %2044  ;;  %v1279_v30 = vadd.f32 1.0, %v2043_v20  ;;  %2064 = vrcp.f32 %v1299_v22  ;;  %v552_v4 = vpop.f32.mrb[14].mxu1  ;;  %v2898_v19 = vadd.f32 %v542_v42, %v2777_v34  ;;  %v2901_v29 = vadd.f32 %v546_v63, %v2769_v31 }
 0x109   : > { %v2047_v47 = vpop.eup %2046  ;;  %v1300_v52 = vadd.f32 1.0, %v2045_v21  ;;  %v641_v12 = vpop.f32.mrb[14].mxu0  ;;  %v2905_v20 = vmul.f32 1.442695, %v1048_v10  ;;  %v2908_v58 = vadd.f32 %v635_v1, %v2779_v35  ;;  %v2911_v22 = vadd.f32 %v548_v8, %v2777_v34 }
 0x10a   : > { %2066 = vrcp.f32 %v1279_v30  ;;  %v1280_v18 = vadd.f32 1.0, %v2047_v47  ;;  %v554_v16 = vpop.f32.mrb[15].mxu1  ;;  %v2903_v5 = vpop.f32.mrb[15].mxu0  ;;  %v2913_v42 = vmul.f32 1.442695, %v1069_v57  ;;  %v1049_v63 = vsub.f32 0.0, %v2898_v19 }
 0x10b   : > { %v2049_v6 = vpop.eup %2048  ;;  %2068 = vrcp.f32 %v1300_v52  ;;  %3680 = vst [vmem:[#allocation7_spill] sm:$0xff] %v2908_v58  ;;  %3681 = vst [vmem:[#allocation8_spill] sm:$0xff] %v2911_v22  ;;  %v1059_v30 = vsub.f32 0.0, %v2901_v29  ;;  %v1017_v10 = vsub.f32 0.0, %v2908_v58  ;;  %v1060_v1 = vsub.f32 0.0, %v2911_v22 }
 0x10c   : > { %v2051_v21 = vpop.eup %2050  ;;  %2070 = vrcp.f32 %v1280_v18  ;;  %v1453_v13 = vmul.f32 %v2049_v6, %v2762_v27  ;;  %v558_v52 = vpop.f32.mrb[16].mxu1  ;;  %v1173_v23 = vmul.f32 1.442695, %v1049_v63 }
 0x10d   : > { %v2053_v47 = vpop.eup %2052  ;;  %2072 = vpow2.f32 %v2853_v61  ;;  %v2921_v8 = vpop.f32.mrb[16].mxu0  ;;  %v2924_v18 = vmul.f32 %v2051_v21, %v2765_v28  ;;  %v1193_v22 = vmul.f32 1.442695, %v1059_v30  ;;  %v2936_v58 = vmul.f32 1.442695, %v1017_v10 }
 0x10e   : > { %v2055_v62 = vpop.eup %2054  ;;  %v1454_v57 = vmul.f32 %v2053_v47, %v2772_v32  ;;  %2074 = vpow2.f32 %v2858_v2  ;;  %v2928_v0 = vpop.f32.mrb[17].mxu1  ;;  %v2941_v32 = vadd.f32 %v637_v17, %v2783_v38  ;;  %v2944_v2 = vadd.f32 %v552_v4, %v2769_v31 }
 0x10f   : > { %v2930_v27 = vpop.f32.mrb[17].mxu0  ;;  %v2057_v61 = vpop.eup %2056  ;;  %v2933_v6 = vmul.f32 %v2055_v62, %v2775_v33  ;;  %2076 = vpow2.f32 %v2866_v25  ;;  %v2950_v62 = vmul.f32 1.442695, %v1060_v1  ;;  %v2953_v25 = vadd.f32 %v641_v12, %v2779_v35 }
 0x110   : > { %v2059_v28 = vpop.eup %2058  ;;  %v1464_v21 = vmul.f32 %v2057_v61, %v2795_v48  ;;  %2078 = vpow2.f32 %v2868_v26  ;;  %3682 = vst [vmem:[#allocation9_spill] sm:$0xff] %v2941_v32  ;;  %3683 = vst [vmem:[#allocation10_spill] sm:$0xff] %v2944_v2  ;;  %v2955_v48 = vpop.f32.mrb[18].mxu1  ;;  %v1070_v12 = vsub.f32 0.0, %v2944_v2  ;;  %v2970_v61 = vadd.f32 %v554_v16, %v2777_v34 }
 0x111   : > { %v2061_v63 = vpop.eup %2060  ;;  %v2947_v33 = vmul.f32 %v2059_v28, %v2798_v49  ;;  %2080 = vpow2.f32 %v2870_v40  ;;  %3684 = vst [vmem:[#allocation11_spill] sm:$0xff] %v2953_v25  ;;  %v2957_v26 = vpop.f32.mrb[18].mxu0  ;;  %v1018_v49 = vsub.f32 0.0, %v2941_v32  ;;  %v1028_v1 = vsub.f32 0.0, %v2953_v25 }
 0x112   : > { %v2063_v17 = vpop.eup %2062  ;;  %v1543_v30 = vadd.f32 %v1464_v21, %v1453_v13  ;;  %v1465_v4 = vmul.f32 %v2061_v63, %v2801_v54  ;;  %2082 = vpow2.f32 %v2879_v59  ;;  %v2962_v47 = vpop.f32.mrb[19].mxu1  ;;  %3685 = vst [vmem:[#allocation12_spill] sm:$0xff] %v2970_v61  ;;  %v2983_v25 = vmul.f32 1.442695, %v1070_v12 }
 0x113   : > { %v2964_v40 = vpop.f32.mrb[19].mxu0  ;;  %v2065_v10 = vpop.eup %2064  ;;  %2084 = vpow2.f32 %v2890_v36  ;;  %v2973_v59 = vmul.f32 %v2063_v17, %v2804_v55  ;;  %v2981_v36 = vmul.f32 1.442695, %v1018_v49  ;;  %v1071_v49 = vsub.f32 0.0, %v2970_v61 }
 0x114   : > { %v2067_v13 = vpop.eup %2066  ;;  %v1556_v54 = vadd.f32 %v1465_v4, %v1454_v57  ;;  %v1475_v28 = vmul.f32 %v2065_v10, %v2813_v3  ;;  %2086 = vpow2.f32 %v2892_v45  ;;  %v2985_v16 = vpop.f32.mrb[20].mxu0  ;;  %v2993_v45 = vmul.f32 1.442695, %v1028_v1 }
 0x115   : > { %v2069_v21 = vpop.eup %2068  ;;  %v2978_v63 = vmul.f32 %v2067_v13, %v2816_v9  ;;  %2088 = vpow2.f32 %v2894_v7  ;;  %v2987_v57 = vpop.f32.mrb[20].mxu1  ;;  %v3003_v10 = vadd.f32 %v2903_v5, %v2783_v38  ;;  %v3039_v32 = vadd.f32 %v2930_v27, %v2783_v38 }
 0x116   : > { %v2071_v55 = vpop.eup %2070  ;;  %v2989_v17 = vadd.f32 %v1543_v30, %v1475_v28  ;;  %v1476_v3 = vmul.f32 %v2069_v21, %v2820_v11  ;;  %2090 = vpow2.f32 %v2905_v20  ;;  %v2995_v9 = vpop.f32.mrb[21].mxu0  ;;  %v3006_v30 = vadd.f32 %v558_v52, %v2769_v31 }
 0x117   : > { %v2997_v7 = vpop.f32.mrb[21].mxu1  ;;  %v2073_v4 = vpop.eup %2072  ;;  %2092 = vpow2.f32 %v2913_v42  ;;  %3686 = vst [vmem:[#allocation13_spill] sm:$0xff] %v3003_v10  ;;  %v3011_v12 = vmul.f32 %v2071_v55, %v2823_v14  ;;  %v1029_v42 = vsub.f32 0.0, %v3003_v10  ;;  %v3021_v14 = vadd.f32 %v2921_v8, %v2779_v35  ;;  %3690 = vst [vmem:[#allocation17_spill] sm:$0xff] %v3039_v32 }
 0x118   : > { %3687 = vst [vmem:[#allocation14_spill] sm:$0xff] %v3006_v30  ;;  %v2075_v11 = vpop.eup %2074  ;;  %v3008_v20 = vadd.f32 %v1556_v54, %v1476_v3  ;;  %v1310_v1 = vadd.f32 1.0, %v2073_v4  ;;  %2094 = vpow2.f32 %v1173_v23  ;;  %v1081_v21 = vsub.f32 0.0, %v3006_v30  ;;  %v3015_v5 = vpop.f32.mrb[22].mxu0 }
 0x119   : > { %v2077_v13 = vpop.eup %2076  ;;  %v1290_v28 = vadd.f32 1.0, %v2075_v11  ;;  %2096 = vpow2.f32 %v1193_v22  ;;  %v3017_v61 = vpop.f32.mrb[22].mxu1  ;;  %3688 = vst [vmem:[#allocation15_spill] sm:$0xff] %v3021_v14  ;;  %v3025_v23 = vadd.f32 %v2928_v0, %v2777_v34  ;;  %v3031_v11 = vmul.f32 1.442695, %v1071_v49 }
 0x11a   : > { %v2079_v52 = vpop.eup %2078  ;;  %2098 = vrcp.f32 %v1310_v1  ;;  %v1311_v54 = vadd.f32 1.0, %v2077_v13  ;;  %v3027_v22 = vpop.f32.mrb[23].mxu0  ;;  %v3033_v30 = vmul.f32 1.442695, %v1029_v42  ;;  %v1039_v8 = vsub.f32 0.0, %v3021_v14 }
 0x11b   : > { %3689 = vst [vmem:[#allocation16_spill] sm:$0xff] %v3025_v23  ;;  %v3029_v55 = vpop.f32.mrb[23].mxu1  ;;  %v2081_v3 = vpop.eup %2080  ;;  %2100 = vrcp.f32 %v1290_v28  ;;  %v1291_v4 = vadd.f32 1.0, %v2079_v52  ;;  %v1082_v10 = vsub.f32 0.0, %v3025_v23  ;;  %v3043_v49 = vadd.f32 %v2955_v48, %v2769_v31 }
 0x11c   : > { %v2083_v1 = vpop.eup %2082  ;;  %2102 = vrcp.f32 %v1311_v54  ;;  %v1321_v13 = vadd.f32 1.0, %v2081_v3  ;;  %v3045_v28 = vpop.f32.mrb[24].mxu0  ;;  %v3049_v3 = vmul.f32 1.442695, %v1081_v21  ;;  %v3051_v23 = vmul.f32 1.442695, %v1039_v8 }
 0x11d   : > { %v2085_v0 = vpop.eup %2084  ;;  %2104 = vrcp.f32 %v1291_v4  ;;  %v1301_v2 = vadd.f32 1.0, %v2083_v1  ;;  %3691 = vst [vmem:[#allocation18_spill] sm:$0xff] %v3043_v49  ;;  %3692 = vst [vmem:[#allocation19_spill] sm:$0xff] %v3045_v28  ;;  %v3047_v42 = vpop.f32.mrb[24].mxu1  ;;  %v1040_v14 = vsub.f32 0.0, %v3039_v32  ;;  %v1092_v31 = vsub.f32 0.0, %v3043_v49 }
 0x11e   : > { %3693 = vst [vmem:[#allocation20_spill] sm:$0xff] %v3047_v42  ;;  %v2087_v52 = vpop.eup %2086  ;;  %2106 = vrcp.f32 %v1321_v13  ;;  %v1322_v54 = vadd.f32 1.0, %v2085_v0  ;;  %v3053_v4 = vpop.f32.mrb[25].mxu0  ;;  %v3061_v21 = vadd.f32 %v2957_v26, %v2779_v35  ;;  %v3065_v13 = vadd.f32 %v2962_v47, %v2777_v34 }
 0x11f   : > { %v2089_v1 = vpop.eup %2088  ;;  %2108 = vrcp.f32 %v1301_v2  ;;  %v1302_v27 = vadd.f32 1.0, %v2087_v52  ;;  %v3057_v48 = vpop.f32.mrb[25].mxu1  ;;  %v3067_v0 = vmul.f32 1.442695, %v1082_v10  ;;  %v3069_v52 = vmul.f32 1.442695, %v1040_v14 }
 0x120   : > { %3694 = vst [vmem:[#allocation21_spill] sm:$0xff] %v3057_v48  ;;  %v2091_v28 = vpop.eup %2090  ;;  %2110 = vrcp.f32 %v1322_v54  ;;  %v1332_v42 = vadd.f32 1.0, %v2089_v1  ;;  %3695 = vst [vmem:[#allocation22_spill] sm:$0xff] %v3061_v21  ;;  %v3071_v49 = vpop.f32.mrb[26].mxu0  ;;  %v1050_v1 = vsub.f32 0.0, %v3061_v21  ;;  %v1093_v26 = vsub.f32 0.0, %v3065_v13 }
 0x121   : > { %3696 = vst [vmem:[#allocation23_spill] sm:$0xff] %v3065_v13  ;;  %v2093_v8 = vpop.eup %2092  ;;  %2112 = vrcp.f32 %v1302_v27  ;;  %v1312_v2 = vadd.f32 1.0, %v2091_v28  ;;  %v3075_v48 = vpop.f32.mrb[26].mxu1  ;;  %v3081_v10 = vadd.f32 %v2964_v40, %v2783_v38  ;;  %v3085_v14 = vadd.f32 %v2985_v16, %v2779_v35 }
 0x122   : > { %v2095_v32 = vpop.eup %2094  ;;  %2114 = vrcp.f32 %v1332_v42  ;;  %v1333_v54 = vadd.f32 1.0, %v2093_v8  ;;  %3697 = vst [vmem:[#allocation24_spill] sm:$0xff] %v3075_v48  ;;  %v3077_v34 = vpop.f32.mrb[27].mxu0  ;;  %v3089_v13 = vmul.f32 1.442695, %v1092_v31 }
 0x123   : > { %3698 = vst [vmem:[#allocation25_spill] sm:$0xff] %v3077_v34  ;;  %v2097_v47 = vpop.eup %2096  ;;  %2116 = vrcp.f32 %v1312_v2  ;;  %v1313_v28 = vadd.f32 1.0, %v2095_v32  ;;  %3699 = vst [vmem:[#allocation26_spill] sm:$0xff] %v3081_v10  ;;  %v3087_v42 = vpop.f32.mrb[27].mxu1  ;;  %v3091_v21 = vmul.f32 1.442695, %v1050_v1  ;;  %v3105_v1 = vadd.f32 %v2987_v57, %v2787_v43 }
 0x124   : > { %3700 = vst [vmem:[#allocation27_spill] sm:$0xff] %v3085_v14  ;;  %3701 = vst [vmem:[#allocation28_spill] sm:$0xff] %v3087_v42  ;;  %v2099_v27 = vpop.eup %2098  ;;  %2118 = vrcp.f32 %v1333_v54  ;;  %v1323_v8 = vadd.f32 1.0, %v2097_v47  ;;  %v3094_v2 = vmul.f32 1.442695, %v1093_v26  ;;  %v1051_v40 = vsub.f32 0.0, %v3081_v10 }
 0x125   : > { %v2101_v34 = vpop.eup %2100  ;;  %v1486_v32 = vmul.f32 %v2099_v27, %v2833_v37  ;;  %2120 = vrcp.f32 %v1313_v28  ;;  %v3097_v48 = vpop.f32.mrb[28].mxu1  ;;  %v1061_v31 = vsub.f32 0.0, %v3085_v14 }
 0x126   : > { %v3099_v16 = vpop.f32.mrb[28].mxu0  ;;  %v2103_v42 = vpop.eup %2102  ;;  %v1466_v54 = vmul.f32 %v2101_v34, %v2836_v39  ;;  %2122 = vrcp.f32 %v1323_v8  ;;  %v3116_v39 = vadd.f32 %v2995_v9, %v2783_v38  ;;  %v3121_v14 = vmul.f32 1.442695, %v1051_v40 }
 0x127   : > { %v3107_v37 = vpop.f32.mrb[29].mxu1  ;;  %v3109_v26 = vpop.f32.mrb[29].mxu0  ;;  %v1545_v28 = vadd.f32 %v2989_v17, %v1486_v32  ;;  %v1487_v27 = vmul.f32 %v2103_v42, %v2839_v41  ;;  %2124 = vpow2.f32 %v2936_v58  ;;  %v1019_v58 = vsub.f32 0.0, %v3105_v1 }
 0x128   : > { %v2105_v47 = vpop.eup %2104  ;;  %v1569_v8 = vadd.f32 %v1466_v54, %v2978_v63  ;;  %2126 = vpow2.f32 %v2950_v62  ;;  %v3127_v9 = vpop.f32.mrb[30].mxu1  ;;  %v3134_v32 = vmul.f32 1.442695, %v1061_v31 }
 0x129   : > { %v2107_v34 = vpop.eup %2106  ;;  %v1467_v57 = vmul.f32 %v2105_v47, %v2844_v46  ;;  %v1558_v17 = vadd.f32 %v3008_v20, %v1487_v27  ;;  %2128 = vpow2.f32 %v2981_v36  ;;  %v3129_v42 = vpop.f32.mrb[30].mxu0  ;;  %v1062_v47 = vsub.f32 0.0, %v3116_v39 }
 0x12a   : > { %v2109_v10 = vpop.eup %2108  ;;  %v1497_v41 = vmul.f32 %v2107_v34, %v2848_v53  ;;  %2130 = vpow2.f32 %v2983_v25  ;;  %v3136_v20 = vpop.f32.mrb[31].mxu1  ;;  %v3145_v25 = vmul.f32 1.442695, %v1019_v58 }
 0x12b   : > { %v2111_v63 = vpop.eup %2110  ;;  %v1582_v46 = vadd.f32 %v1467_v57, %v3011_v12  ;;  %v1477_v62 = vmul.f32 %v2109_v10, %v2851_v56  ;;  %v3138_v53 = vpop.f32.mrb[31].mxu0  ;;  %2132 = vpow2.f32 %v2993_v45  ;;  %v3161_v57 = vadd.f32 %v3015_v5, %v2779_v35 }
 0x12c   : > { %v2113_v36 = vpop.eup %2112  ;;  %v1546_v40 = vadd.f32 %v1545_v28, %v1497_v41  ;;  %v1498_v54 = vmul.f32 %v2111_v63, %v2864_v15  ;;  %2134 = vpow2.f32 %v3031_v11  ;;  %v3151_v15 = vadd.f32 %v2997_v7, %v2789_v44  ;;  %v3153_v45 = vpop.f32.mrb[32].mxu1 }
 0x12d   : > { %v2115_v27 = vpop.eup %2114  ;;  %v1570_v12 = vadd.f32 %v1569_v8, %v1477_v62  ;;  %v1478_v56 = vmul.f32 %v2113_v36, %v2874_v50  ;;  %2136 = vpow2.f32 %v3033_v30  ;;  %v3155_v28 = vpop.f32.mrb[32].mxu0  ;;  %v3169_v58 = vmul.f32 1.442695, %v1062_v47 }
 0x12e   : > { %v2117_v10 = vpop.eup %2116  ;;  %v1559_v31 = vadd.f32 %v1558_v17, %v1498_v54  ;;  %v1508_v34 = vmul.f32 %v2115_v27, %v2877_v51  ;;  %2138 = vpow2.f32 %v3049_v3  ;;  %v3163_v51 = vpop.f32.mrb[33].mxu1  ;;  %v1020_v5 = vsub.f32 0.0, %v3151_v15 }
 0x12f   : > { %v2119_v8 = vpop.eup %2118  ;;  %v1583_v50 = vadd.f32 %v1582_v46, %v1478_v56  ;;  %v1488_v11 = vmul.f32 %v2117_v10, %v2882_v60  ;;  %v3165_v30 = vpop.f32.mrb[33].mxu0  ;;  %2140 = vpow2.f32 %v3051_v23 }
 0x130   : > { %v2121_v7 = vpop.eup %2120  ;;  %v1547_v17 = vadd.f32 %v1546_v40, %v1508_v34  ;;  %v1509_v41 = vmul.f32 %v2119_v8, %v2888_v24  ;;  %2142 = vpow2.f32 %v3067_v0  ;;  %v3177_v24 = vpop.f32.mrb[34].mxu1  ;;  %v1072_v0 = vsub.f32 0.0, %v3161_v57 }
 0x131   : > { %v2123_v63 = vpop.eup %2122  ;;  %v1571_v60 = vadd.f32 %v1570_v12, %v1488_v11  ;;  %v1489_v3 = vmul.f32 %v2121_v7, %v2898_v19  ;;  %2144 = vpow2.f32 %v3069_v52  ;;  %v3179_v23 = vpop.f32.mrb[34].mxu0  ;;  %v3193_v8 = vmul.f32 1.442695, %v1020_v5 }
 0x132   : > { %v2125_v46 = vpop.eup %2124  ;;  %v1548_v62 = vadd.f32 %v1547_v17, %v2924_v18  ;;  %v1560_v36 = vadd.f32 %v1559_v31, %v1509_v41  ;;  %v1499_v40 = vmul.f32 %v2123_v63, %v2901_v29  ;;  %2146 = vpow2.f32 %v3089_v13  ;;  %v3185_v27 = vpop.f32.mrb[35].mxu1 }
 0x133   : > { %v2127_v54 = vpop.eup %2126  ;;  %v3181_v47 = vadd.f32 %v1583_v50, %v1489_v3  ;;  %v1281_v19 = vadd.f32 1.0, %v2125_v46  ;;  %v3187_v18 = vpop.f32.mrb[35].mxu0  ;;  %v3197_v13 = vadd.f32 %v3017_v61, %v2787_v43  ;;  %v3207_v3 = vadd.f32 %v3027_v22, %v2783_v38 }
 0x134   : > { %3702 = vst [vmem:[#allocation29_spill] sm:$0xff] %v3187_v18  ;;  %v2129_v12 = vpop.eup %2128  ;;  %v1549_v29 = vadd.f32 %v1548_v62, %v2947_v33  ;;  %v1561_v52 = vadd.f32 %v1560_v36, %v2933_v6  ;;  %v3191_v56 = vadd.f32 %v1571_v60, %v1499_v40  ;;  %v1324_v10 = vadd.f32 1.0, %v2127_v54  ;;  %v3200_v17 = vpop.f32.mrb[36].mxu0 }
 0x135   : > { %v2131_v31 = vpop.eup %2130  ;;  %2148 = vrcp.f32 %v1281_v19  ;;  %v1282_v34 = vadd.f32 1.0, %v2129_v12  ;;  %3703 = vst [vmem:[#allocation30_spill] sm:$0xff] %v3200_v17  ;;  %v3202_v6 = vpop.f32.mrb[36].mxu1  ;;  %v1030_v60 = vsub.f32 0.0, %v3197_v13  ;;  %v3213_v19 = vmul.f32 1.442695, %v1072_v0 }
 0x136   : > { %v2133_v50 = vpop.eup %2132  ;;  %v1550_v11 = vrot.slane %v1549_v29, 4  ;;  %v1562_v7 = vadd.f32 %v1561_v52, %v2973_v59  ;;  %2150 = vrcp.f32 %v1324_v10  ;;  %v1334_v33 = vadd.f32 1.0, %v2131_v31  ;;  %3704 = vst [vmem:[#allocation31_spill] sm:$0xff] %v3202_v6  ;;  %v3209_v61 = vpop.f32.mrb[37].mxu0 }
 0x137   : > { %v2135_v41 = vpop.eup %2134  ;;  %2152 = vrcp.f32 %v1282_v34  ;;  %v1292_v63 = vadd.f32 1.0, %v2133_v50  ;;  %3705 = vst [vmem:[#allocation32_spill] sm:$0xff] %v3209_v61  ;;  %v3211_v5 = vpop.f32.mrb[37].mxu1  ;;  %v3215_v12 = vmul.f32 1.442695, %v1030_v60  ;;  %v3224_v0 = vadd.f32 %v3029_v55, %v2789_v44 }
 0x138   : > { %3706 = vst [vmem:[#allocation33_spill] sm:$0xff] %v3211_v5  ;;  %v2137_v59 = vpop.eup %2136  ;;  %v1551_v46 = vadd.f32 %v1550_v11, %v1549_v29  ;;  %v1563_v62 = vrot.slane %v1562_v7, 4  ;;  %2154 = vrcp.f32 %v1334_v33  ;;  %v1335_v36 = vadd.f32 1.0, %v2135_v41  ;;  %v3217_v34 = vpop.f32.mrb[38].mxu0 }
 0x139   : > { %v2139_v40 = vpop.eup %2138  ;;  %2156 = vrcp.f32 %v1292_v63  ;;  %v1293_v54 = vadd.f32 1.0, %v2137_v59  ;;  %3707 = vst [vmem:[#allocation34_spill] sm:$0xff] %v3217_v34  ;;  %v3219_v50 = vpop.f32.mrb[38].mxu1  ;;  %v1073_v33 = vsub.f32 0.0, %v3207_v3 }
 0x13a   : > { %v2141_v52 = vpop.eup %2140  ;;  %v1552_v10 = vrot.slane %v1551_v46, 2  ;;  %v1564_v22 = vadd.f32 %v1563_v62, %v1562_v7  ;;  %2158 = vrcp.f32 %v1335_v36  ;;  %v1345_v31 = vadd.f32 1.0, %v2139_v40  ;;  %3708 = vst [vmem:[#allocation35_spill] sm:$0xff] %v3219_v50  ;;  %v3226_v41 = vpop.f32.mrb[39].mxu0 }
 0x13b   : > { %v2143_v29 = vpop.eup %2142  ;;  %2160 = vrcp.f32 %v1293_v54  ;;  %v1303_v11 = vadd.f32 1.0, %v2141_v52  ;;  %3709 = vst [vmem:[#allocation36_spill] sm:$0xff] %v3226_v41  ;;  %v3228_v63 = vpop.f32.mrb[39].mxu1  ;;  %v1031_v54 = vsub.f32 0.0, %v3224_v0  ;;  %v3711_v52 = vld [vmem:[#allocation19_spill] sm:$0xff] }
 0x13c   : > { %3710 = vst [vmem:[#allocation37_spill] sm:$0xff] %v3228_v63  ;;  %v2145_v7 = vpop.eup %2144  ;;  %v1553_v60 = vadd.f32 %v1552_v10, %v1551_v46  ;;  %v1565_v59 = vrot.slane %v1564_v22, 2  ;;  %2162 = vrcp.f32 %v1345_v31  ;;  %v1346_v62 = vadd.f32 1.0, %v2143_v29  ;;  %v3235_v5 = vpop.f32.mrb[40].mxu0  ;;  %v3714_v29 = vld [vmem:[#allocation20_spill] sm:$0xff] }
 0x13d   : > { %v2147_v36 = vpop.eup %2146  ;;  %2164 = vrcp.f32 %v1303_v11  ;;  %v1304_v40 = vadd.f32 1.0, %v2145_v7  ;;  %v3233_v50 = vadd.f32 %v3711_v52, %v2779_v35  ;;  %3712 = vst [vmem:[#allocation19_spill] sm:$0xff] %v3235_v5  ;;  %v3237_v63 = vpop.f32.mrb[40].mxu1  ;;  %v1221_v10 = vmul.f32 1.442695, %v1073_v33  ;;  %v3717_v5 = vld [vmem:[#allocation7_spill] sm:$0xff] }
 0x13e   : > { %v1554_v55 = vrot.slane %v1553_v60, 1  ;;  %v1566_v34 = vadd.f32 %v1565_v59, %v1564_v22  ;;  %2166 = vrcp.f32 %v1346_v62  ;;  %v1356_v41 = vadd.f32 1.0, %v2147_v36  ;;  %3713 = vst [vmem:[#allocation38_spill] sm:$0xff] %v3237_v63  ;;  %v3244_v7 = vpop.f32.mrb[41].mxu0  ;;  %v3246_v52 = vpop.f32.mrb[41].mxu1  ;;  %v3718_v33 = vld [vmem:[#allocation8_spill] sm:$0xff] }
 0x13f   : > { %v2149_v46 = vpop.eup %2148  ;;  %2168 = vrcp.f32 %v1304_v40  ;;  %v1083_v31 = vsub.f32 0.0, %v3233_v50  ;;  %v3242_v11 = vadd.f32 %v3714_v29, %v2787_v43  ;;  %3715 = vst [vmem:[#allocation20_spill] sm:$0xff] %v3244_v7  ;;  %3716 = vst [vmem:[#allocation39_spill] sm:$0xff] %v3246_v52  ;;  %v1137_v36 = vmul.f32 1.442695, %v1031_v54  ;;  %v3729_v7 = vld [vmem:[#allocation14_spill] sm:$0xff] }
 0x140   : > { %v2151_v22 = vpop.eup %2150  ;;  %v3248_v59 = vadd.f32 %v1554_v55, %v1553_v60  ;;  %v1567_v62 = vrot.slane %v1566_v34, 1  ;;  %2170 = vrcp.f32 %v1356_v41  ;;  %v1457_v40 = vmul.f32 %v2149_v46, %v3717_v5  ;;  %v3261_v41 = vpop.f32.mrb[42].mxu0 }
 0x141   : > { %v2153_v63 = vpop.eup %2152  ;;  %v1500_v61 = vmul.f32 %v2151_v22, %v3718_v33  ;;  %2172 = vpow2.f32 %v3091_v21  ;;  %v1241_v6 = vmul.f32 1.442695, %v1083_v31  ;;  %v1041_v52 = vsub.f32 0.0, %v3242_v11  ;;  %3719 = vst [vmem:[#allocation7_spill] sm:$0xff] %v3261_v41  ;;  %v3263_v54 = vpop.f32.mrb[42].mxu1  ;;  %v3721_v21 = vld [vmem:[#allocation9_spill] sm:$0xff] }
 0x142   : > { %v2155_v29 = vpop.eup %2154  ;;  %v3253_v17 = vadd.f32 %v1567_v62, %v1566_v34  ;;  %2174 = vpow2.f32 %v3094_v2  ;;  %v3259_v60 = vadd.f32 %v3053_v4, %v2783_v38  ;;  %3720 = vst [vmem:[#allocation8_spill] sm:$0xff] %v3263_v54  ;;  %v1458_v46 = vmul.f32 %v2153_v63, %v3721_v21  ;;  %v3722_v31 = vld [vmem:[#allocation10_spill] sm:$0xff]  ;;  %v3269_v2 = vpop.f32.mrb[43].mxu0  ;;  %v3725_v33 = vld [vmem:[#allocation11_spill] sm:$0xff]  ;;  %v3728_v4 = vld [vmem:[#allocation13_spill] sm:$0xff] }
 0x143   : > { %v2157_v5 = vpop.eup %2156  ;;  %v1585_v55 = vadd.f32 %v3181_v47, %v1500_v61  ;;  %v1510_v34 = vmul.f32 %v2155_v29, %v3722_v31  ;;  %2176 = vpow2.f32 %v3121_v14  ;;  %3723 = vst [vmem:[#allocation9_spill] sm:$0xff] %v3269_v2  ;;  %v3271_v22 = vpop.f32.mrb[43].mxu1  ;;  %v3726_v29 = vld [vmem:[#allocation12_spill] sm:$0xff]  ;;  %v3727_v14 = vld [vmem:[#allocation21_spill] sm:$0xff] }
 0x144   : > { %3724 = vst [vmem:[#allocation10_spill] sm:$0xff] %v3271_v22  ;;  %v2159_v62 = vpop.eup %2158  ;;  %v1468_v41 = vmul.f32 %v2157_v5, %v3725_v33  ;;  %2178 = vpow2.f32 %v3134_v32  ;;  %v1084_v47 = vsub.f32 0.0, %v3259_v60  ;;  %v3283_v31 = vadd.f32 %v3727_v14, %v2789_v44 }
 0x145   : > { %v2161_v61 = vpop.eup %2160  ;;  %v1573_v63 = vadd.f32 %v3191_v56, %v1510_v34  ;;  %v1511_v21 = vmul.f32 %v2159_v62, %v3726_v29  ;;  %2180 = vpow2.f32 %v3145_v25  ;;  %v1157_v32 = vmul.f32 1.442695, %v1041_v52  ;;  %v3730_v62 = vld [vmem:[#allocation15_spill] sm:$0xff] }
 0x146   : > { %v2163_v22 = vpop.eup %2162  ;;  %v1595_v2 = vadd.f32 %v1468_v41, %v1457_v40  ;;  %v1469_v54 = vmul.f32 %v2161_v61, %v3728_v4  ;;  %2182 = vpow2.f32 %v3169_v58  ;;  %v3289_v56 = vmul.f32 1.442695, %v1084_v47  ;;  %v3731_v58 = vld [vmem:[#allocation16_spill] sm:$0xff] }
 0x147   : > { %v2165_v5 = vpop.eup %2164  ;;  %v1586_v33 = vadd.f32 %v1585_v55, %v1511_v21  ;;  %v1521_v18 = vmul.f32 %v2163_v22, %v3729_v7  ;;  %2184 = vpow2.f32 %v3193_v8  ;;  %v1042_v40 = vsub.f32 0.0, %v3283_v31 }
 0x148   : > { %v2167_v25 = vpop.eup %2166  ;;  %v1608_v34 = vadd.f32 %v1469_v54, %v1458_v46  ;;  %v1479_v29 = vmul.f32 %v2165_v5, %v3730_v62  ;;  %2186 = vpow2.f32 %v3213_v19  ;;  %v3298_v7 = vadd.f32 %v3071_v49, %v2779_v35  ;;  %v3732_v54 = vld [vmem:[#allocation17_spill] sm:$0xff]  ;;  %v3734_v49 = vld [vmem:[#allocation24_spill] sm:$0xff] }
 0x149   : > { %v2169_v41 = vpop.eup %2168  ;;  %v1574_v4 = vadd.f32 %v1573_v63, %v1521_v18  ;;  %v1522_v52 = vmul.f32 %v2167_v25, %v3731_v58  ;;  %2188 = vpow2.f32 %v3215_v12  ;;  %v3303_v22 = vmul.f32 1.442695, %v1042_v40  ;;  %v3733_v18 = vld [vmem:[#allocation18_spill] sm:$0xff]  ;;  %v3736_v58 = vld [vmem:[#allocation28_spill] sm:$0xff] }
 0x14a   : > { %v2171_v8 = vpop.eup %2170  ;;  %v3300_v55 = vadd.f32 %v1595_v2, %v1479_v29  ;;  %v1480_v46 = vmul.f32 %v2169_v41, %v3732_v54  ;;  %2190 = vpow2.f32 %v1221_v10  ;;  %v1094_v12 = vsub.f32 0.0, %v3298_v7 }
 0x14b   : > { %v2173_v19 = vpop.eup %2172  ;;  %v3305_v47 = vadd.f32 %v1586_v33, %v1522_v52  ;;  %v1532_v61 = vmul.f32 %v2171_v8, %v3733_v18  ;;  %2192 = vpow2.f32 %v1137_v36  ;;  %v3313_v2 = vadd.f32 %v3734_v49, %v2787_v43 }
 0x14c   : > { %v2175_v63 = vpop.eup %2174  ;;  %v3309_v21 = vadd.f32 %v1608_v34, %v1480_v46  ;;  %v1314_v35 = vadd.f32 1.0, %v2173_v19  ;;  %2194 = vpow2.f32 %v1241_v6  ;;  %v3315_v33 = vmul.f32 1.442695, %v1094_v12  ;;  %v3735_v34 = vld [vmem:[#allocation25_spill] sm:$0xff] }
 0x14d   : > { %v2177_v10 = vpop.eup %2176  ;;  %v1575_v14 = vadd.f32 %v1574_v4, %v1532_v61  ;;  %v1357_v5 = vadd.f32 1.0, %v2175_v63  ;;  %2196 = vpow2.f32 %v1157_v32  ;;  %v1052_v62 = vsub.f32 0.0, %v3313_v2 }
 0x14e   : > { %v2179_v25 = vpop.eup %2178  ;;  %2198 = vrcp.f32 %v1314_v35  ;;  %v1315_v36 = vadd.f32 1.0, %v2177_v10  ;;  %v3320_v29 = vadd.f32 %v3735_v34, %v2783_v38  ;;  %v3324_v4 = vadd.f32 %v3736_v58, %v2789_v44  ;;  %v3737_v34 = vld [vmem:[#allocation4_spill] sm:$0xff] }
 0x14f   : > { %v2181_v6 = vpop.eup %2180  ;;  %v1576_v40 = vrot.slane %v1575_v14, 4  ;;  %2200 = vrcp.f32 %v1357_v5  ;;  %v1325_v41 = vadd.f32 1.0, %v2179_v25  ;;  %v3326_v8 = vmul.f32 1.442695, %v1052_v62 }
 0x150   : > { %v2183_v32 = vpop.eup %2182  ;;  %2202 = vrcp.f32 %v1315_v36  ;;  %v1283_v52 = vadd.f32 1.0, %v2181_v6  ;;  %v1095_v54 = vsub.f32 0.0, %v3320_v29  ;;  %v1053_v18 = vsub.f32 0.0, %v3324_v4 }
 0x151   : > { %v2185_v46 = vpop.eup %2184  ;;  %v1577_v19 = vadd.f32 %v1576_v40, %v1575_v14  ;;  %2204 = vrcp.f32 %v1325_v41  ;;  %v1326_v38 = vadd.f32 1.0, %v2183_v32  ;;  %v3334_v35 = vadd.f32 %v3097_v48, %v2787_v43 }
 0x152   : > { %v2187_v61 = vpop.eup %2186  ;;  %2206 = vrcp.f32 %v1283_v52  ;;  %v1284_v12 = vadd.f32 1.0, %v2185_v46  ;;  %v3330_v63 = vmul.f32 1.442695, %v1095_v54  ;;  %v3336_v25 = vmul.f32 1.442695, %v1053_v18 }
 0x153   : > { %v2189_v49 = vpop.eup %2188  ;;  %v1578_v10 = vrot.slane %v1577_v19, 2  ;;  %2208 = vrcp.f32 %v1326_v38  ;;  %v1336_v5 = vadd.f32 1.0, %v2187_v61  ;;  %v1063_v62 = vsub.f32 0.0, %v3334_v35 }
 0x154   : > { %v2191_v14 = vpop.eup %2190  ;;  %2210 = vrcp.f32 %v1284_v12  ;;  %v1294_v36 = vadd.f32 1.0, %v2189_v49  ;;  %v3341_v6 = vadd.f32 %v3099_v16, %v3737_v34  ;;  %v3345_v58 = vadd.f32 %v3107_v37, %v2789_v44 }
 0x155   : > { %v2193_v40 = vpop.eup %2192  ;;  %v1579_v41 = vadd.f32 %v1578_v10, %v1577_v19  ;;  %2212 = vrcp.f32 %v1336_v5  ;;  %v1337_v48 = vadd.f32 1.0, %v2191_v14  ;;  %v1201_v54 = vmul.f32 1.442695, %v1063_v62  ;;  %v3740_v10 = vld [vmem:[#allocation5_spill] sm:$0xff] }
 0x156   : > { %3738 = vst [vmem:[#allocation11_spill] sm:$0xff] %v3341_v6  ;;  %3739 = vst [vmem:[#allocation12_spill] sm:$0xff] %v3345_v58  ;;  %v2195_v32 = vpop.eup %2194  ;;  %2214 = vrcp.f32 %v1294_v36  ;;  %v1295_v52 = vadd.f32 1.0, %v2193_v40  ;;  %v1021_v46 = vsub.f32 0.0, %v3341_v6  ;;  %v1064_v16 = vsub.f32 0.0, %v3345_v58  ;;  %v3741_v36 = vld [vmem:[#allocation22_spill] sm:$0xff] }
 0x157   : > { %v2197_v38 = vpop.eup %2196  ;;  %v1580_v18 = vrot.slane %v1579_v41, 1  ;;  %2216 = vrcp.f32 %v1337_v48  ;;  %v1347_v61 = vadd.f32 1.0, %v2195_v32  ;;  %v3351_v37 = vadd.f32 %v3109_v26, %v3740_v10  ;;  %v3742_v48 = vld [vmem:[#allocation23_spill] sm:$0xff] }
 0x158   : > { %v2199_v12 = vpop.eup %2198  ;;  %2218 = vrcp.f32 %v1295_v52  ;;  %v1305_v19 = vadd.f32 1.0, %v2197_v38  ;;  %v1117_v49 = vmul.f32 1.442695, %v1021_v46  ;;  %v1203_v40 = vmul.f32 1.442695, %v1064_v16  ;;  %v3743_v38 = vld [vmem:[#allocation26_spill] sm:$0xff] }
 0x159   : > { %v2201_v5 = vpop.eup %2200  ;;  %v3353_v14 = vadd.f32 %v1580_v18, %v1579_v41  ;;  %v1490_v62 = vmul.f32 %v2199_v12, %v3741_v36  ;;  %2220 = vrcp.f32 %v1347_v61  ;;  %v1022_v58 = vsub.f32 0.0, %v3351_v37  ;;  %v3744_v12 = vld [vmem:[#allocation27_spill] sm:$0xff] }
 0x15a   : > { %v2203_v6 = vpop.eup %2202  ;;  %v1533_v32 = vmul.f32 %v2201_v5, %v3742_v48  ;;  %2222 = vrcp.f32 %v1305_v19  ;;  %v3360_v52 = vadd.f32 %v3127_v9, %v2787_v43  ;;  %v3367_v18 = vadd.f32 %v3129_v42, %v3737_v34 }
 0x15b   : > { %v2205_v46 = vpop.eup %2204  ;;  %v1597_v26 = vadd.f32 %v3300_v55, %v1490_v62  ;;  %v1491_v41 = vmul.f32 %v2203_v6, %v3743_v38  ;;  %2224 = vpow2.f32 %v3289_v56  ;;  %v1119_v9 = vmul.f32 1.442695, %v1022_v58 }
 0x15c   : > { %v2207_v61 = vpop.eup %2206  ;;  %v1588_v16 = vadd.f32 %v3305_v47, %v1533_v32  ;;  %v1501_v19 = vmul.f32 %v2205_v46, %v3744_v12  ;;  %2226 = vpow2.f32 %v3303_v22  ;;  %v1074_v56 = vsub.f32 0.0, %v3360_v52 }
 0x15d   : > { %v2209_v5 = vpop.eup %2208  ;;  %v1610_v36 = vadd.f32 %v3309_v21, %v1491_v41  ;;  %v1459_v55 = vmul.f32 %v2207_v61, %v3105_v1  ;;  %2228 = vpow2.f32 %v3315_v33  ;;  %v1032_v21 = vsub.f32 0.0, %v3367_v18 }
 0x15e   : > { %v2211_v6 = vpop.eup %2210  ;;  %v1589_v42 = vrot.slane %v1588_v16, 4  ;;  %v1598_v62 = vadd.f32 %v1597_v26, %v1501_v19  ;;  %v1502_v48 = vmul.f32 %v2209_v5, %v3116_v39  ;;  %2230 = vpow2.f32 %v3326_v8 }
 0x15f   : > { %v2213_v47 = vpop.eup %2212  ;;  %v1460_v22 = vmul.f32 %v2211_v6, %v3151_v15  ;;  %2232 = vpow2.f32 %v3330_v63  ;;  %v1223_v58 = vmul.f32 1.442695, %v1074_v56  ;;  %v1139_v8 = vmul.f32 1.442695, %v1032_v21 }
 0x160   : > { %v2215_v1 = vpop.eup %2214  ;;  %v1590_v32 = vadd.f32 %v1589_v42, %v1588_v16  ;;  %v1611_v33 = vadd.f32 %v1610_v36, %v1502_v48  ;;  %v1512_v46 = vmul.f32 %v2213_v47, %v3161_v57  ;;  %2234 = vpow2.f32 %v3336_v25 }
 0x161   : > { %v2217_v26 = vpop.eup %2216  ;;  %v1470_v39 = vmul.f32 %v2215_v1, %v3197_v13  ;;  %2236 = vpow2.f32 %v1201_v54  ;;  %v3386_v15 = vadd.f32 %v3136_v20, %v2789_v44  ;;  %v3407_v47 = vadd.f32 %v3153_v45, %v2787_v43 }
 0x162   : > { %v2219_v63 = vpop.eup %2218  ;;  %v1591_v38 = vrot.slane %v1590_v32, 2  ;;  %v1599_v41 = vadd.f32 %v1598_v62, %v1512_v46  ;;  %v1513_v61 = vmul.f32 %v2217_v26, %v3207_v3  ;;  %2238 = vpow2.f32 %v1117_v49  ;;  %v3745_v26 = vld [vmem:[#allocation6_spill] sm:$0xff] }
 0x163   : > { %v2221_v16 = vpop.eup %2220  ;;  %v1621_v12 = vadd.f32 %v1470_v39, %v1459_v55  ;;  %v1471_v57 = vmul.f32 %v2219_v63, %v3224_v0  ;;  %2240 = vpow2.f32 %v1203_v40  ;;  %v1075_v25 = vsub.f32 0.0, %v3386_v15 }
 0x164   : > { %v2223_v13 = vpop.eup %2222  ;;  %v1592_v54 = vadd.f32 %v1591_v38, %v1590_v32  ;;  %v3391_v19 = vadd.f32 %v1611_v33, %v1513_v61  ;;  %v1523_v20 = vmul.f32 %v2221_v16, %v3233_v50  ;;  %2242 = vpow2.f32 %v1119_v9 }
 0x165   : > { %v2225_v5 = vpop.eup %2224  ;;  %v3394_v36 = vadd.f32 %v1471_v57, %v1460_v22  ;;  %v1481_v3 = vmul.f32 %v2223_v13, %v3242_v11  ;;  %2244 = vpow2.f32 %v1223_v58  ;;  %v1225_v49 = vmul.f32 1.442695, %v1075_v25 }
 0x166   : > { %v2227_v55 = vpop.eup %2226  ;;  %v1593_v56 = vrot.slane %v1592_v54, 1  ;;  %v3397_v0 = vadd.f32 %v1599_v41, %v1523_v20  ;;  %v1348_v40 = vadd.f32 1.0, %v2225_v5  ;;  %2246 = vpow2.f32 %v1139_v8 }
 0x167   : > { %v2229_v6 = vpop.eup %2228  ;;  %v3399_v42 = vadd.f32 %v1621_v12, %v1481_v3  ;;  %v1306_v62 = vadd.f32 1.0, %v2227_v55  ;;  %2248 = vpow2.f32 %v1225_v49  ;;  %v3403_v50 = vadd.f32 %v3138_v53, %v3740_v10 }
 0x168   : > { %v2231_v9 = vpop.eup %2230  ;;  %v1594_v48 = vadd.f32 %v1593_v56, %v1592_v54  ;;  %2250 = vrcp.f32 %v1348_v40  ;;  %v1358_v11 = vadd.f32 1.0, %v2229_v6  ;;  %v3412_v1 = vadd.f32 %v3155_v28, %v3737_v34 }
 0x169   : > { %v2233_v22 = vpop.eup %2232  ;;  %2252 = vrcp.f32 %v1306_v62  ;;  %v1316_v58 = vadd.f32 1.0, %v2231_v9  ;;  %v1033_v21 = vsub.f32 0.0, %v3403_v50  ;;  %v3746_v45 = vcombine.low %v3248_v59, %v3253_v17 }
 0x16a   : > { %v2235_v32 = vpop.eup %2234  ;;  %v1698_v53 = vcombine.low %v3353_v14, %v1594_v48  ;;  %2254 = vrcp.f32 %v1358_v11  ;;  %v1359_v33 = vadd.f32 1.0, %v2233_v22  ;;  %v1085_v63 = vsub.f32 0.0, %v3407_v47 }
 0x16b   : > { %v2237_v46 = vpop.eup %2236  ;;  %v3419_v39 = vrot.slane %v3746_v45, %v3745_v26  ;;  %2256 = vrcp.f32 %v1316_v58  ;;  %v1317_v8 = vadd.f32 1.0, %v2235_v32  ;;  %v1141_v14 = vmul.f32 1.442695, %v1033_v21 }
 0x16c   : > { %v2239_v38 = vpop.eup %2238  ;;  %v3423_v28 = vrot.slane %v1698_v53, %v3745_v26  ;;  %2258 = vrcp.f32 %v1359_v33  ;;  %v1327_v41 = vadd.f32 1.0, %v2237_v46  ;;  %v1043_v12 = vsub.f32 0.0, %v3412_v1  ;;  %v3747_v46 = vld [vmem:[#allocation29_spill] sm:$0xff] }
 0x16d   : > { %v2241_v61 = vpop.eup %2240  ;;  %2260 = vrcp.f32 %v1317_v8  ;;  %v1285_v16 = vadd.f32 1.0, %v2239_v38  ;;  %v3428_v17 = vadd.f32 %v3163_v51, %v2789_v44  ;;  %v3434_v13 = vadd.f32 %v3165_v30, %v3740_v10 }
 0x16e   : > { %v2243_v59 = vpop.eup %2242  ;;  %v1729_v57 = vcombine.low %v3419_v39, %v3423_v28  ;;  %2262 = vrcp.f32 %v1327_v41  ;;  %v1328_v25 = vadd.f32 1.0, %v2241_v61  ;;  %v3439_v3 = vadd.f32 %v3177_v24, %v2787_v43 }
 0x16f   : > { %v2245_v54 = vpop.eup %2244  ;;  %2264 = vrcp.f32 %v1285_v16  ;;  %v1286_v20 = vadd.f32 1.0, %v2243_v59  ;;  %v1086_v5 = vsub.f32 0.0, %v3428_v17  ;;  %v1245_v55 = vmul.f32 1.442695, %v1085_v63 }
 0x170   : > { %v2247_v51 = vpop.eup %2246  ;;  %2266 = vrcp.f32 %v1328_v25  ;;  %v1338_v49 = vadd.f32 1.0, %v2245_v54  ;;  %v1044_v56 = vsub.f32 0.0, %v3434_v13  ;;  %v1161_v30 = vmul.f32 1.442695, %v1043_v12 }
 0x171   : > { %v2249_v40 = vpop.eup %2248  ;;  %2268 = vrcp.f32 %v1286_v20  ;;  %v1296_v6 = vadd.f32 1.0, %v2247_v51  ;;  %v1096_v62 = vsub.f32 0.0, %v3439_v3  ;;  %v1247_v11 = vmul.f32 1.442695, %v1086_v5  ;;  %v3748_v5 = vld [vmem:[#allocation11_spill] sm:$0xff] }
 0x172   : > { %v2251_v9 = vpop.eup %2250  ;;  %2270 = vrcp.f32 %v1338_v49  ;;  %v1339_v48 = vadd.f32 1.0, %v2249_v40  ;;  %v3445_v43 = vadd.f32 %v3179_v23, %v3737_v34  ;;  %v1163_v58 = vmul.f32 1.442695, %v1044_v56  ;;  %v3749_v56 = vld [vmem:[#allocation12_spill] sm:$0xff] }
 0x173   : > { %v2253_v24 = vpop.eup %2252  ;;  %v1524_v22 = vmul.f32 %v2251_v9, %v3259_v60  ;;  %2272 = vrcp.f32 %v1296_v6  ;;  %v3450_v21 = vadd.f32 %v3185_v27, %v2789_v44  ;;  %v3456_v45 = vadd.f32 %v3747_v46, %v3740_v10  ;;  %v2376_v9 = vld [vmem:[%s3649_s2 + $0x8] sm:$0x7] }
 0x174   : > { %v2255_v32 = vpop.eup %2254  ;;  %v1482_v53 = vmul.f32 %v2253_v24, %v3283_v31  ;;  %2274 = vrcp.f32 %v1339_v48  ;;  %v1054_v33 = vsub.f32 0.0, %v3445_v43  ;;  %v1267_v63 = vmul.f32 1.442695, %v1096_v62  ;;  %v3750_v62 = vld [vmem:[#allocation30_spill] sm:$0xff]  ;;  %v3751_v48 = vld [vmem:[#allocation3_spill] sm:$0xff] }
 0x175   : > { %v2257_v23 = vpop.eup %2256  ;;  %v1613_v8 = vadd.f32 %v3391_v19, %v1524_v22  ;;  %v1534_v60 = vmul.f32 %v2255_v32, %v3298_v7  ;;  %2276 = vpow2.f32 %v1141_v14  ;;  %v1097_v31 = vsub.f32 0.0, %v3450_v21 }
 0x176   : > { %v2259_v38 = vpop.eup %2258  ;;  %v1635_v44 = vadd.f32 %v3394_v36, %v1482_v53  ;;  %v1492_v27 = vmul.f32 %v2257_v23, %v3313_v2  ;;  %2278 = vpow2.f32 %v1245_v55  ;;  %v1183_v12 = vmul.f32 1.442695, %v1054_v33 }
 0x177   : > { %v2261_v41 = vpop.eup %2260  ;;  %v1601_v61 = vadd.f32 %v3397_v0, %v1534_v60  ;;  %v1535_v16 = vmul.f32 %v2259_v38, %v3320_v29  ;;  %2280 = vpow2.f32 %v1161_v30  ;;  %v1055_v36 = vsub.f32 0.0, %v3456_v45  ;;  %v3753_v60 = vld [vmem:[#allocation31_spill] sm:$0xff] }
 0x178   : > { %v2263_v19 = vpop.eup %2262  ;;  %v1623_v7 = vadd.f32 %v3399_v42, %v1492_v27  ;;  %v1493_v14 = vmul.f32 %v2261_v41, %v3324_v4  ;;  %2282 = vpow2.f32 %v1247_v11  ;;  %v1269_v51 = vmul.f32 1.442695, %v1097_v31 }
 0x179   : > { %v2265_v59 = vpop.eup %2264  ;;  %v1602_v2 = vrot.slane %v1601_v61, 4  ;;  %v1614_v25 = vadd.f32 %v1613_v8, %v1535_v16  ;;  %v1503_v54 = vmul.f32 %v2263_v19, %v3334_v35  ;;  %2284 = vpow2.f32 %v1163_v58 }
 0x17a   : > { %v2267_v20 = vpop.eup %2266  ;;  %v1636_v0 = vadd.f32 %v1635_v44, %v1493_v14  ;;  %v1461_v29 = vmul.f32 %v2265_v59, %v3748_v5  ;;  %2286 = vpow2.f32 %v1267_v63  ;;  %v1185_v30 = vmul.f32 1.442695, %v1055_v36 }
 0x17b   : > { %v3470_v49 = vpop.eup %2268  ;;  %v1603_v42 = vadd.f32 %v1602_v2, %v1601_v61  ;;  %v1615_v55 = vrot.slane %v1614_v25, 4  ;;  %v1624_v4 = vadd.f32 %v1623_v7, %v1503_v54  ;;  %v1504_v40 = vmul.f32 %v2267_v20, %v3749_v56  ;;  %v3754_v54 = vld [vmem:[#allocation32_spill] sm:$0xff] }
 0x17c   : > { %v2271_v6 = vpop.eup %2270  ;;  %2288 = vpow2.f32 %v1183_v12  ;;  %v3475_v35 = vadd.f32 %v3750_v62, %v3737_v34  ;;  %v3752_v11 = vsub.s32 2, %v3751_v48  ;;  %v3756_v48 = vld [vmem:[#allocation34_spill] sm:$0xff] }
 0x17d   : > { %v2273_v22 = vpop.eup %2272  ;;  %v1604_v58 = vrot.slane %v1603_v42, 2  ;;  %v1616_v32 = vadd.f32 %v1615_v55, %v1614_v25  ;;  %v1637_v53 = vadd.f32 %v1636_v0, %v1504_v40  ;;  %v1514_v33 = vmul.f32 %v2271_v6, %v3360_v52  ;;  %v3755_v6 = vld [vmem:[#allocation33_spill] sm:$0xff] }
 0x17e   : > { %v3482_v24 = vrot.slane %v2376_v9, %v3752_v11  ;;  %v2275_v46 = vpop.eup %2274  ;;  %v1472_v23 = vmul.f32 %v2273_v22, %v3367_v18  ;;  %2290 = vpow2.f32 %v1269_v51  ;;  %v1065_v8 = vsub.f32 0.0, %v3475_v35  ;;  %v3757_v22 = vld [vmem:[#allocation35_spill] sm:$0xff] }
 0x17f   : > { %v2277_v38 = vpop.eup %2276  ;;  %v1605_v44 = vadd.f32 %v1604_v58, %v1603_v42  ;;  %v1617_v27 = vrot.slane %v1616_v32, 2  ;;  %v3491_v31 = vadd.f32 %v1624_v4, %v1514_v33  ;;  %v1515_v41 = vmul.f32 %v2275_v46, %v3386_v15 }
 0x180   : > { %v3489_v63 = vadd.f32 %v3753_v60, %v3482_v24  ;;  %v2279_v61 = vpop.eup %2278  ;;  %v3494_v16 = vadd.f32 %v1472_v23, %v1461_v29  ;;  %v1297_v52 = vadd.f32 1.0, %v2277_v38  ;;  %2292 = vpow2.f32 %v1185_v30  ;;  %v3758_v60 = vld [vmem:[#allocation36_spill] sm:$0xff] }
 0x181   : > { %v1205_v18 = vmul.f32 1.442695, %v1065_v8  ;;  %v2281_v12 = vpop.eup %2280  ;;  %v1606_v19 = vrot.slane %v1605_v44, 1  ;;  %v1618_v7 = vadd.f32 %v1617_v27, %v1616_v32  ;;  %v3496_v14 = vadd.f32 %v1637_v53, %v1515_v41 }
 0x182   : > { %v1349_v36 = vadd.f32 1.0, %v2279_v61  ;;  %v2283_v59 = vpop.eup %2282  ;;  %2294 = vrcp.f32 %v1297_v52  ;;  %v1307_v2 = vadd.f32 1.0, %v2281_v12  ;;  %v1034_v25 = vsub.f32 0.0, %v3489_v63 }
 0x183   : > { %v3501_v15 = vadd.f32 %v3754_v54, %v3740_v10  ;;  %v2285_v20 = vpop.eup %2284  ;;  %v3503_v0 = vadd.f32 %v1606_v19, %v1605_v44  ;;  %v1619_v5 = vrot.slane %v1618_v7, 1  ;;  %v1350_v29 = vadd.f32 1.0, %v2283_v59  ;;  %v3760_v59 = vld [vmem:[#allocation19_spill] sm:$0xff] }
 0x184   : > { %2296 = vrcp.f32 %v1349_v36  ;;  %v2287_v51 = vpop.eup %2286  ;;  %v1308_v42 = vadd.f32 1.0, %v2285_v20  ;;  %v1143_v55 = vmul.f32 1.442695, %v1034_v25  ;;  %v3510_v30 = vadd.f32 %v3755_v6, %v3482_v24  ;;  %v3761_v25 = vld [vmem:[#allocation38_spill] sm:$0xff]  ;;  %v3762_v20 = vld [vmem:[#allocation20_spill] sm:$0xff] }
 0x185   : > { %2298 = vrcp.f32 %v1307_v2  ;;  %v1066_v4 = vsub.f32 0.0, %v3501_v15  ;;  %v3506_v56 = vadd.f32 %v1619_v5, %v1618_v7  ;;  %v1360_v40 = vadd.f32 1.0, %v2287_v51  ;;  %v3759_v7 = vld [vmem:[#allocation37_spill] sm:$0xff] }
 0x186   : > { %2300 = vrcp.f32 %v1350_v29  ;;  %v2289_v62 = vpop.eup %2288  ;;  %v3514_v11 = vadd.f32 %v3756_v48, %v3737_v34  ;;  %v3518_v58 = vadd.f32 %v3757_v22, %v3482_v24  ;;  %v1023_v33 = vsub.f32 0.0, %v3510_v30 }
 0x187   : > { %2302 = vrcp.f32 %v1308_v42  ;;  %v1207_v9 = vmul.f32 1.442695, %v1066_v4  ;;  %v1699_v32 = vcombine.low %v3503_v0, %v3506_v56  ;;  %v1318_v53 = vadd.f32 1.0, %v2289_v62 }
 0x188   : > { %2304 = vrcp.f32 %v1360_v40  ;;  %v2291_v46 = vpop.eup %2290  ;;  %v1076_v23 = vsub.f32 0.0, %v3514_v11  ;;  %v1056_v8 = vsub.f32 0.0, %v3518_v58  ;;  %v3527_v38 = vadd.f32 %v3758_v60, %v3740_v10 }
 0x189   : > { %2306 = vpow2.f32 %v1205_v18  ;;  %v1462_v44 = vmul.f32 %v3470_v49, %v3351_v37  ;;  %v1361_v27 = vadd.f32 1.0, %v2291_v46  ;;  %v1121_v41 = vmul.f32 1.442695, %v1023_v33 }
 0x18a   : > { %2308 = vrcp.f32 %v1318_v53  ;;  %v2293_v61 = vpop.eup %2292  ;;  %v1227_v52 = vmul.f32 1.442695, %v1076_v23  ;;  %v1187_v12 = vmul.f32 1.442695, %v1056_v8  ;;  %v1077_v18 = vsub.f32 0.0, %v3527_v38 }
 0x18b   : > { %2310 = vpow2.f32 %v1143_v55  ;;  %v1319_v19 = vadd.f32 1.0, %v2293_v61  ;;  %v3534_v36 = vadd.f32 %v3759_v7, %v3482_v24  ;;  %v3538_v2 = vadd.f32 %v3760_v59, %v3737_v34 }
 0x18c   : > { %2312 = vrcp.f32 %v1361_v27  ;;  %v2295_v37 = vpop.eup %2294  ;;  %v1229_v49 = vmul.f32 1.442695, %v1077_v18  ;;  %v3542_v54 = vadd.f32 %v3761_v25, %v3482_v24  ;;  %v3546_v5 = vadd.f32 %v3762_v20, %v3740_v10 }
 0x18d   : > { %2314 = vpow2.f32 %v1207_v9  ;;  %v1473_v51 = vmul.f32 %v2295_v37, %v3403_v50  ;;  %v1045_v42 = vsub.f32 0.0, %v3534_v36  ;;  %v1087_v55 = vsub.f32 0.0, %v3538_v2 }
 0x18e   : > { %v2297_v29 = vpop.eup %2296  ;;  %2316 = vrcp.f32 %v1319_v19  ;;  %v1078_v6 = vsub.f32 0.0, %v3542_v54  ;;  %v1088_v62 = vsub.f32 0.0, %v3546_v5  ;;  %v1737_v0 = vrot.slane %v1729_v57, %v3745_v26 }
 0x18f   : > { %v2299_v4 = vpop.eup %2298  ;;  %v1525_v40 = vmul.f32 %v2297_v29, %v3407_v47  ;;  %2318 = vpow2.f32 %v1121_v41  ;;  %v1660_v48 = vadd.f32 %v1473_v51, %v1462_v44  ;;  %v1165_v53 = vmul.f32 1.442695, %v1045_v42  ;;  %v3764_v51 = vld [vmem:[#allocation7_spill] sm:$0xff] }
 0x190   : > { %v2301_v9 = vpop.eup %2300  ;;  %v1483_v22 = vmul.f32 %v2299_v4, %v3412_v1  ;;  %2320 = vpow2.f32 %v1227_v52  ;;  %v1249_v23 = vmul.f32 1.442695, %v1087_v55  ;;  %v1251_v41 = vmul.f32 1.442695, %v1088_v62 }
 0x191   : > { %v2303_v50 = vpop.eup %2302  ;;  %v1626_v33 = vadd.f32 %v3491_v31, %v1525_v40  ;;  %v1526_v46 = vmul.f32 %v2301_v9, %v3428_v17  ;;  %2322 = vpow2.f32 %v1187_v12  ;;  %v3763_v17 = vld [vmem:[#allocation39_spill] sm:$0xff]  ;;  %v1231_v19 = vmul.f32 1.442695, %v1078_v6 }
 0x192   : > { %v2305_v8 = vpop.eup %2304  ;;  %v1648_v47 = vadd.f32 %v3494_v16, %v1483_v22  ;;  %v1484_v60 = vmul.f32 %v2303_v50, %v3434_v13  ;;  %2324 = vpow2.f32 %v1229_v49  ;;  %v3563_v12 = vadd.f32 %v3763_v17, %v3482_v24  ;;  %v3766_v22 = vld [vmem:[#allocation9_spill] sm:$0xff] }
 0x193   : > { %v2307_v27 = vpop.eup %2306  ;;  %v1639_v44 = vadd.f32 %v3496_v14, %v1526_v46  ;;  %v1536_v1 = vmul.f32 %v2305_v8, %v3439_v3  ;;  %2326 = vpow2.f32 %v1165_v53  ;;  %v3570_v42 = vadd.f32 %v3764_v51, %v3737_v34 }
 0x194   : > { %v2309_v61 = vpop.eup %2308  ;;  %v1661_v52 = vadd.f32 %v1660_v48, %v1484_v60  ;;  %v1329_v31 = vadd.f32 1.0, %v2307_v27  ;;  %2328 = vpow2.f32 %v1249_v23  ;;  %v1067_v3 = vsub.f32 0.0, %v3563_v12 }
 0x195   : > { %v2311_v18 = vpop.eup %2310  ;;  %v1627_v16 = vadd.f32 %v1626_v33, %v1536_v1  ;;  %v1494_v13 = vmul.f32 %v2309_v61, %v3445_v43  ;;  %v3765_v43 = vld [vmem:[#allocation8_spill] sm:$0xff]  ;;  %v3579_v53 = vadd.f32 %v3766_v22, %v3740_v10  ;;  %v1098_v60 = vsub.f32 0.0, %v3570_v42 }
 0x196   : > { %v2313_v7 = vpop.eup %2312  ;;  %2330 = vrcp.f32 %v1329_v31  ;;  %v1298_v14 = vadd.f32 1.0, %v2311_v18  ;;  %v3574_v55 = vadd.f32 %v3765_v43, %v3482_v24  ;;  %v1209_v48 = vmul.f32 1.442695, %v1067_v3 }
 0x197   : > { %v2315_v59 = vpop.eup %2314  ;;  %v1628_v37 = vrot.slane %v1627_v16, 4  ;;  %v1649_v49 = vadd.f32 %v1648_v47, %v1494_v13  ;;  %v1537_v25 = vmul.f32 %v2313_v7, %v3450_v21  ;;  %2332 = vpow2.f32 %v1251_v41 }
 0x198   : > { %v2317_v20 = vpop.eup %2316  ;;  %2334 = vrcp.f32 %v1298_v14  ;;  %v1330_v29 = vadd.f32 1.0, %v2315_v59  ;;  %v1099_v31 = vsub.f32 0.0, %v3579_v53  ;;  %v3767_v17 = vlaneseq  ;;  %v3771_v14 = vld [vmem:[#allocation10_spill] sm:$0xff] }
 0x199   : > { %v2319_v4 = vpop.eup %2318  ;;  %v1629_v40 = vadd.f32 %v1628_v37, %v1627_v16  ;;  %v1640_v6 = vadd.f32 %v1639_v44, %v1537_v25  ;;  %v1495_v62 = vmul.f32 %v2317_v20, %v3456_v45  ;;  %2336 = vpow2.f32 %v1231_v19 }
 0x19a   : > { %v2321_v9 = vpop.eup %2320  ;;  %2338 = vrcp.f32 %v1330_v29  ;;  %v1287_v21 = vadd.f32 1.0, %v2319_v4  ;;  %v1100_v45 = vsub.f32 0.0, %v3574_v55  ;;  %vm3585_vm1 = vcmp.lt.s32.totalorder %v3767_v17, 384 }
 0x19b   : > { %v2323_v34 = vpop.eup %2322  ;;  %v1630_v50 = vrot.slane %v1629_v40, 2  ;;  %v1641_v33 = vrot.slane %v1640_v6, 4  ;;  %v1662_v46 = vadd.f32 %v1661_v52, %v1495_v62  ;;  %v1340_v23 = vadd.f32 1.0, %v2321_v9 }
 0x19c   : > { %v2325_v8 = vpop.eup %2324  ;;  %2340 = vrcp.f32 %v1287_v21  ;;  %v1320_v47 = vadd.f32 1.0, %v2323_v34  ;;  %v3770_v19 = vmov 0.0   ;;  %v3594_v3 = vadd.f32 %v3771_v14, %v3482_v24 }
 0x19d   : > { %v2327_v27 = vpop.eup %2326  ;;  %v1631_v44 = vadd.f32 %v1630_v50, %v1629_v40  ;;  %v1642_v1 = vadd.f32 %v1641_v33, %v1640_v6  ;;  %2342 = vrcp.f32 %v1340_v23  ;;  %v1341_v41 = vadd.f32 1.0, %v2325_v8  ;;  %206 = vst.msk [vmem:[#allocation2 + $0x8] sm:$0x7] %vm3585_vm1, %v3770_v19 }
 0x19e   : > { %v2329_v61 = vpop.eup %2328  ;;  %2344 = vrcp.f32 %v1320_v47  ;;  %v1309_v10 = vadd.f32 1.0, %v2327_v27  ;;  %v1271_v20 = vmul.f32 1.442695, %v1098_v60  ;;  %v1275_v43 = vmul.f32 1.442695, %v1100_v45 }
 0x19f   : > { %v1632_v18 = vrot.slane %v1631_v44, 1  ;;  %v1643_v16 = vrot.slane %v1642_v1, 2  ;;  %2346 = vrcp.f32 %v1341_v41  ;;  %v1351_v13 = vadd.f32 1.0, %v2329_v61 }
 0x1a0   : > { %v2331_v7 = vpop.eup %2330  ;;  %2348 = vrcp.f32 %v1309_v10  ;;  %v1273_v4 = vmul.f32 1.442695, %v1099_v31  ;;  %v1089_v40 = vsub.f32 0.0, %v3594_v3 }
 0x1a1   : > { %v2333_v59 = vpop.eup %2332  ;;  %v1644_v37 = vadd.f32 %v1643_v16, %v1642_v1  ;;  %v1505_v25 = vmul.f32 %v2331_v7, %v3475_v35  ;;  %2350 = vrcp.f32 %v1351_v13  ;;  %v1633_v62 = vadd.f32 %v1632_v18, %v1631_v44 }
 0x1a2   : > { %v2335_v29 = vpop.eup %2334  ;;  %v1352_v51 = vadd.f32 1.0, %v2333_v59  ;;  %2352 = vpow2.f32 %v1209_v48  ;;  %v1253_v24 = vmul.f32 1.442695, %v1089_v40 }
 0x1a3   : > { %v2337_v6 = vpop.eup %2336  ;;  %v1645_v9 = vrot.slane %v1644_v37, 1  ;;  %v1650_v21 = vadd.f32 %v1649_v49, %v1505_v25  ;;  %v1474_v50 = vmul.f32 %v2335_v29, %v3489_v63  ;;  %v1721_v63 = vrot.slane %v1699_v32, %v3745_v26 }
 0x1a4   : > { %v2339_v22 = vpop.eup %2338  ;;  %2354 = vrcp.f32 %v1352_v51 }
 0x1a5   : > { %v1646_v34 = vadd.f32 %v1645_v9, %v1644_v37  ;;  %v1506_v35 = vmul.f32 %v2339_v22, %v3501_v15  ;;  %2356 = vpow2.f32 %v1271_v20 }
 0x1a6   : > { %v2341_v33 = vpop.eup %2340  ;;  %2358 = vpow2.f32 %v1275_v43 }
 0x1a7   : > { %v2343_v23 = vpop.eup %2342  ;;  %v1700_v8 = vcombine.low %v1633_v62, %v1646_v34  ;;  %v1663_v47 = vadd.f32 %v1662_v46, %v1506_v35  ;;  %v1463_v60 = vmul.f32 %v2341_v33, %v3510_v30  ;;  %2360 = vpow2.f32 %v1273_v4 }
 0x1a8   : > { %v2345_v45 = vpop.eup %2344  ;;  %v1516_v49 = vmul.f32 %v2343_v23, %v3514_v11  ;;  %2362 = vpow2.f32 %v1253_v24  ;;  %v1342_v11 = vadd.f32 1.0, %v2337_v6 }
 0x1a9   : > { %v2347_v48 = vpop.eup %2346  ;;  %v1728_v15 = vrot.slane %v1700_v8, %v3745_v26  ;;  %v1673_v27 = vadd.f32 %v1474_v50, %v1463_v60  ;;  %v1496_v32 = vmul.f32 %v2345_v45, %v3518_v58 }
 0x1aa   : > { %v2349_v44 = vpop.eup %2348  ;;  %v1651_v1 = vadd.f32 %v1650_v21, %v1516_v49  ;;  %v1517_v46 = vmul.f32 %v2347_v48, %v3527_v38  ;;  %2364 = vrcp.f32 %v1342_v11 }
 0x1ab   : > { %v2351_v30 = vpop.eup %2350  ;;  %v1730_v41 = vcombine.low %v1721_v63, %v1728_v15  ;;  %v1485_v61 = vmul.f32 %v2349_v44, %v3534_v36 }
 0x1ac   : > { %v1664_v10 = vadd.f32 %v1663_v47, %v1517_v46  ;;  %v1527_v31 = vmul.f32 %v2351_v30, %v3538_v2  ;;  %v2353_v17 = vpop.eup %2352 }
 0x1ad   : > { %v1744_v56 = vrot.slane %v1730_v41, %v3745_v26  ;;  %v1674_v18 = vadd.f32 %v1673_v27, %v1485_v61  ;;  %v1331_v13 = vadd.f32 1.0, %v2353_v17 }
 0x1ae   : > { %v2355_v38 = vpop.eup %2354  ;;  %v1652_v16 = vadd.f32 %v1651_v1, %v1527_v31  ;;  %v1542_v31 = vld [vmem:[#allocation2 + $0x8] sm:$0x7] }
 0x1af   : > { %v2357_v36 = vpop.eup %2356  ;;  %v1745_v19 = vcombine.low %v1737_v0, %v1744_v56  ;;  %v1528_v2 = vmul.f32 %v2355_v38, %v3546_v5  ;;  %v1675_v7 = vadd.f32 %v1674_v18, %v1496_v32  ;;  %2366 = vrcp.f32 %v1331_v13 }
 0x1b0   : > { %v2359_v14 = vpop.eup %2358  ;;  %v1362_v59 = vadd.f32 1.0, %v2357_v36 }
 0x1b1   : > { %v2361_v39 = vpop.eup %2360  ;;  %v1665_v28 = vadd.f32 %v1664_v10, %v1528_v2  ;;  %v1364_v57 = vadd.f32 1.0, %v2359_v14  ;;  %v1784_v25 = vmul.f32 0.015625, %v1745_v19 }
 0x1b2   : > { %v2363_v37 = vpop.eup %2362  ;;  %2368 = vrcp.f32 %v1362_v59  ;;  %v1363_v58 = vadd.f32 1.0, %v2361_v39 }
 0x1b3   : > { %2370 = vrcp.f32 %v1364_v57  ;;  %v1353_v20 = vadd.f32 1.0, %v2363_v37  ;;  %1786 = vst [vmem:[%s3621_s27] sm:$0xff] %v1784_v25 }
 0x1b4   : > { %2372 = vrcp.f32 %v1363_v58  ;;  %v2365_v5 = vpop.eup %2364 }
 0x1b5   : > { %2374 = vrcp.f32 %v1353_v20  ;;  %v1518_v40 = vmul.f32 %v2365_v5, %v3542_v54 }
 0x1b9   : > { %v2367_v29 = vpop.eup %2366 }
 0x1ba   : > { %v1507_v51 = vmul.f32 %v2367_v29, %v3563_v12 }
 0x1bc   : > { %v2369_v43 = vpop.eup %2368  ;;  %v1676_v6 = vadd.f32 %v1675_v7, %v1507_v51 }
 0x1bd   : > { %v2371_v4 = vpop.eup %2370  ;;  %v1538_v62 = vmul.f32 %v2369_v43, %v3570_v42 }
 0x1be   : > { %v2373_v9 = vpop.eup %2372  ;;  %v1677_v34 = vadd.f32 %v1676_v6, %v1518_v40  ;;  %v1540_v23 = vmul.f32 %v2371_v4, %v3574_v55 }
 0x1bf   : > { %v2375_v21 = vpop.eup %2374  ;;  %v1653_v22 = vadd.f32 %v1652_v16, %v1538_v62  ;;  %v1539_v24 = vmul.f32 %v2373_v9, %v3579_v53 }
 0x1c0   : > { %v1529_v50 = vmul.f32 %v2375_v21, %v3594_v3 }
 0x1c1   : > { %v1654_v35 = vrot.slane %v1653_v22, 4  ;;  %v1666_v33 = vadd.f32 %v1665_v28, %v1539_v24 }
 0x1c2   : > { %v1678_v12 = vadd.f32 %v1677_v34, %v1529_v50 }
 0x1c3   : > { %v1655_v8 = vadd.f32 %v1654_v35, %v1653_v22  ;;  %v1667_v47 = vrot.slane %v1666_v33, 4 }
 0x1c4   : > { %v1679_v60 = vadd.f32 %v1678_v12, %v1540_v23 }
 0x1c5   : > { %v1656_v54 = vrot.slane %v1655_v8, 2  ;;  %v1668_v45 = vadd.f32 %v1667_v47, %v1666_v33 }
 0x1c6   : > { %v1680_v49 = vrot.slane %v1679_v60, 4 }
 0x1c7   : > { %v1657_v42 = vadd.f32 %v1656_v54, %v1655_v8  ;;  %v1669_v48 = vrot.slane %v1668_v45, 2 }
 0x1c8   : > { %v1681_v63 = vadd.f32 %v1680_v49, %v1679_v60 }
 0x1c9   : > { %v1658_v15 = vrot.slane %v1657_v42, 1  ;;  %v1670_v27 = vadd.f32 %v1669_v48, %v1668_v45 }
 0x1ca   : > { %v1682_v53 = vrot.slane %v1681_v63, 2 }
 0x1cb   : > { %v1659_v44 = vadd.f32 %v1658_v15, %v1657_v42  ;;  %v1671_v3 = vrot.slane %v1670_v27, 1 }
 0x1cc   : > { %v1683_v1 = vadd.f32 %v1682_v53, %v1681_v63 }
 0x1cd   : > { %v1672_v46 = vadd.f32 %v1671_v3, %v1670_v27 }
 0x1ce   : > { %v1684_v30 = vrot.slane %v1683_v1, 1 }
 0x1cf   : > { %v1746_v55 = vcombine.low %v1659_v44, %v1672_v46 }
 0x1d0   : > { %v1685_v41 = vadd.f32 %v1684_v30, %v1683_v1 }
 0x1d1   : > { %v1753_v61 = vrot.slane %v1746_v55, %v3745_v26 }
 0x1d2   : > { %v1760_v11 = vrot.slane %v1685_v41, %v3745_v26 }
 0x1d4   : > { %v1761_v10 = vcombine.low %v1753_v61, %v1760_v11 }
 0x1d6   : > { %v1768_v17 = vrot.slane %v1761_v10, %v3745_v26 }
 0x1d8   : > { %v1772_v0 = vadd.f32 %v1768_v17, %v1542_v31 }
 0x1da   : > { %1778 = vst.msk [vmem:[#allocation2 + $0x8] sm:$0x7] %vm3585_vm1, %v1772_v0 }
 0x1e1   : > { %v1783_v56 = vld [vmem:[#allocation2 + $0x8] sm:$0x7] }
 0x1e2   : > { %v1785_v32 = vmul.f32 0.015625, %v1783_v56 }
 0x1e4   : > { %1787 = vst.msk [vmem:[%s3621_s27 + $0x8] sm:$0x7] %vm3585_vm1, %v1785_v32 }
 0x1e5 PF: > { %s13_s14 = sadd.s32 1, %s2399_s14   ;;  %s3772_s12 = smov %s2395_s13 }
 0x1e6   : > { %p10_p5 = scmp.ge.s32.totalorder %s13_s14, 4   ;;  %s3773_s13 = smov %s3775_s15 }
 0x1e8   :  { %12 = sbr.rel (!%p10_p5) target bundleno = 2 (0x2), region = 70 }

</bundles_post_ra>
